<compile_context>
chip_gen: v6e
topology: v6e:2x2x1
jax: 0.10.0
libtpu: 0.0.40
codegen_flags: <defaults>
</compile_context>

<pallas_src>
import functools

import jax
import jax.numpy as jnp
from jax import lax
from jax.experimental import pallas as pl
from jax.experimental.pallas import tpu as pltpu


# ----------------------------- Pallas kernel ------------------------------ #
def _conv3d_fused_kernel(x_ref, w_ref, b_ref, o_ref, acc_ref, *, H, W, KH, KW):
    """One grid step = (batch n, output depth d, depth tap kd).

    x_ref  : (1, 1, Hp, Cin, Wp)   padded input slab at padded depth d + kd
    w_ref  : (1, KH, KW, Cout, Cin) weight taps for this kd
    b_ref  : (Cout, 1, 1)           bias (f32)
    o_ref  : (1, Cout, 1, H, W)     output block (NCDHW), written at last kd
    acc_ref: (Cout, H, W)           f32 accumulator, resident across kd
    """
    kd = pl.program_id(2)

    @pl.when(kd == 0)
    def _init():
        acc_ref[...] = jnp.zeros_like(acc_ref)

    # Fused im2col: loop over output rows and the in-plane (kh, kw) taps,
    # taking shifted slices of the VMEM-resident slab.  H is small here so a
    # static (unrolled) loop is fine; for very large H use lax.fori_loop.
    for h in range(H):
        contrib = None
        for kh in range(KH):
            row = x_ref[0, 0, h + kh, :, :]            # (Cin, Wp)
            for kw in range(KW):
                xs = row[:, kw:kw + W]                  # (Cin, W) shifted slice
                wk = w_ref[0, kh, kw, :, :]             # (Cout, Cin)
                d = jnp.dot(wk, xs, preferred_element_type=jnp.float32)
                contrib = d if contrib is None else contrib + d
        acc_ref[:, h, :] += contrib                     # (Cout, W)

    @pl.when(kd == pl.num_programs(2) - 1)
    def _finalize():
        out = acc_ref[...] + b_ref[...]                 # (Cout,H,W) + (Cout,1,1)
        o_ref[0, :, 0, :, :] = out.astype(o_ref.dtype)  # single bulk store


def conv3d_pallas(x, weight, bias, *, compute_dtype=jnp.bfloat16):
    """3-D conv (stride 1, 'same' padding).  x: (N, Cin, D, H, W) -> (N, Cout, D, H, W)."""
    N, Cin, D, H, W = x.shape
    Cout, Cin_w, KD, KH, KW = weight.shape
    assert Cin_w == Cin
    assert KD % 2 == 1 and KH % 2 == 1 and KW % 2 == 1
    pad = KD // 2

    # ---- wrapper glue: one fused cast+transpose+pad pass over the (small) input
    #      layout (N, Dp, Hp, Cin, Wp): kw taps become lane slices, kh/h leading-
    #      dim offsets, kd a grid block-index shift.
    xt = jnp.transpose(x.astype(compute_dtype), (0, 2, 3, 1, 4))      # (N,D,H,Cin,W)
    xp = jnp.pad(xt, ((0, 0), (pad, pad), (pad, pad), (0, 0), (pad, pad)))
    Hp, Wp = H + 2 * pad, W + 2 * pad

    # weights: (Cout, Cin, KD, KH, KW) -> (KD, KH, KW, Cout, Cin)
    wt = jnp.transpose(weight.astype(compute_dtype), (2, 3, 4, 0, 1))
    b3 = bias.astype(jnp.float32).reshape(Cout, 1, 1)

    kernel = functools.partial(_conv3d_fused_kernel, H=H, W=W, KH=KH, KW=KW)

    flops = 2 * N * D * H * W * KD * KH * KW * Cin * Cout
    bytes_accessed = (KD * xp.size * xp.dtype.itemsize            # each slab read KD times
                      + N * D * wt.size * wt.dtype.itemsize
                      + N * Cout * D * H * W * 4)

    out = pl.pallas_call(
        kernel,
        out_shape=jax.ShapeDtypeStruct((N, Cout, D, H, W), jnp.float32),
        grid=(N, D, KD),
        in_specs=[
            # padded input: one depth slab, block index shifted by the depth tap
            pl.BlockSpec((1, 1, Hp, Cin, Wp), lambda n, d, kd: (n, d + kd, 0, 0, 0)),
            # weights for this depth tap
            pl.BlockSpec((1, KH, KW, Cout, Cin), lambda n, d, kd: (kd, 0, 0, 0, 0)),
            # bias (full)
            pl.BlockSpec((Cout, 1, 1), lambda n, d, kd: (0, 0, 0)),
        ],
        # output block constant across kd -> resident accumulator target; NCDHW
        # layout is produced directly (no wrapper transpose of the output).
        out_specs=pl.BlockSpec((1, Cout, 1, H, W), lambda n, d, kd: (n, 0, d, 0, 0)),
        scratch_shapes=[pltpu.VMEM((Cout, H, W), jnp.float32)],
        compiler_params=pltpu.CompilerParams(
            dimension_semantics=("parallel", "parallel", "arbitrary")),
        cost_estimate=pl.CostEstimate(
            flops=flops, transcendentals=0, bytes_accessed=bytes_accessed),
    )(xp, wt, b3)
    return out


# ------------------------------ Network model ----------------------------- #
class Network:
    """Minimal concrete realization of the abstract torch Network (dim=3)."""

    def __init__(self, in_channels=4, out_channels=8, kernel=3,
                 init_type="normal", init_gain=0.02, dim=3,
                 compute_dtype=jnp.bfloat16, key=None):
        assert dim == 3
        assert init_type == "normal"
        self.dim = dim
        self.kernel = kernel
        self.in_channels = in_channels
        self.out_channels = out_channels
        self.compute_dtype = compute_dtype
        if key is None:
            key = jax.random.PRNGKey(0)
        # init_func: normal(0, init_gain) for Conv weight, bias = 0
        # PyTorch Conv3d weight layout: (Cout, Cin, Kd, Kh, Kw)
        self.weight = (
            jax.random.normal(
                key, (out_channels, in_channels, kernel, kernel, kernel),
                dtype=jnp.float32,
            ) * init_gain
        )
        self.bias = jnp.zeros((out_channels,), dtype=jnp.float32)

    def getName(self):
        return self.__class__.__name__

    def forward(self, x):
        """x: (N, Cin, D, H, W) float32 -> Dict[str, (N, Cout, D, H, W) float32]."""
        out = conv3d_pallas(x, self.weight, self.bias,
                            compute_dtype=self.compute_dtype)
        return {self.getName(): out}


# ------------------------------ reference ---------------------------------- #
def _reference_conv3d(x, weight, bias, compute_dtype):
    # Matched-precision reference: same bf16 operands, f32 accumulation.
    out = lax.conv_general_dilated(
        x.astype(compute_dtype), weight.astype(compute_dtype),
        window_strides=(1, 1, 1),
        padding=((1, 1), (1, 1), (1, 1)),
        dimension_numbers=("NCDHW", "OIDHW", "NCDHW"),
        preferred_element_type=jnp.float32,
    )
    return out + bias.reshape(1, -1, 1, 1, 1)


if __name__ == "__main__":
    key = jax.random.PRNGKey(0)
    k_w, k_x = jax.random.split(key)

    N, Cin, D, H, W = 2, 4, 8, 8, 8
    net = Network(in_channels=Cin, out_channels=8, key=k_w)

    x = jax.random.normal(k_x, (N, Cin, D, H, W), dtype=jnp.float32)

    out = net.forward(x)[net.getName()]
    out = jax.block_until_ready(out)

    ref = jax.block_until_ready(
        _reference_conv3d(x, net.weight, net.bias, net.compute_dtype))

    assert out.shape == (N, 8, D, H, W)
    assert out.dtype == jnp.float32
    err = float(jnp.max(jnp.abs(out - ref)))
    assert jnp.allclose(out, ref, atol=1e-2, rtol=1e-2), f"mismatch vs reference: {err}"

    print("KERNEL_OK")
</pallas_src>

<mosaic_0001>
module attributes {stable_mosaic.version = 11 : i64} {
  func.func @_conv3d_fused_kernel(%arg0: i32, %arg1: i32, %arg2: i32, %arg3: memref<1x1x10x4x10xbf16, #tpu.memory_space<vmem>>, %arg4: memref<1x3x3x8x4xbf16, #tpu.memory_space<vmem>>, %arg5: memref<8x1x1xf32, #tpu.memory_space<vmem>>, %arg6: memref<1x8x1x8x8xf32, #tpu.memory_space<vmem>>, %arg7: memref<8x8x8xf32, #tpu.memory_space<vmem>>) attributes {dimension_semantics = [#tpu.dimension_semantics<parallel>, #tpu.dimension_semantics<parallel>, #tpu.dimension_semantics<arbitrary>], iteration_bounds = array<i64: 2, 8, 3>, scalar_prefetch = 0 : i64, scratch_operands = 1 : i64, tpu.core_type = #tpu.core_type<tc>, window_params = [{transform_indices = @transform_0, window_bounds = array<i64: 1, 1, 10, 4, 10>}, {transform_indices = @transform_1, window_bounds = array<i64: 1, 3, 3, 8, 4>}, {pipeline_mode = #tpu.pipeline_mode<synchronous>, transform_indices = @transform_2, window_bounds = array<i64: 8, 1, 1>}, {transform_indices = @transform_3, window_bounds = array<i64: 1, 8, 1, 8, 8>}]} {
    %c0_i32 = arith.constant 0 : i32
    %0 = arith.cmpi eq, %arg2, %c0_i32 : i32
    %1 = arith.extui %0 : i1 to i32
    %c0_i32_0 = arith.constant 0 : i32
    %2 = arith.cmpi ne, %1, %c0_i32_0 : i32
    scf.if %2 {
      %cst_591 = arith.constant 0.000000e+00 : f32
      %454 = vector.broadcast %cst_591 : f32 to vector<8x8x8xf32>
      %c0_592 = arith.constant 0 : index
      %c0_593 = arith.constant 0 : index
      %c0_594 = arith.constant 0 : index
      %455 = vector.load %arg7[%c0_592, %c0_593, %c0_594] : memref<8x8x8xf32, #tpu.memory_space<vmem>>, vector<8x8x8xf32>
      tpu.vector_store %arg7[%c0_592, %c0_593, %c0_594], %454 {strides = array<i32>} : memref<8x8x8xf32, #tpu.memory_space<vmem>>, vector<8x8x8xf32>,
    } else {
    }
    %c0 = arith.constant 0 : index
    %c0_1 = arith.constant 0 : index
    %c0_2 = arith.constant 0 : index
    %c0_3 = arith.constant 0 : index
    %c0_4 = arith.constant 0 : index
    %3 = vector.load %arg3[%c0, %c0_1, %c0_2, %c0_3, %c0_4] : memref<1x1x10x4x10xbf16, #tpu.memory_space<vmem>>, vector<1x1x1x4x10xbf16>
    %4 = vector.shape_cast %3 : vector<1x1x1x4x10xbf16> to vector<4x10xbf16>
    %5 = vector.extract_strided_slice %4 {offsets = [0, 0], sizes = [4, 8], strides = [1, 1]} : vector<4x10xbf16> to vector<4x8xbf16>
    %c0_5 = arith.constant 0 : index
    %c0_6 = arith.constant 0 : index
    %c0_7 = arith.constant 0 : index
    %c0_8 = arith.constant 0 : index
    %c0_9 = arith.constant 0 : index
    %6 = vector.load %arg4[%c0_5, %c0_6, %c0_7, %c0_8, %c0_9] : memref<1x3x3x8x4xbf16, #tpu.memory_space<vmem>>, vector<1x1x1x8x4xbf16>
    %7 = vector.shape_cast %6 : vector<1x1x1x8x4xbf16> to vector<8x4xbf16>
    %cst = arith.constant dense<0.000000e+00> : vector<8x8xf32>
    %8 = tpu.matmul %7, %5, %cst {dimension_numbers = #tpu.dot_dimension_numbers<[1], [0], [0], [1], [0, 0, 1, 1], [], []>} : vector<8x4xbf16>, vector<4x8xbf16>, vector<8x8xf32> -> vector<8x8xf32>
    %9 = vector.extract_strided_slice %4 {offsets = [0, 1], sizes = [4, 8], strides = [1, 1]} : vector<4x10xbf16> to vector<4x8xbf16>
    %c0_10 = arith.constant 0 : index
    %c0_11 = arith.constant 0 : index
    %c1 = arith.constant 1 : index
    %c0_12 = arith.constant 0 : index
    %c0_13 = arith.constant 0 : index
    %10 = vector.load %arg4[%c0_10, %c0_11, %c1, %c0_12, %c0_13] : memref<1x3x3x8x4xbf16, #tpu.memory_space<vmem>>, vector<1x1x1x8x4xbf16>
    %11 = vector.shape_cast %10 : vector<1x1x1x8x4xbf16> to vector<8x4xbf16>
    %cst_14 = arith.constant dense<0.000000e+00> : vector<8x8xf32>
    %12 = tpu.matmul %11, %9, %cst_14 {dimension_numbers = #tpu.dot_dimension_numbers<[1], [0], [0], [1], [0, 0, 1, 1], [], []>} : vector<8x4xbf16>, vector<4x8xbf16>, vector<8x8xf32> -> vector<8x8xf32>
    %13 = arith.addf %8, %12 : vector<8x8xf32>
    %14 = vector.extract_strided_slice %4 {offsets = [0, 2], sizes = [4, 8], strides = [1, 1]} : vector<4x10xbf16> to vector<4x8xbf16>
    %c0_15 = arith.constant 0 : index
    %c0_16 = arith.constant 0 : index
    %c2 = arith.constant 2 : index
    %c0_17 = arith.constant 0 : index
    %c0_18 = arith.constant 0 : index
    %15 = vector.load %arg4[%c0_15, %c0_16, %c2, %c0_17, %c0_18] : memref<1x3x3x8x4xbf16, #tpu.memory_space<vmem>>, vector<1x1x1x8x4xbf16>
    %16 = vector.shape_cast %15 : vector<1x1x1x8x4xbf16> to vector<8x4xbf16>
    %cst_19 = arith.constant dense<0.000000e+00> : vector<8x8xf32>
    %17 = tpu.matmul %16, %14, %cst_19 {dimension_numbers = #tpu.dot_dimension_numbers<[1], [0], [0], [1], [0, 0, 1, 1], [], []>} : vector<8x4xbf16>, vector<4x8xbf16>, vector<8x8xf32> -> vector<8x8xf32>
    %18 = arith.addf %13, %17 : vector<8x8xf32>
    %c0_20 = arith.constant 0 : index
    %c0_21 = arith.constant 0 : index
    %c1_22 = arith.constant 1 : index
    %c0_23 = arith.constant 0 : index
    %c0_24 = arith.constant 0 : index
    %19 = vector.load %arg3[%c0_20, %c0_21, %c1_22, %c0_23, %c0_24] : memref<1x1x10x4x10xbf16, #tpu.memory_space<vmem>>, vector<1x1x1x4x10xbf16>
    %20 = vector.shape_cast %19 : vector<1x1x1x4x10xbf16> to vector<4x10xbf16>
    %21 = vector.extract_strided_slice %20 {offsets = [0, 0], sizes = [4, 8], strides = [1, 1]} : vector<4x10xbf16> to vector<4x8xbf16>
    %c0_25 = arith.constant 0 : index
    %c1_26 = arith.constant 1 : index
    %c0_27 = arith.constant 0 : index
    %c0_28 = arith.constant 0 : index
    %c0_29 = arith.constant 0 : index
    %22 = vector.load %arg4[%c0_25, %c1_26, %c0_27, %c0_28, %c0_29] : memref<1x3x3x8x4xbf16, #tpu.memory_space<vmem>>, vector<1x1x1x8x4xbf16>
    %23 = vector.shape_cast %22 : vector<1x1x1x8x4xbf16> to vector<8x4xbf16>
    %cst_30 = arith.constant dense<0.000000e+00> : vector<8x8xf32>
    %24 = tpu.matmul %23, %21, %cst_30 {dimension_numbers = #tpu.dot_dimension_numbers<[1], [0], [0], [1], [0, 0, 1, 1], [], []>} : vector<8x4xbf16>, vector<4x8xbf16>, vector<8x8xf32> -> vector<8x8xf32>
    %25 = arith.addf %18, %24 : vector<8x8xf32>
    %26 = vector.extract_strided_slice %20 {offsets = [0, 1], sizes = [4, 8], strides = [1, 1]} : vector<4x10xbf16> to vector<4x8xbf16>
    %c0_31 = arith.constant 0 : index
    %c1_32 = arith.constant 1 : index
    %c1_33 = arith.constant 1 : index
    %c0_34 = arith.constant 0 : index
    %c0_35 = arith.constant 0 : index
    %27 = vector.load %arg4[%c0_31, %c1_32, %c1_33, %c0_34, %c0_35] : memref<1x3x3x8x4xbf16, #tpu.memory_space<vmem>>, vector<1x1x1x8x4xbf16>
    %28 = vector.shape_cast %27 : vector<1x1x1x8x4xbf16> to vector<8x4xbf16>
    %cst_36 = arith.constant dense<0.000000e+00> : vector<8x8xf32>
    %29 = tpu.matmul %28, %26, %cst_36 {dimension_numbers = #tpu.dot_dimension_numbers<[1], [0], [0], [1], [0, 0, 1, 1], [], []>} : vector<8x4xbf16>, vector<4x8xbf16>, vector<8x8xf32> -> vector<8x8xf32>
    %30 = arith.addf %25, %29 : vector<8x8xf32>
    %31 = vector.extract_strided_slice %20 {offsets = [0, 2], sizes = [4, 8], strides = [1, 1]} : vector<4x10xbf16> to vector<4x8xbf16>
    %c0_37 = arith.constant 0 : index
    %c1_38 = arith.constant 1 : index
    %c2_39 = arith.constant 2 : index
    %c0_40 = arith.constant 0 : index
    %c0_41 = arith.constant 0 : index
    %32 = vector.load %arg4[%c0_37, %c1_38, %c2_39, %c0_40, %c0_41] : memref<1x3x3x8x4xbf16, #tpu.memory_space<vmem>>, vector<1x1x1x8x4xbf16>
    %33 = vector.shape_cast %32 : vector<1x1x1x8x4xbf16> to vector<8x4xbf16>
    %cst_42 = arith.constant dense<0.000000e+00> : vector<8x8xf32>
    %34 = tpu.matmul %33, %31, %cst_42 {dimension_numbers = #tpu.dot_dimension_numbers<[1], [0], [0], [1], [0, 0, 1, 1], [], []>} : vector<8x4xbf16>, vector<4x8xbf16>, vector<8x8xf32> -> vector<8x8xf32>
    %35 = arith.addf %30, %34 : vector<8x8xf32>
    %c0_43 = arith.constant 0 : index
    %c0_44 = arith.constant 0 : index
    %c2_45 = arith.constant 2 : index
    %c0_46 = arith.constant 0 : index
    %c0_47 = arith.constant 0 : index
    %36 = vector.load %arg3[%c0_43, %c0_44, %c2_45, %c0_46, %c0_47] : memref<1x1x10x4x10xbf16, #tpu.memory_space<vmem>>, vector<1x1x1x4x10xbf16>
    %37 = vector.shape_cast %36 : vector<1x1x1x4x10xbf16> to vector<4x10xbf16>
    %38 = vector.extract_strided_slice %37 {offsets = [0, 0], sizes = [4, 8], strides = [1, 1]} : vector<4x10xbf16> to vector<4x8xbf16>
    %c0_48 = arith.constant 0 : index
    %c2_49 = arith.constant 2 : index
    %c0_50 = arith.constant 0 : index
    %c0_51 = arith.constant 0 : index
    %c0_52 = arith.constant 0 : index
    %39 = vector.load %arg4[%c0_48, %c2_49, %c0_50, %c0_51, %c0_52] : memref<1x3x3x8x4xbf16, #tpu.memory_space<vmem>>, vector<1x1x1x8x4xbf16>
    %40 = vector.shape_cast %39 : vector<1x1x1x8x4xbf16> to vector<8x4xbf16>
    %cst_53 = arith.constant dense<0.000000e+00> : vector<8x8xf32>
    %41 = tpu.matmul %40, %38, %cst_53 {dimension_numbers = #tpu.dot_dimension_numbers<[1], [0], [0], [1], [0, 0, 1, 1], [], []>} : vector<8x4xbf16>, vector<4x8xbf16>, vector<8x8xf32> -> vector<8x8xf32>
    %42 = arith.addf %35, %41 : vector<8x8xf32>
    %43 = vector.extract_strided_slice %37 {offsets = [0, 1], sizes = [4, 8], strides = [1, 1]} : vector<4x10xbf16> to vector<4x8xbf16>
    %c0_54 = arith.constant 0 : index
    %c2_55 = arith.constant 2 : index
    %c1_56 = arith.constant 1 : index
    %c0_57 = arith.constant 0 : index
    %c0_58 = arith.constant 0 : index
    %44 = vector.load %arg4[%c0_54, %c2_55, %c1_56, %c0_57, %c0_58] : memref<1x3x3x8x4xbf16, #tpu.memory_space<vmem>>, vector<1x1x1x8x4xbf16>
    %45 = vector.shape_cast %44 : vector<1x1x1x8x4xbf16> to vector<8x4xbf16>
    %cst_59 = arith.constant dense<0.000000e+00> : vector<8x8xf32>
    %46 = tpu.matmul %45, %43, %cst_59 {dimension_numbers = #tpu.dot_dimension_numbers<[1], [0], [0], [1], [0, 0, 1, 1], [], []>} : vector<8x4xbf16>, vector<4x8xbf16>, vector<8x8xf32> -> vector<8x8xf32>
    %47 = arith.addf %42, %46 : vector<8x8xf32>
    %48 = vector.extract_strided_slice %37 {offsets = [0, 2], sizes = [4, 8], strides = [1, 1]} : vector<4x10xbf16> to vector<4x8xbf16>
    %c0_60 = arith.constant 0 : index
    %c2_61 = arith.constant 2 : index
    %c2_62 = arith.constant 2 : index
    %c0_63 = arith.constant 0 : index
    %c0_64 = arith.constant 0 : index
    %49 = vector.load %arg4[%c0_60, %c2_61, %c2_62, %c0_63, %c0_64] : memref<1x3x3x8x4xbf16, #tpu.memory_space<vmem>>, vector<1x1x1x8x4xbf16>
    %50 = vector.shape_cast %49 : vector<1x1x1x8x4xbf16> to vector<8x4xbf16>
    %cst_65 = arith.constant dense<0.000000e+00> : vector<8x8xf32>
    %51 = tpu.matmul %50, %48, %cst_65 {dimension_numbers = #tpu.dot_dimension_numbers<[1], [0], [0], [1], [0, 0, 1, 1], [], []>} : vector<8x4xbf16>, vector<4x8xbf16>, vector<8x8xf32> -> vector<8x8xf32>
    %52 = arith.addf %47, %51 : vector<8x8xf32>
    %c0_66 = arith.constant 0 : index
    %c0_67 = arith.constant 0 : index
    %c0_68 = arith.constant 0 : index
    %53 = vector.load %arg7[%c0_66, %c0_67, %c0_68] : memref<8x8x8xf32, #tpu.memory_space<vmem>>, vector<8x1x8xf32>
    %54 = vector.shape_cast %53 : vector<8x1x8xf32> to vector<8x8xf32>
    %55 = arith.addf %54, %52 : vector<8x8xf32>
    %c0_69 = arith.constant 0 : index
    %c0_70 = arith.constant 0 : index
    %c0_71 = arith.constant 0 : index
    %56 = vector.load %arg7[%c0_69, %c0_70, %c0_71] : memref<8x8x8xf32, #tpu.memory_space<vmem>>, vector<8x1x8xf32>
    %57 = vector.shape_cast %56 : vector<8x1x8xf32> to vector<8x8xf32>
    %58 = vector.shape_cast %55 : vector<8x8xf32> to vector<8x1x8xf32>
    tpu.vector_store %arg7[%c0_69, %c0_70, %c0_71], %58 {strides = array<i32>} : memref<8x8x8xf32, #tpu.memory_space<vmem>>, vector<8x1x8xf32>,
    %c0_72 = arith.constant 0 : index
    %c0_73 = arith.constant 0 : index
    %c1_74 = arith.constant 1 : index
    %c0_75 = arith.constant 0 : index
    %c0_76 = arith.constant 0 : index
    %59 = vector.load %arg3[%c0_72, %c0_73, %c1_74, %c0_75, %c0_76] : memref<1x1x10x4x10xbf16, #tpu.memory_space<vmem>>, vector<1x1x1x4x10xbf16>
    %60 = vector.shape_cast %59 : vector<1x1x1x4x10xbf16> to vector<4x10xbf16>
    %61 = vector.extract_strided_slice %60 {offsets = [0, 0], sizes = [4, 8], strides = [1, 1]} : vector<4x10xbf16> to vector<4x8xbf16>
    %c0_77 = arith.constant 0 : index
    %c0_78 = arith.constant 0 : index
    %c0_79 = arith.constant 0 : index
    %c0_80 = arith.constant 0 : index
    %c0_81 = arith.constant 0 : index
    %62 = vector.load %arg4[%c0_77, %c0_78, %c0_79, %c0_80, %c0_81] : memref<1x3x3x8x4xbf16, #tpu.memory_space<vmem>>, vector<1x1x1x8x4xbf16>
    %63 = vector.shape_cast %62 : vector<1x1x1x8x4xbf16> to vector<8x4xbf16>
    %cst_82 = arith.constant dense<0.000000e+00> : vector<8x8xf32>
    %64 = tpu.matmul %63, %61, %cst_82 {dimension_numbers = #tpu.dot_dimension_numbers<[1], [0], [0], [1], [0, 0, 1, 1], [], []>} : vector<8x4xbf16>, vector<4x8xbf16>, vector<8x8xf32> -> vector<8x8xf32>
    %65 = vector.extract_strided_slice %60 {offsets = [0, 1], sizes = [4, 8], strides = [1, 1]} : vector<4x10xbf16> to vector<4x8xbf16>
    %c0_83 = arith.constant 0 : index
    %c0_84 = arith.constant 0 : index
    %c1_85 = arith.constant 1 : index
    %c0_86 = arith.constant 0 : index
    %c0_87 = arith.constant 0 : index
    %66 = vector.load %arg4[%c0_83, %c0_84, %c1_85, %c0_86, %c0_87] : memref<1x3x3x8x4xbf16, #tpu.memory_space<vmem>>, vector<1x1x1x8x4xbf16>
    %67 = vector.shape_cast %66 : vector<1x1x1x8x4xbf16> to vector<8x4xbf16>
    %cst_88 = arith.constant dense<0.000000e+00> : vector<8x8xf32>
    %68 = tpu.matmul %67, %65, %cst_88 {dimension_numbers = #tpu.dot_dimension_numbers<[1], [0], [0], [1], [0, 0, 1, 1], [], []>} : vector<8x4xbf16>, vector<4x8xbf16>, vector<8x8xf32> -> vector<8x8xf32>
    %69 = arith.addf %64, %68 : vector<8x8xf32>
    %70 = vector.extract_strided_slice %60 {offsets = [0, 2], sizes = [4, 8], strides = [1, 1]} : vector<4x10xbf16> to vector<4x8xbf16>
    %c0_89 = arith.constant 0 : index
    %c0_90 = arith.constant 0 : index
    %c2_91 = arith.constant 2 : index
    %c0_92 = arith.constant 0 : index
    %c0_93 = arith.constant 0 : index
    %71 = vector.load %arg4[%c0_89, %c0_90, %c2_91, %c0_92, %c0_93] : memref<1x3x3x8x4xbf16, #tpu.memory_space<vmem>>, vector<1x1x1x8x4xbf16>
    %72 = vector.shape_cast %71 : vector<1x1x1x8x4xbf16> to vector<8x4xbf16>
    %cst_94 = arith.constant dense<0.000000e+00> : vector<8x8xf32>
    %73 = tpu.matmul %72, %70, %cst_94 {dimension_numbers = #tpu.dot_dimension_numbers<[1], [0], [0], [1], [0, 0, 1, 1], [], []>} : vector<8x4xbf16>, vector<4x8xbf16>, vector<8x8xf32> -> vector<8x8xf32>
    %74 = arith.addf %69, %73 : vector<8x8xf32>
    %c0_95 = arith.constant 0 : index
    %c0_96 = arith.constant 0 : index
    %c2_97 = arith.constant 2 : index
    %c0_98 = arith.constant 0 : index
    %c0_99 = arith.constant 0 : index
    %75 = vector.load %arg3[%c0_95, %c0_96, %c2_97, %c0_98, %c0_99] : memref<1x1x10x4x10xbf16, #tpu.memory_space<vmem>>, vector<1x1x1x4x10xbf16>
    %76 = vector.shape_cast %75 : vector<1x1x1x4x10xbf16> to vector<4x10xbf16>
    %77 = vector.extract_strided_slice %76 {offsets = [0, 0], sizes = [4, 8], strides = [1, 1]} : vector<4x10xbf16> to vector<4x8xbf16>
    %c0_100 = arith.constant 0 : index
    %c1_101 = arith.constant 1 : index
    %c0_102 = arith.constant 0 : index
    %c0_103 = arith.constant 0 : index
    %c0_104 = arith.constant 0 : index
    %78 = vector.load %arg4[%c0_100, %c1_101, %c0_102, %c0_103, %c0_104] : memref<1x3x3x8x4xbf16, #tpu.memory_space<vmem>>, vector<1x1x1x8x4xbf16>
    %79 = vector.shape_cast %78 : vector<1x1x1x8x4xbf16> to vector<8x4xbf16>
    %cst_105 = arith.constant dense<0.000000e+00> : vector<8x8xf32>
    %80 = tpu.matmul %79, %77, %cst_105 {dimension_numbers = #tpu.dot_dimension_numbers<[1], [0], [0], [1], [0, 0, 1, 1], [], []>} : vector<8x4xbf16>, vector<4x8xbf16>, vector<8x8xf32> -> vector<8x8xf32>
    %81 = arith.addf %74, %80 : vector<8x8xf32>
    %82 = vector.extract_strided_slice %76 {offsets = [0, 1], sizes = [4, 8], strides = [1, 1]} : vector<4x10xbf16> to vector<4x8xbf16>
    %c0_106 = arith.constant 0 : index
    %c1_107 = arith.constant 1 : index
    %c1_108 = arith.constant 1 : index
    %c0_109 = arith.constant 0 : index
    %c0_110 = arith.constant 0 : index
    %83 = vector.load %arg4[%c0_106, %c1_107, %c1_108, %c0_109, %c0_110] : memref<1x3x3x8x4xbf16, #tpu.memory_space<vmem>>, vector<1x1x1x8x4xbf16>
    %84 = vector.shape_cast %83 : vector<1x1x1x8x4xbf16> to vector<8x4xbf16>
    %cst_111 = arith.constant dense<0.000000e+00> : vector<8x8xf32>
    %85 = tpu.matmul %84, %82, %cst_111 {dimension_numbers = #tpu.dot_dimension_numbers<[1], [0], [0], [1], [0, 0, 1, 1], [], []>} : vector<8x4xbf16>, vector<4x8xbf16>, vector<8x8xf32> -> vector<8x8xf32>
    %86 = arith.addf %81, %85 : vector<8x8xf32>
    %87 = vector.extract_strided_slice %76 {offsets = [0, 2], sizes = [4, 8], strides = [1, 1]} : vector<4x10xbf16> to vector<4x8xbf16>
    %c0_112 = arith.constant 0 : index
    %c1_113 = arith.constant 1 : index
    %c2_114 = arith.constant 2 : index
    %c0_115 = arith.constant 0 : index
    %c0_116 = arith.constant 0 : index
    %88 = vector.load %arg4[%c0_112, %c1_113, %c2_114, %c0_115, %c0_116] : memref<1x3x3x8x4xbf16, #tpu.memory_space<vmem>>, vector<1x1x1x8x4xbf16>
    %89 = vector.shape_cast %88 : vector<1x1x1x8x4xbf16> to vector<8x4xbf16>
    %cst_117 = arith.constant dense<0.000000e+00> : vector<8x8xf32>
    %90 = tpu.matmul %89, %87, %cst_117 {dimension_numbers = #tpu.dot_dimension_numbers<[1], [0], [0], [1], [0, 0, 1, 1], [], []>} : vector<8x4xbf16>, vector<4x8xbf16>, vector<8x8xf32> -> vector<8x8xf32>
    %91 = arith.addf %86, %90 : vector<8x8xf32>
    %c0_118 = arith.constant 0 : index
    %c0_119 = arith.constant 0 : index
    %c3 = arith.constant 3 : index
    %c0_120 = arith.constant 0 : index
    %c0_121 = arith.constant 0 : index
    %92 = vector.load %arg3[%c0_118, %c0_119, %c3, %c0_120, %c0_121] : memref<1x1x10x4x10xbf16, #tpu.memory_space<vmem>>, vector<1x1x1x4x10xbf16>
    %93 = vector.shape_cast %92 : vector<1x1x1x4x10xbf16> to vector<4x10xbf16>
    %94 = vector.extract_strided_slice %93 {offsets = [0, 0], sizes = [4, 8], strides = [1, 1]} : vector<4x10xbf16> to vector<4x8xbf16>
    %c0_122 = arith.constant 0 : index
    %c2_123 = arith.constant 2 : index
    %c0_124 = arith.constant 0 : index
    %c0_125 = arith.constant 0 : index
    %c0_126 = arith.constant 0 : index
    %95 = vector.load %arg4[%c0_122, %c2_123, %c0_124, %c0_125, %c0_126] : memref<1x3x3x8x4xbf16, #tpu.memory_space<vmem>>, vector<1x1x1x8x4xbf16>
    %96 = vector.shape_cast %95 : vector<1x1x1x8x4xbf16> to vector<8x4xbf16>
    %cst_127 = arith.constant dense<0.000000e+00> : vector<8x8xf32>
    %97 = tpu.matmul %96, %94, %cst_127 {dimension_numbers = #tpu.dot_dimension_numbers<[1], [0], [0], [1], [0, 0, 1, 1], [], []>} : vector<8x4xbf16>, vector<4x8xbf16>, vector<8x8xf32> -> vector<8x8xf32>
    %98 = arith.addf %91, %97 : vector<8x8xf32>
    %99 = vector.extract_strided_slice %93 {offsets = [0, 1], sizes = [4, 8], strides = [1, 1]} : vector<4x10xbf16> to vector<4x8xbf16>
    %c0_128 = arith.constant 0 : index
    %c2_129 = arith.constant 2 : index
    %c1_130 = arith.constant 1 : index
    %c0_131 = arith.constant 0 : index
    %c0_132 = arith.constant 0 : index
    %100 = vector.load %arg4[%c0_128, %c2_129, %c1_130, %c0_131, %c0_132] : memref<1x3x3x8x4xbf16, #tpu.memory_space<vmem>>, vector<1x1x1x8x4xbf16>
    %101 = vector.shape_cast %100 : vector<1x1x1x8x4xbf16> to vector<8x4xbf16>
    %cst_133 = arith.constant dense<0.000000e+00> : vector<8x8xf32>
    %102 = tpu.matmul %101, %99, %cst_133 {dimension_numbers = #tpu.dot_dimension_numbers<[1], [0], [0], [1], [0, 0, 1, 1], [], []>} : vector<8x4xbf16>, vector<4x8xbf16>, vector<8x8xf32> -> vector<8x8xf32>
    %103 = arith.addf %98, %102 : vector<8x8xf32>
    %104 = vector.extract_strided_slice %93 {offsets = [0, 2], sizes = [4, 8], strides = [1, 1]} : vector<4x10xbf16> to vector<4x8xbf16>
    %c0_134 = arith.constant 0 : index
    %c2_135 = arith.constant 2 : index
    %c2_136 = arith.constant 2 : index
    %c0_137 = arith.constant 0 : index
    %c0_138 = arith.constant 0 : index
    %105 = vector.load %arg4[%c0_134, %c2_135, %c2_136, %c0_137, %c0_138] : memref<1x3x3x8x4xbf16, #tpu.memory_space<vmem>>, vector<1x1x1x8x4xbf16>
    %106 = vector.shape_cast %105 : vector<1x1x1x8x4xbf16> to vector<8x4xbf16>
    %cst_139 = arith.constant dense<0.000000e+00> : vector<8x8xf32>
    %107 = tpu.matmul %106, %104, %cst_139 {dimension_numbers = #tpu.dot_dimension_numbers<[1], [0], [0], [1], [0, 0, 1, 1], [], []>} : vector<8x4xbf16>, vector<4x8xbf16>, vector<8x8xf32> -> vector<8x8xf32>
    %108 = arith.addf %103, %107 : vector<8x8xf32>
    %c0_140 = arith.constant 0 : index
    %c1_141 = arith.constant 1 : index
    %c0_142 = arith.constant 0 : index
    %109 = vector.load %arg7[%c0_140, %c1_141, %c0_142] : memref<8x8x8xf32, #tpu.memory_space<vmem>>, vector<8x1x8xf32>
    %110 = vector.shape_cast %109 : vector<8x1x8xf32> to vector<8x8xf32>
    %111 = arith.addf %110, %108 : vector<8x8xf32>
    %c0_143 = arith.constant 0 : index
    %c1_144 = arith.constant 1 : index
    %c0_145 = arith.constant 0 : index
    %112 = vector.load %arg7[%c0_143, %c1_144, %c0_145] : memref<8x8x8xf32, #tpu.memory_space<vmem>>, vector<8x1x8xf32>
    %113 = vector.shape_cast %112 : vector<8x1x8xf32> to vector<8x8xf32>
    %114 = vector.shape_cast %111 : vector<8x8xf32> to vector<8x1x8xf32>
    tpu.vector_store %arg7[%c0_143, %c1_144, %c0_145], %114 {strides = array<i32>} : memref<8x8x8xf32, #tpu.memory_space<vmem>>, vector<8x1x8xf32>,
    %c0_146 = arith.constant 0 : index
    %c0_147 = arith.constant 0 : index
    %c2_148 = arith.constant 2 : index
    %c0_149 = arith.constant 0 : index
    %c0_150 = arith.constant 0 : index
    %115 = vector.load %arg3[%c0_146, %c0_147, %c2_148, %c0_149, %c0_150] : memref<1x1x10x4x10xbf16, #tpu.memory_space<vmem>>, vector<1x1x1x4x10xbf16>
    %116 = vector.shape_cast %115 : vector<1x1x1x4x10xbf16> to vector<4x10xbf16>
    %117 = vector.extract_strided_slice %116 {offsets = [0, 0], sizes = [4, 8], strides = [1, 1]} : vector<4x10xbf16> to vector<4x8xbf16>
    %c0_151 = arith.constant 0 : index
    %c0_152 = arith.constant 0 : index
    %c0_153 = arith.constant 0 : index
    %c0_154 = arith.constant 0 : index
    %c0_155 = arith.constant 0 : index
    %118 = vector.load %arg4[%c0_151, %c0_152, %c0_153, %c0_154, %c0_155] : memref<1x3x3x8x4xbf16, #tpu.memory_space<vmem>>, vector<1x1x1x8x4xbf16>
    %119 = vector.shape_cast %118 : vector<1x1x1x8x4xbf16> to vector<8x4xbf16>
    %cst_156 = arith.constant dense<0.000000e+00> : vector<8x8xf32>
    %120 = tpu.matmul %119, %117, %cst_156 {dimension_numbers = #tpu.dot_dimension_numbers<[1], [0], [0], [1], [0, 0, 1, 1], [], []>} : vector<8x4xbf16>, vector<4x8xbf16>, vector<8x8xf32> -> vector<8x8xf32>
    %121 = vector.extract_strided_slice %116 {offsets = [0, 1], sizes = [4, 8], strides = [1, 1]} : vector<4x10xbf16> to vector<4x8xbf16>
    %c0_157 = arith.constant 0 : index
    %c0_158 = arith.constant 0 : index
    %c1_159 = arith.constant 1 : index
    %c0_160 = arith.constant 0 : index
    %c0_161 = arith.constant 0 : index
    %122 = vector.load %arg4[%c0_157, %c0_158, %c1_159, %c0_160, %c0_161] : memref<1x3x3x8x4xbf16, #tpu.memory_space<vmem>>, vector<1x1x1x8x4xbf16>
    %123 = vector.shape_cast %122 : vector<1x1x1x8x4xbf16> to vector<8x4xbf16>
    %cst_162 = arith.constant dense<0.000000e+00> : vector<8x8xf32>
    %124 = tpu.matmul %123, %121, %cst_162 {dimension_numbers = #tpu.dot_dimension_numbers<[1], [0], [0], [1], [0, 0, 1, 1], [], []>} : vector<8x4xbf16>, vector<4x8xbf16>, vector<8x8xf32> -> vector<8x8xf32>
    %125 = arith.addf %120, %124 : vector<8x8xf32>
    %126 = vector.extract_strided_slice %116 {offsets = [0, 2], sizes = [4, 8], strides = [1, 1]} : vector<4x10xbf16> to vector<4x8xbf16>
    %c0_163 = arith.constant 0 : index
    %c0_164 = arith.constant 0 : index
    %c2_165 = arith.constant 2 : index
    %c0_166 = arith.constant 0 : index
    %c0_167 = arith.constant 0 : index
    %127 = vector.load %arg4[%c0_163, %c0_164, %c2_165, %c0_166, %c0_167] : memref<1x3x3x8x4xbf16, #tpu.memory_space<vmem>>, vector<1x1x1x8x4xbf16>
    %128 = vector.shape_cast %127 : vector<1x1x1x8x4xbf16> to vector<8x4xbf16>
    %cst_168 = arith.constant dense<0.000000e+00> : vector<8x8xf32>
    %129 = tpu.matmul %128, %126, %cst_168 {dimension_numbers = #tpu.dot_dimension_numbers<[1], [0], [0], [1], [0, 0, 1, 1], [], []>} : vector<8x4xbf16>, vector<4x8xbf16>, vector<8x8xf32> -> vector<8x8xf32>
    %130 = arith.addf %125, %129 : vector<8x8xf32>
    %c0_169 = arith.constant 0 : index
    %c0_170 = arith.constant 0 : index
    %c3_171 = arith.constant 3 : index
    %c0_172 = arith.constant 0 : index
    %c0_173 = arith.constant 0 : index
    %131 = vector.load %arg3[%c0_169, %c0_170, %c3_171, %c0_172, %c0_173] : memref<1x1x10x4x10xbf16, #tpu.memory_space<vmem>>, vector<1x1x1x4x10xbf16>
    %132 = vector.shape_cast %131 : vector<1x1x1x4x10xbf16> to vector<4x10xbf16>
    %133 = vector.extract_strided_slice %132 {offsets = [0, 0], sizes = [4, 8], strides = [1, 1]} : vector<4x10xbf16> to vector<4x8xbf16>
    %c0_174 = arith.constant 0 : index
    %c1_175 = arith.constant 1 : index
    %c0_176 = arith.constant 0 : index
    %c0_177 = arith.constant 0 : index
    %c0_178 = arith.constant 0 : index
    %134 = vector.load %arg4[%c0_174, %c1_175, %c0_176, %c0_177, %c0_178] : memref<1x3x3x8x4xbf16, #tpu.memory_space<vmem>>, vector<1x1x1x8x4xbf16>
    %135 = vector.shape_cast %134 : vector<1x1x1x8x4xbf16> to vector<8x4xbf16>
    %cst_179 = arith.constant dense<0.000000e+00> : vector<8x8xf32>
    %136 = tpu.matmul %135, %133, %cst_179 {dimension_numbers = #tpu.dot_dimension_numbers<[1], [0], [0], [1], [0, 0, 1, 1], [], []>} : vector<8x4xbf16>, vector<4x8xbf16>, vector<8x8xf32> -> vector<8x8xf32>
    %137 = arith.addf %130, %136 : vector<8x8xf32>
    %138 = vector.extract_strided_slice %132 {offsets = [0, 1], sizes = [4, 8], strides = [1, 1]} : vector<4x10xbf16> to vector<4x8xbf16>
    %c0_180 = arith.constant 0 : index
    %c1_181 = arith.constant 1 : index
    %c1_182 = arith.constant 1 : index
    %c0_183 = arith.constant 0 : index
    %c0_184 = arith.constant 0 : index
    %139 = vector.load %arg4[%c0_180, %c1_181, %c1_182, %c0_183, %c0_184] : memref<1x3x3x8x4xbf16, #tpu.memory_space<vmem>>, vector<1x1x1x8x4xbf16>
    %140 = vector.shape_cast %139 : vector<1x1x1x8x4xbf16> to vector<8x4xbf16>
    %cst_185 = arith.constant dense<0.000000e+00> : vector<8x8xf32>
    %141 = tpu.matmul %140, %138, %cst_185 {dimension_numbers = #tpu.dot_dimension_numbers<[1], [0], [0], [1], [0, 0, 1, 1], [], []>} : vector<8x4xbf16>, vector<4x8xbf16>, vector<8x8xf32> -> vector<8x8xf32>
    %142 = arith.addf %137, %141 : vector<8x8xf32>
    %143 = vector.extract_strided_slice %132 {offsets = [0, 2], sizes = [4, 8], strides = [1, 1]} : vector<4x10xbf16> to vector<4x8xbf16>
    %c0_186 = arith.constant 0 : index
    %c1_187 = arith.constant 1 : index
    %c2_188 = arith.constant 2 : index
    %c0_189 = arith.constant 0 : index
    %c0_190 = arith.constant 0 : index
    %144 = vector.load %arg4[%c0_186, %c1_187, %c2_188, %c0_189, %c0_190] : memref<1x3x3x8x4xbf16, #tpu.memory_space<vmem>>, vector<1x1x1x8x4xbf16>
    %145 = vector.shape_cast %144 : vector<1x1x1x8x4xbf16> to vector<8x4xbf16>
    %cst_191 = arith.constant dense<0.000000e+00> : vector<8x8xf32>
    %146 = tpu.matmul %145, %143, %cst_191 {dimension_numbers = #tpu.dot_dimension_numbers<[1], [0], [0], [1], [0, 0, 1, 1], [], []>} : vector<8x4xbf16>, vector<4x8xbf16>, vector<8x8xf32> -> vector<8x8xf32>
    %147 = arith.addf %142, %146 : vector<8x8xf32>
    %c0_192 = arith.constant 0 : index
    %c0_193 = arith.constant 0 : index
    %c4 = arith.constant 4 : index
    %c0_194 = arith.constant 0 : index
    %c0_195 = arith.constant 0 : index
    %148 = vector.load %arg3[%c0_192, %c0_193, %c4, %c0_194, %c0_195] : memref<1x1x10x4x10xbf16, #tpu.memory_space<vmem>>, vector<1x1x1x4x10xbf16>
    %149 = vector.shape_cast %148 : vector<1x1x1x4x10xbf16> to vector<4x10xbf16>
    %150 = vector.extract_strided_slice %149 {offsets = [0, 0], sizes = [4, 8], strides = [1, 1]} : vector<4x10xbf16> to vector<4x8xbf16>
    %c0_196 = arith.constant 0 : index
    %c2_197 = arith.constant 2 : index
    %c0_198 = arith.constant 0 : index
    %c0_199 = arith.constant 0 : index
    %c0_200 = arith.constant 0 : index
    %151 = vector.load %arg4[%c0_196, %c2_197, %c0_198, %c0_199, %c0_200] : memref<1x3x3x8x4xbf16, #tpu.memory_space<vmem>>, vector<1x1x1x8x4xbf16>
    %152 = vector.shape_cast %151 : vector<1x1x1x8x4xbf16> to vector<8x4xbf16>
    %cst_201 = arith.constant dense<0.000000e+00> : vector<8x8xf32>
    %153 = tpu.matmul %152, %150, %cst_201 {dimension_numbers = #tpu.dot_dimension_numbers<[1], [0], [0], [1], [0, 0, 1, 1], [], []>} : vector<8x4xbf16>, vector<4x8xbf16>, vector<8x8xf32> -> vector<8x8xf32>
    %154 = arith.addf %147, %153 : vector<8x8xf32>
    %155 = vector.extract_strided_slice %149 {offsets = [0, 1], sizes = [4, 8], strides = [1, 1]} : vector<4x10xbf16> to vector<4x8xbf16>
    %c0_202 = arith.constant 0 : index
    %c2_203 = arith.constant 2 : index
    %c1_204 = arith.constant 1 : index
    %c0_205 = arith.constant 0 : index
    %c0_206 = arith.constant 0 : index
    %156 = vector.load %arg4[%c0_202, %c2_203, %c1_204, %c0_205, %c0_206] : memref<1x3x3x8x4xbf16, #tpu.memory_space<vmem>>, vector<1x1x1x8x4xbf16>
    %157 = vector.shape_cast %156 : vector<1x1x1x8x4xbf16> to vector<8x4xbf16>
    %cst_207 = arith.constant dense<0.000000e+00> : vector<8x8xf32>
    %158 = tpu.matmul %157, %155, %cst_207 {dimension_numbers = #tpu.dot_dimension_numbers<[1], [0], [0], [1], [0, 0, 1, 1], [], []>} : vector<8x4xbf16>, vector<4x8xbf16>, vector<8x8xf32> -> vector<8x8xf32>
    %159 = arith.addf %154, %158 : vector<8x8xf32>
    %160 = vector.extract_strided_slice %149 {offsets = [0, 2], sizes = [4, 8], strides = [1, 1]} : vector<4x10xbf16> to vector<4x8xbf16>
    %c0_208 = arith.constant 0 : index
    %c2_209 = arith.constant 2 : index
    %c2_210 = arith.constant 2 : index
    %c0_211 = arith.constant 0 : index
    %c0_212 = arith.constant 0 : index
    %161 = vector.load %arg4[%c0_208, %c2_209, %c2_210, %c0_211, %c0_212] : memref<1x3x3x8x4xbf16, #tpu.memory_space<vmem>>, vector<1x1x1x8x4xbf16>
    %162 = vector.shape_cast %161 : vector<1x1x1x8x4xbf16> to vector<8x4xbf16>
    %cst_213 = arith.constant dense<0.000000e+00> : vector<8x8xf32>
    %163 = tpu.matmul %162, %160, %cst_213 {dimension_numbers = #tpu.dot_dimension_numbers<[1], [0], [0], [1], [0, 0, 1, 1], [], []>} : vector<8x4xbf16>, vector<4x8xbf16>, vector<8x8xf32> -> vector<8x8xf32>
    %164 = arith.addf %159, %163 : vector<8x8xf32>
    %c0_214 = arith.constant 0 : index
    %c2_215 = arith.constant 2 : index
    %c0_216 = arith.constant 0 : index
    %165 = vector.load %arg7[%c0_214, %c2_215, %c0_216] : memref<8x8x8xf32, #tpu.memory_space<vmem>>, vector<8x1x8xf32>
    %166 = vector.shape_cast %165 : vector<8x1x8xf32> to vector<8x8xf32>
    %167 = arith.addf %166, %164 : vector<8x8xf32>
    %c0_217 = arith.constant 0 : index
    %c2_218 = arith.constant 2 : index
    %c0_219 = arith.constant 0 : index
    %168 = vector.load %arg7[%c0_217, %c2_218, %c0_219] : memref<8x8x8xf32, #tpu.memory_space<vmem>>, vector<8x1x8xf32>
    %169 = vector.shape_cast %168 : vector<8x1x8xf32> to vector<8x8xf32>
    %170 = vector.shape_cast %167 : vector<8x8xf32> to vector<8x1x8xf32>
    tpu.vector_store %arg7[%c0_217, %c2_218, %c0_219], %170 {strides = array<i32>} : memref<8x8x8xf32, #tpu.memory_space<vmem>>, vector<8x1x8xf32>,
    %c0_220 = arith.constant 0 : index
    %c0_221 = arith.constant 0 : index
    %c3_222 = arith.constant 3 : index
    %c0_223 = arith.constant 0 : index
    %c0_224 = arith.constant 0 : index
    %171 = vector.load %arg3[%c0_220, %c0_221, %c3_222, %c0_223, %c0_224] : memref<1x1x10x4x10xbf16, #tpu.memory_space<vmem>>, vector<1x1x1x4x10xbf16>
    %172 = vector.shape_cast %171 : vector<1x1x1x4x10xbf16> to vector<4x10xbf16>
    %173 = vector.extract_strided_slice %172 {offsets = [0, 0], sizes = [4, 8], strides = [1, 1]} : vector<4x10xbf16> to vector<4x8xbf16>
    %c0_225 = arith.constant 0 : index
    %c0_226 = arith.constant 0 : index
    %c0_227 = arith.constant 0 : index
    %c0_228 = arith.constant 0 : index
    %c0_229 = arith.constant 0 : index
    %174 = vector.load %arg4[%c0_225, %c0_226, %c0_227, %c0_228, %c0_229] : memref<1x3x3x8x4xbf16, #tpu.memory_space<vmem>>, vector<1x1x1x8x4xbf16>
    %175 = vector.shape_cast %174 : vector<1x1x1x8x4xbf16> to vector<8x4xbf16>
    %cst_230 = arith.constant dense<0.000000e+00> : vector<8x8xf32>
    %176 = tpu.matmul %175, %173, %cst_230 {dimension_numbers = #tpu.dot_dimension_numbers<[1], [0], [0], [1], [0, 0, 1, 1], [], []>} : vector<8x4xbf16>, vector<4x8xbf16>, vector<8x8xf32> -> vector<8x8xf32>
    %177 = vector.extract_strided_slice %172 {offsets = [0, 1], sizes = [4, 8], strides = [1, 1]} : vector<4x10xbf16> to vector<4x8xbf16>
    %c0_231 = arith.constant 0 : index
    %c0_232 = arith.constant 0 : index
    %c1_233 = arith.constant 1 : index
    %c0_234 = arith.constant 0 : index
    %c0_235 = arith.constant 0 : index
    %178 = vector.load %arg4[%c0_231, %c0_232, %c1_233, %c0_234, %c0_235] : memref<1x3x3x8x4xbf16, #tpu.memory_space<vmem>>, vector<1x1x1x8x4xbf16>
    %179 = vector.shape_cast %178 : vector<1x1x1x8x4xbf16> to vector<8x4xbf16>
    %cst_236 = arith.constant dense<0.000000e+00> : vector<8x8xf32>
    %180 = tpu.matmul %179, %177, %cst_236 {dimension_numbers = #tpu.dot_dimension_numbers<[1], [0], [0], [1], [0, 0, 1, 1], [], []>} : vector<8x4xbf16>, vector<4x8xbf16>, vector<8x8xf32> -> vector<8x8xf32>
    %181 = arith.addf %176, %180 : vector<8x8xf32>
    %182 = vector.extract_strided_slice %172 {offsets = [0, 2], sizes = [4, 8], strides = [1, 1]} : vector<4x10xbf16> to vector<4x8xbf16>
    %c0_237 = arith.constant 0 : index
    %c0_238 = arith.constant 0 : index
    %c2_239 = arith.constant 2 : index
    %c0_240 = arith.constant 0 : index
    %c0_241 = arith.constant 0 : index
    %183 = vector.load %arg4[%c0_237, %c0_238, %c2_239, %c0_240, %c0_241] : memref<1x3x3x8x4xbf16, #tpu.memory_space<vmem>>, vector<1x1x1x8x4xbf16>
    %184 = vector.shape_cast %183 : vector<1x1x1x8x4xbf16> to vector<8x4xbf16>
    %cst_242 = arith.constant dense<0.000000e+00> : vector<8x8xf32>
    %185 = tpu.matmul %184, %182, %cst_242 {dimension_numbers = #tpu.dot_dimension_numbers<[1], [0], [0], [1], [0, 0, 1, 1], [], []>} : vector<8x4xbf16>, vector<4x8xbf16>, vector<8x8xf32> -> vector<8x8xf32>
    %186 = arith.addf %181, %185 : vector<8x8xf32>
    %c0_243 = arith.constant 0 : index
    %c0_244 = arith.constant 0 : index
    %c4_245 = arith.constant 4 : index
    %c0_246 = arith.constant 0 : index
    %c0_247 = arith.constant 0 : index
    %187 = vector.load %arg3[%c0_243, %c0_244, %c4_245, %c0_246, %c0_247] : memref<1x1x10x4x10xbf16, #tpu.memory_space<vmem>>, vector<1x1x1x4x10xbf16>
    %188 = vector.shape_cast %187 : vector<1x1x1x4x10xbf16> to vector<4x10xbf16>
    %189 = vector.extract_strided_slice %188 {offsets = [0, 0], sizes = [4, 8], strides = [1, 1]} : vector<4x10xbf16> to vector<4x8xbf16>
    %c0_248 = arith.constant 0 : index
    %c1_249 = arith.constant 1 : index
    %c0_250 = arith.constant 0 : index
    %c0_251 = arith.constant 0 : index
    %c0_252 = arith.constant 0 : index
    %190 = vector.load %arg4[%c0_248, %c1_249, %c0_250, %c0_251, %c0_252] : memref<1x3x3x8x4xbf16, #tpu.memory_space<vmem>>, vector<1x1x1x8x4xbf16>
    %191 = vector.shape_cast %190 : vector<1x1x1x8x4xbf16> to vector<8x4xbf16>
    %cst_253 = arith.constant dense<0.000000e+00> : vector<8x8xf32>
    %192 = tpu.matmul %191, %189, %cst_253 {dimension_numbers = #tpu.dot_dimension_numbers<[1], [0], [0], [1], [0, 0, 1, 1], [], []>} : vector<8x4xbf16>, vector<4x8xbf16>, vector<8x8xf32> -> vector<8x8xf32>
    %193 = arith.addf %186, %192 : vector<8x8xf32>
    %194 = vector.extract_strided_slice %188 {offsets = [0, 1], sizes = [4, 8], strides = [1, 1]} : vector<4x10xbf16> to vector<4x8xbf16>
    %c0_254 = arith.constant 0 : index
    %c1_255 = arith.constant 1 : index
    %c1_256 = arith.constant 1 : index
    %c0_257 = arith.constant 0 : index
    %c0_258 = arith.constant 0 : index
    %195 = vector.load %arg4[%c0_254, %c1_255, %c1_256, %c0_257, %c0_258] : memref<1x3x3x8x4xbf16, #tpu.memory_space<vmem>>, vector<1x1x1x8x4xbf16>
    %196 = vector.shape_cast %195 : vector<1x1x1x8x4xbf16> to vector<8x4xbf16>
    %cst_259 = arith.constant dense<0.000000e+00> : vector<8x8xf32>
    %197 = tpu.matmul %196, %194, %cst_259 {dimension_numbers = #tpu.dot_dimension_numbers<[1], [0], [0], [1], [0, 0, 1, 1], [], []>} : vector<8x4xbf16>, vector<4x8xbf16>, vector<8x8xf32> -> vector<8x8xf32>
    %198 = arith.addf %193, %197 : vector<8x8xf32>
    %199 = vector.extract_strided_slice %188 {offsets = [0, 2], sizes = [4, 8], strides = [1, 1]} : vector<4x10xbf16> to vector<4x8xbf16>
    %c0_260 = arith.constant 0 : index
    %c1_261 = arith.constant 1 : index
    %c2_262 = arith.constant 2 : index
    %c0_263 = arith.constant 0 : index
    %c0_264 = arith.constant 0 : index
    %200 = vector.load %arg4[%c0_260, %c1_261, %c2_262, %c0_263, %c0_264] : memref<1x3x3x8x4xbf16, #tpu.memory_space<vmem>>, vector<1x1x1x8x4xbf16>
    %201 = vector.shape_cast %200 : vector<1x1x1x8x4xbf16> to vector<8x4xbf16>
    %cst_265 = arith.constant dense<0.000000e+00> : vector<8x8xf32>
    %202 = tpu.matmul %201, %199, %cst_265 {dimension_numbers = #tpu.dot_dimension_numbers<[1], [0], [0], [1], [0, 0, 1, 1], [], []>} : vector<8x4xbf16>, vector<4x8xbf16>, vector<8x8xf32> -> vector<8x8xf32>
    %203 = arith.addf %198, %202 : vector<8x8xf32>
    %c0_266 = arith.constant 0 : index
    %c0_267 = arith.constant 0 : index
    %c5 = arith.constant 5 : index
    %c0_268 = arith.constant 0 : index
    %c0_269 = arith.constant 0 : index
    %204 = vector.load %arg3[%c0_266, %c0_267, %c5, %c0_268, %c0_269] : memref<1x1x10x4x10xbf16, #tpu.memory_space<vmem>>, vector<1x1x1x4x10xbf16>
    %205 = vector.shape_cast %204 : vector<1x1x1x4x10xbf16> to vector<4x10xbf16>
    %206 = vector.extract_strided_slice %205 {offsets = [0, 0], sizes = [4, 8], strides = [1, 1]} : vector<4x10xbf16> to vector<4x8xbf16>
    %c0_270 = arith.constant 0 : index
    %c2_271 = arith.constant 2 : index
    %c0_272 = arith.constant 0 : index
    %c0_273 = arith.constant 0 : index
    %c0_274 = arith.constant 0 : index
    %207 = vector.load %arg4[%c0_270, %c2_271, %c0_272, %c0_273, %c0_274] : memref<1x3x3x8x4xbf16, #tpu.memory_space<vmem>>, vector<1x1x1x8x4xbf16>
    %208 = vector.shape_cast %207 : vector<1x1x1x8x4xbf16> to vector<8x4xbf16>
    %cst_275 = arith.constant dense<0.000000e+00> : vector<8x8xf32>
    %209 = tpu.matmul %208, %206, %cst_275 {dimension_numbers = #tpu.dot_dimension_numbers<[1], [0], [0], [1], [0, 0, 1, 1], [], []>} : vector<8x4xbf16>, vector<4x8xbf16>, vector<8x8xf32> -> vector<8x8xf32>
    %210 = arith.addf %203, %209 : vector<8x8xf32>
    %211 = vector.extract_strided_slice %205 {offsets = [0, 1], sizes = [4, 8], strides = [1, 1]} : vector<4x10xbf16> to vector<4x8xbf16>
    %c0_276 = arith.constant 0 : index
    %c2_277 = arith.constant 2 : index
    %c1_278 = arith.constant 1 : index
    %c0_279 = arith.constant 0 : index
    %c0_280 = arith.constant 0 : index
    %212 = vector.load %arg4[%c0_276, %c2_277, %c1_278, %c0_279, %c0_280] : memref<1x3x3x8x4xbf16, #tpu.memory_space<vmem>>, vector<1x1x1x8x4xbf16>
    %213 = vector.shape_cast %212 : vector<1x1x1x8x4xbf16> to vector<8x4xbf16>
    %cst_281 = arith.constant dense<0.000000e+00> : vector<8x8xf32>
    %214 = tpu.matmul %213, %211, %cst_281 {dimension_numbers = #tpu.dot_dimension_numbers<[1], [0], [0], [1], [0, 0, 1, 1], [], []>} : vector<8x4xbf16>, vector<4x8xbf16>, vector<8x8xf32> -> vector<8x8xf32>
    %215 = arith.addf %210, %214 : vector<8x8xf32>
    %216 = vector.extract_strided_slice %205 {offsets = [0, 2], sizes = [4, 8], strides = [1, 1]} : vector<4x10xbf16> to vector<4x8xbf16>
    %c0_282 = arith.constant 0 : index
    %c2_283 = arith.constant 2 : index
    %c2_284 = arith.constant 2 : index
    %c0_285 = arith.constant 0 : index
    %c0_286 = arith.constant 0 : index
    %217 = vector.load %arg4[%c0_282, %c2_283, %c2_284, %c0_285, %c0_286] : memref<1x3x3x8x4xbf16, #tpu.memory_space<vmem>>, vector<1x1x1x8x4xbf16>
    %218 = vector.shape_cast %217 : vector<1x1x1x8x4xbf16> to vector<8x4xbf16>
    %cst_287 = arith.constant dense<0.000000e+00> : vector<8x8xf32>
    %219 = tpu.matmul %218, %216, %cst_287 {dimension_numbers = #tpu.dot_dimension_numbers<[1], [0], [0], [1], [0, 0, 1, 1], [], []>} : vector<8x4xbf16>, vector<4x8xbf16>, vector<8x8xf32> -> vector<8x8xf32>
    %220 = arith.addf %215, %219 : vector<8x8xf32>
    %c0_288 = arith.constant 0 : index
    %c3_289 = arith.constant 3 : index
    %c0_290 = arith.constant 0 : index
    %221 = vector.load %arg7[%c0_288, %c3_289, %c0_290] : memref<8x8x8xf32, #tpu.memory_space<vmem>>, vector<8x1x8xf32>
    %222 = vector.shape_cast %221 : vector<8x1x8xf32> to vector<8x8xf32>
    %223 = arith.addf %222, %220 : vector<8x8xf32>
    %c0_291 = arith.constant 0 : index
    %c3_292 = arith.constant 3 : index
    %c0_293 = arith.constant 0 : index
    %224 = vector.load %arg7[%c0_291, %c3_292, %c0_293] : memref<8x8x8xf32, #tpu.memory_space<vmem>>, vector<8x1x8xf32>
    %225 = vector.shape_cast %224 : vector<8x1x8xf32> to vector<8x8xf32>
    %226 = vector.shape_cast %223 : vector<8x8xf32> to vector<8x1x8xf32>
    tpu.vector_store %arg7[%c0_291, %c3_292, %c0_293], %226 {strides = array<i32>} : memref<8x8x8xf32, #tpu.memory_space<vmem>>, vector<8x1x8xf32>,
    %c0_294 = arith.constant 0 : index
    %c0_295 = arith.constant 0 : index
    %c4_296 = arith.constant 4 : index
    %c0_297 = arith.constant 0 : index
    %c0_298 = arith.constant 0 : index
    %227 = vector.load %arg3[%c0_294, %c0_295, %c4_296, %c0_297, %c0_298] : memref<1x1x10x4x10xbf16, #tpu.memory_space<vmem>>, vector<1x1x1x4x10xbf16>
    %228 = vector.shape_cast %227 : vector<1x1x1x4x10xbf16> to vector<4x10xbf16>
    %229 = vector.extract_strided_slice %228 {offsets = [0, 0], sizes = [4, 8], strides = [1, 1]} : vector<4x10xbf16> to vector<4x8xbf16>
    %c0_299 = arith.constant 0 : index
    %c0_300 = arith.constant 0 : index
    %c0_301 = arith.constant 0 : index
    %c0_302 = arith.constant 0 : index
    %c0_303 = arith.constant 0 : index
    %230 = vector.load %arg4[%c0_299, %c0_300, %c0_301, %c0_302, %c0_303] : memref<1x3x3x8x4xbf16, #tpu.memory_space<vmem>>, vector<1x1x1x8x4xbf16>
    %231 = vector.shape_cast %230 : vector<1x1x1x8x4xbf16> to vector<8x4xbf16>
    %cst_304 = arith.constant dense<0.000000e+00> : vector<8x8xf32>
    %232 = tpu.matmul %231, %229, %cst_304 {dimension_numbers = #tpu.dot_dimension_numbers<[1], [0], [0], [1], [0, 0, 1, 1], [], []>} : vector<8x4xbf16>, vector<4x8xbf16>, vector<8x8xf32> -> vector<8x8xf32>
    %233 = vector.extract_strided_slice %228 {offsets = [0, 1], sizes = [4, 8], strides = [1, 1]} : vector<4x10xbf16> to vector<4x8xbf16>
    %c0_305 = arith.constant 0 : index
    %c0_306 = arith.constant 0 : index
    %c1_307 = arith.constant 1 : index
    %c0_308 = arith.constant 0 : index
    %c0_309 = arith.constant 0 : index
    %234 = vector.load %arg4[%c0_305, %c0_306, %c1_307, %c0_308, %c0_309] : memref<1x3x3x8x4xbf16, #tpu.memory_space<vmem>>, vector<1x1x1x8x4xbf16>
    %235 = vector.shape_cast %234 : vector<1x1x1x8x4xbf16> to vector<8x4xbf16>
    %cst_310 = arith.constant dense<0.000000e+00> : vector<8x8xf32>
    %236 = tpu.matmul %235, %233, %cst_310 {dimension_numbers = #tpu.dot_dimension_numbers<[1], [0], [0], [1], [0, 0, 1, 1], [], []>} : vector<8x4xbf16>, vector<4x8xbf16>, vector<8x8xf32> -> vector<8x8xf32>
    %237 = arith.addf %232, %236 : vector<8x8xf32>
    %238 = vector.extract_strided_slice %228 {offsets = [0, 2], sizes = [4, 8], strides = [1, 1]} : vector<4x10xbf16> to vector<4x8xbf16>
    %c0_311 = arith.constant 0 : index
    %c0_312 = arith.constant 0 : index
    %c2_313 = arith.constant 2 : index
    %c0_314 = arith.constant 0 : index
    %c0_315 = arith.constant 0 : index
    %239 = vector.load %arg4[%c0_311, %c0_312, %c2_313, %c0_314, %c0_315] : memref<1x3x3x8x4xbf16, #tpu.memory_space<vmem>>, vector<1x1x1x8x4xbf16>
    %240 = vector.shape_cast %239 : vector<1x1x1x8x4xbf16> to vector<8x4xbf16>
    %cst_316 = arith.constant dense<0.000000e+00> : vector<8x8xf32>
    %241 = tpu.matmul %240, %238, %cst_316 {dimension_numbers = #tpu.dot_dimension_numbers<[1], [0], [0], [1], [0, 0, 1, 1], [], []>} : vector<8x4xbf16>, vector<4x8xbf16>, vector<8x8xf32> -> vector<8x8xf32>
    %242 = arith.addf %237, %241 : vector<8x8xf32>
    %c0_317 = arith.constant 0 : index
    %c0_318 = arith.constant 0 : index
    %c5_319 = arith.constant 5 : index
    %c0_320 = arith.constant 0 : index
    %c0_321 = arith.constant 0 : index
    %243 = vector.load %arg3[%c0_317, %c0_318, %c5_319, %c0_320, %c0_321] : memref<1x1x10x4x10xbf16, #tpu.memory_space<vmem>>, vector<1x1x1x4x10xbf16>
    %244 = vector.shape_cast %243 : vector<1x1x1x4x10xbf16> to vector<4x10xbf16>
    %245 = vector.extract_strided_slice %244 {offsets = [0, 0], sizes = [4, 8], strides = [1, 1]} : vector<4x10xbf16> to vector<4x8xbf16>
    %c0_322 = arith.constant 0 : index
    %c1_323 = arith.constant 1 : index
    %c0_324 = arith.constant 0 : index
    %c0_325 = arith.constant 0 : index
    %c0_326 = arith.constant 0 : index
    %246 = vector.load %arg4[%c0_322, %c1_323, %c0_324, %c0_325, %c0_326] : memref<1x3x3x8x4xbf16, #tpu.memory_space<vmem>>, vector<1x1x1x8x4xbf16>
    %247 = vector.shape_cast %246 : vector<1x1x1x8x4xbf16> to vector<8x4xbf16>
    %cst_327 = arith.constant dense<0.000000e+00> : vector<8x8xf32>
    %248 = tpu.matmul %247, %245, %cst_327 {dimension_numbers = #tpu.dot_dimension_numbers<[1], [0], [0], [1], [0, 0, 1, 1], [], []>} : vector<8x4xbf16>, vector<4x8xbf16>, vector<8x8xf32> -> vector<8x8xf32>
    %249 = arith.addf %242, %248 : vector<8x8xf32>
    %250 = vector.extract_strided_slice %244 {offsets = [0, 1], sizes = [4, 8], strides = [1, 1]} : vector<4x10xbf16> to vector<4x8xbf16>
    %c0_328 = arith.constant 0 : index
    %c1_329 = arith.constant 1 : index
    %c1_330 = arith.constant 1 : index
    %c0_331 = arith.constant 0 : index
    %c0_332 = arith.constant 0 : index
    %251 = vector.load %arg4[%c0_328, %c1_329, %c1_330, %c0_331, %c0_332] : memref<1x3x3x8x4xbf16, #tpu.memory_space<vmem>>, vector<1x1x1x8x4xbf16>
    %252 = vector.shape_cast %251 : vector<1x1x1x8x4xbf16> to vector<8x4xbf16>
    %cst_333 = arith.constant dense<0.000000e+00> : vector<8x8xf32>
    %253 = tpu.matmul %252, %250, %cst_333 {dimension_numbers = #tpu.dot_dimension_numbers<[1], [0], [0], [1], [0, 0, 1, 1], [], []>} : vector<8x4xbf16>, vector<4x8xbf16>, vector<8x8xf32> -> vector<8x8xf32>
    %254 = arith.addf %249, %253 : vector<8x8xf32>
    %255 = vector.extract_strided_slice %244 {offsets = [0, 2], sizes = [4, 8], strides = [1, 1]} : vector<4x10xbf16> to vector<4x8xbf16>
    %c0_334 = arith.constant 0 : index
    %c1_335 = arith.constant 1 : index
    %c2_336 = arith.constant 2 : index
    %c0_337 = arith.constant 0 : index
    %c0_338 = arith.constant 0 : index
    %256 = vector.load %arg4[%c0_334, %c1_335, %c2_336, %c0_337, %c0_338] : memref<1x3x3x8x4xbf16, #tpu.memory_space<vmem>>, vector<1x1x1x8x4xbf16>
    %257 = vector.shape_cast %256 : vector<1x1x1x8x4xbf16> to vector<8x4xbf16>
    %cst_339 = arith.constant dense<0.000000e+00> : vector<8x8xf32>
    %258 = tpu.matmul %257, %255, %cst_339 {dimension_numbers = #tpu.dot_dimension_numbers<[1], [0], [0], [1], [0, 0, 1, 1], [], []>} : vector<8x4xbf16>, vector<4x8xbf16>, vector<8x8xf32> -> vector<8x8xf32>
    %259 = arith.addf %254, %258 : vector<8x8xf32>
    %c0_340 = arith.constant 0 : index
    %c0_341 = arith.constant 0 : index
    %c6 = arith.constant 6 : index
    %c0_342 = arith.constant 0 : index
    %c0_343 = arith.constant 0 : index
    %260 = vector.load %arg3[%c0_340, %c0_341, %c6, %c0_342, %c0_343] : memref<1x1x10x4x10xbf16, #tpu.memory_space<vmem>>, vector<1x1x1x4x10xbf16>
    %261 = vector.shape_cast %260 : vector<1x1x1x4x10xbf16> to vector<4x10xbf16>
    %262 = vector.extract_strided_slice %261 {offsets = [0, 0], sizes = [4, 8], strides = [1, 1]} : vector<4x10xbf16> to vector<4x8xbf16>
    %c0_344 = arith.constant 0 : index
    %c2_345 = arith.constant 2 : index
    %c0_346 = arith.constant 0 : index
    %c0_347 = arith.constant 0 : index
    %c0_348 = arith.constant 0 : index
    %263 = vector.load %arg4[%c0_344, %c2_345, %c0_346, %c0_347, %c0_348] : memref<1x3x3x8x4xbf16, #tpu.memory_space<vmem>>, vector<1x1x1x8x4xbf16>
    %264 = vector.shape_cast %263 : vector<1x1x1x8x4xbf16> to vector<8x4xbf16>
    %cst_349 = arith.constant dense<0.000000e+00> : vector<8x8xf32>
    %265 = tpu.matmul %264, %262, %cst_349 {dimension_numbers = #tpu.dot_dimension_numbers<[1], [0], [0], [1], [0, 0, 1, 1], [], []>} : vector<8x4xbf16>, vector<4x8xbf16>, vector<8x8xf32> -> vector<8x8xf32>
    %266 = arith.addf %259, %265 : vector<8x8xf32>
    %267 = vector.extract_strided_slice %261 {offsets = [0, 1], sizes = [4, 8], strides = [1, 1]} : vector<4x10xbf16> to vector<4x8xbf16>
    %c0_350 = arith.constant 0 : index
    %c2_351 = arith.constant 2 : index
    %c1_352 = arith.constant 1 : index
    %c0_353 = arith.constant 0 : index
    %c0_354 = arith.constant 0 : index
    %268 = vector.load %arg4[%c0_350, %c2_351, %c1_352, %c0_353, %c0_354] : memref<1x3x3x8x4xbf16, #tpu.memory_space<vmem>>, vector<1x1x1x8x4xbf16>
    %269 = vector.shape_cast %268 : vector<1x1x1x8x4xbf16> to vector<8x4xbf16>
    %cst_355 = arith.constant dense<0.000000e+00> : vector<8x8xf32>
    %270 = tpu.matmul %269, %267, %cst_355 {dimension_numbers = #tpu.dot_dimension_numbers<[1], [0], [0], [1], [0, 0, 1, 1], [], []>} : vector<8x4xbf16>, vector<4x8xbf16>, vector<8x8xf32> -> vector<8x8xf32>
    %271 = arith.addf %266, %270 : vector<8x8xf32>
    %272 = vector.extract_strided_slice %261 {offsets = [0, 2], sizes = [4, 8], strides = [1, 1]} : vector<4x10xbf16> to vector<4x8xbf16>
    %c0_356 = arith.constant 0 : index
    %c2_357 = arith.constant 2 : index
    %c2_358 = arith.constant 2 : index
    %c0_359 = arith.constant 0 : index
    %c0_360 = arith.constant 0 : index
    %273 = vector.load %arg4[%c0_356, %c2_357, %c2_358, %c0_359, %c0_360] : memref<1x3x3x8x4xbf16, #tpu.memory_space<vmem>>, vector<1x1x1x8x4xbf16>
    %274 = vector.shape_cast %273 : vector<1x1x1x8x4xbf16> to vector<8x4xbf16>
    %cst_361 = arith.constant dense<0.000000e+00> : vector<8x8xf32>
    %275 = tpu.matmul %274, %272, %cst_361 {dimension_numbers = #tpu.dot_dimension_numbers<[1], [0], [0], [1], [0, 0, 1, 1], [], []>} : vector<8x4xbf16>, vector<4x8xbf16>, vector<8x8xf32> -> vector<8x8xf32>
    %276 = arith.addf %271, %275 : vector<8x8xf32>
    %c0_362 = arith.constant 0 : index
    %c4_363 = arith.constant 4 : index
    %c0_364 = arith.constant 0 : index
    %277 = vector.load %arg7[%c0_362, %c4_363, %c0_364] : memref<8x8x8xf32, #tpu.memory_space<vmem>>, vector<8x1x8xf32>
    %278 = vector.shape_cast %277 : vector<8x1x8xf32> to vector<8x8xf32>
    %279 = arith.addf %278, %276 : vector<8x8xf32>
    %c0_365 = arith.constant 0 : index
    %c4_366 = arith.constant 4 : index
    %c0_367 = arith.constant 0 : index
    %280 = vector.load %arg7[%c0_365, %c4_366, %c0_367] : memref<8x8x8xf32, #tpu.memory_space<vmem>>, vector<8x1x8xf32>
    %281 = vector.shape_cast %280 : vector<8x1x8xf32> to vector<8x8xf32>
    %282 = vector.shape_cast %279 : vector<8x8xf32> to vector<8x1x8xf32>
    tpu.vector_store %arg7[%c0_365, %c4_366, %c0_367], %282 {strides = array<i32>} : memref<8x8x8xf32, #tpu.memory_space<vmem>>, vector<8x1x8xf32>,
    %c0_368 = arith.constant 0 : index
    %c0_369 = arith.constant 0 : index
    %c5_370 = arith.constant 5 : index
    %c0_371 = arith.constant 0 : index
    %c0_372 = arith.constant 0 : index
    %283 = vector.load %arg3[%c0_368, %c0_369, %c5_370, %c0_371, %c0_372] : memref<1x1x10x4x10xbf16, #tpu.memory_space<vmem>>, vector<1x1x1x4x10xbf16>
    %284 = vector.shape_cast %283 : vector<1x1x1x4x10xbf16> to vector<4x10xbf16>
    %285 = vector.extract_strided_slice %284 {offsets = [0, 0], sizes = [4, 8], strides = [1, 1]} : vector<4x10xbf16> to vector<4x8xbf16>
    %c0_373 = arith.constant 0 : index
    %c0_374 = arith.constant 0 : index
    %c0_375 = arith.constant 0 : index
    %c0_376 = arith.constant 0 : index
    %c0_377 = arith.constant 0 : index
    %286 = vector.load %arg4[%c0_373, %c0_374, %c0_375, %c0_376, %c0_377] : memref<1x3x3x8x4xbf16, #tpu.memory_space<vmem>>, vector<1x1x1x8x4xbf16>
    %287 = vector.shape_cast %286 : vector<1x1x1x8x4xbf16> to vector<8x4xbf16>
    %cst_378 = arith.constant dense<0.000000e+00> : vector<8x8xf32>
    %288 = tpu.matmul %287, %285, %cst_378 {dimension_numbers = #tpu.dot_dimension_numbers<[1], [0], [0], [1], [0, 0, 1, 1], [], []>} : vector<8x4xbf16>, vector<4x8xbf16>, vector<8x8xf32> -> vector<8x8xf32>
    %289 = vector.extract_strided_slice %284 {offsets = [0, 1], sizes = [4, 8], strides = [1, 1]} : vector<4x10xbf16> to vector<4x8xbf16>
    %c0_379 = arith.constant 0 : index
    %c0_380 = arith.constant 0 : index
    %c1_381 = arith.constant 1 : index
    %c0_382 = arith.constant 0 : index
    %c0_383 = arith.constant 0 : index
    %290 = vector.load %arg4[%c0_379, %c0_380, %c1_381, %c0_382, %c0_383] : memref<1x3x3x8x4xbf16, #tpu.memory_space<vmem>>, vector<1x1x1x8x4xbf16>
    %291 = vector.shape_cast %290 : vector<1x1x1x8x4xbf16> to vector<8x4xbf16>
    %cst_384 = arith.constant dense<0.000000e+00> : vector<8x8xf32>
    %292 = tpu.matmul %291, %289, %cst_384 {dimension_numbers = #tpu.dot_dimension_numbers<[1], [0], [0], [1], [0, 0, 1, 1], [], []>} : vector<8x4xbf16>, vector<4x8xbf16>, vector<8x8xf32> -> vector<8x8xf32>
    %293 = arith.addf %288, %292 : vector<8x8xf32>
    %294 = vector.extract_strided_slice %284 {offsets = [0, 2], sizes = [4, 8], strides = [1, 1]} : vector<4x10xbf16> to vector<4x8xbf16>
    %c0_385 = arith.constant 0 : index
    %c0_386 = arith.constant 0 : index
    %c2_387 = arith.constant 2 : index
    %c0_388 = arith.constant 0 : index
    %c0_389 = arith.constant 0 : index
    %295 = vector.load %arg4[%c0_385, %c0_386, %c2_387, %c0_388, %c0_389] : memref<1x3x3x8x4xbf16, #tpu.memory_space<vmem>>, vector<1x1x1x8x4xbf16>
    %296 = vector.shape_cast %295 : vector<1x1x1x8x4xbf16> to vector<8x4xbf16>
    %cst_390 = arith.constant dense<0.000000e+00> : vector<8x8xf32>
    %297 = tpu.matmul %296, %294, %cst_390 {dimension_numbers = #tpu.dot_dimension_numbers<[1], [0], [0], [1], [0, 0, 1, 1], [], []>} : vector<8x4xbf16>, vector<4x8xbf16>, vector<8x8xf32> -> vector<8x8xf32>
    %298 = arith.addf %293, %297 : vector<8x8xf32>
    %c0_391 = arith.constant 0 : index
    %c0_392 = arith.constant 0 : index
    %c6_393 = arith.constant 6 : index
    %c0_394 = arith.constant 0 : index
    %c0_395 = arith.constant 0 : index
    %299 = vector.load %arg3[%c0_391, %c0_392, %c6_393, %c0_394, %c0_395] : memref<1x1x10x4x10xbf16, #tpu.memory_space<vmem>>, vector<1x1x1x4x10xbf16>
    %300 = vector.shape_cast %299 : vector<1x1x1x4x10xbf16> to vector<4x10xbf16>
    %301 = vector.extract_strided_slice %300 {offsets = [0, 0], sizes = [4, 8], strides = [1, 1]} : vector<4x10xbf16> to vector<4x8xbf16>
    %c0_396 = arith.constant 0 : index
    %c1_397 = arith.constant 1 : index
    %c0_398 = arith.constant 0 : index
    %c0_399 = arith.constant 0 : index
    %c0_400 = arith.constant 0 : index
    %302 = vector.load %arg4[%c0_396, %c1_397, %c0_398, %c0_399, %c0_400] : memref<1x3x3x8x4xbf16, #tpu.memory_space<vmem>>, vector<1x1x1x8x4xbf16>
    %303 = vector.shape_cast %302 : vector<1x1x1x8x4xbf16> to vector<8x4xbf16>
    %cst_401 = arith.constant dense<0.000000e+00> : vector<8x8xf32>
    %304 = tpu.matmul %303, %301, %cst_401 {dimension_numbers = #tpu.dot_dimension_numbers<[1], [0], [0], [1], [0, 0, 1, 1], [], []>} : vector<8x4xbf16>, vector<4x8xbf16>, vector<8x8xf32> -> vector<8x8xf32>
    %305 = arith.addf %298, %304 : vector<8x8xf32>
    %306 = vector.extract_strided_slice %300 {offsets = [0, 1], sizes = [4, 8], strides = [1, 1]} : vector<4x10xbf16> to vector<4x8xbf16>
    %c0_402 = arith.constant 0 : index
    %c1_403 = arith.constant 1 : index
    %c1_404 = arith.constant 1 : index
    %c0_405 = arith.constant 0 : index
    %c0_406 = arith.constant 0 : index
    %307 = vector.load %arg4[%c0_402, %c1_403, %c1_404, %c0_405, %c0_406] : memref<1x3x3x8x4xbf16, #tpu.memory_space<vmem>>, vector<1x1x1x8x4xbf16>
    %308 = vector.shape_cast %307 : vector<1x1x1x8x4xbf16> to vector<8x4xbf16>
    %cst_407 = arith.constant dense<0.000000e+00> : vector<8x8xf32>
    %309 = tpu.matmul %308, %306, %cst_407 {dimension_numbers = #tpu.dot_dimension_numbers<[1], [0], [0], [1], [0, 0, 1, 1], [], []>} : vector<8x4xbf16>, vector<4x8xbf16>, vector<8x8xf32> -> vector<8x8xf32>
    %310 = arith.addf %305, %309 : vector<8x8xf32>
    %311 = vector.extract_strided_slice %300 {offsets = [0, 2], sizes = [4, 8], strides = [1, 1]} : vector<4x10xbf16> to vector<4x8xbf16>
    %c0_408 = arith.constant 0 : index
    %c1_409 = arith.constant 1 : index
    %c2_410 = arith.constant 2 : index
    %c0_411 = arith.constant 0 : index
    %c0_412 = arith.constant 0 : index
    %312 = vector.load %arg4[%c0_408, %c1_409, %c2_410, %c0_411, %c0_412] : memref<1x3x3x8x4xbf16, #tpu.memory_space<vmem>>, vector<1x1x1x8x4xbf16>
    %313 = vector.shape_cast %312 : vector<1x1x1x8x4xbf16> to vector<8x4xbf16>
    %cst_413 = arith.constant dense<0.000000e+00> : vector<8x8xf32>
    %314 = tpu.matmul %313, %311, %cst_413 {dimension_numbers = #tpu.dot_dimension_numbers<[1], [0], [0], [1], [0, 0, 1, 1], [], []>} : vector<8x4xbf16>, vector<4x8xbf16>, vector<8x8xf32> -> vector<8x8xf32>
    %315 = arith.addf %310, %314 : vector<8x8xf32>
    %c0_414 = arith.constant 0 : index
    %c0_415 = arith.constant 0 : index
    %c7 = arith.constant 7 : index
    %c0_416 = arith.constant 0 : index
    %c0_417 = arith.constant 0 : index
    %316 = vector.load %arg3[%c0_414, %c0_415, %c7, %c0_416, %c0_417] : memref<1x1x10x4x10xbf16, #tpu.memory_space<vmem>>, vector<1x1x1x4x10xbf16>
    %317 = vector.shape_cast %316 : vector<1x1x1x4x10xbf16> to vector<4x10xbf16>
    %318 = vector.extract_strided_slice %317 {offsets = [0, 0], sizes = [4, 8], strides = [1, 1]} : vector<4x10xbf16> to vector<4x8xbf16>
    %c0_418 = arith.constant 0 : index
    %c2_419 = arith.constant 2 : index
    %c0_420 = arith.constant 0 : index
    %c0_421 = arith.constant 0 : index
    %c0_422 = arith.constant 0 : index
    %319 = vector.load %arg4[%c0_418, %c2_419, %c0_420, %c0_421, %c0_422] : memref<1x3x3x8x4xbf16, #tpu.memory_space<vmem>>, vector<1x1x1x8x4xbf16>
    %320 = vector.shape_cast %319 : vector<1x1x1x8x4xbf16> to vector<8x4xbf16>
    %cst_423 = arith.constant dense<0.000000e+00> : vector<8x8xf32>
    %321 = tpu.matmul %320, %318, %cst_423 {dimension_numbers = #tpu.dot_dimension_numbers<[1], [0], [0], [1], [0, 0, 1, 1], [], []>} : vector<8x4xbf16>, vector<4x8xbf16>, vector<8x8xf32> -> vector<8x8xf32>
    %322 = arith.addf %315, %321 : vector<8x8xf32>
    %323 = vector.extract_strided_slice %317 {offsets = [0, 1], sizes = [4, 8], strides = [1, 1]} : vector<4x10xbf16> to vector<4x8xbf16>
    %c0_424 = arith.constant 0 : index
    %c2_425 = arith.constant 2 : index
    %c1_426 = arith.constant 1 : index
    %c0_427 = arith.constant 0 : index
    %c0_428 = arith.constant 0 : index
    %324 = vector.load %arg4[%c0_424, %c2_425, %c1_426, %c0_427, %c0_428] : memref<1x3x3x8x4xbf16, #tpu.memory_space<vmem>>, vector<1x1x1x8x4xbf16>
    %325 = vector.shape_cast %324 : vector<1x1x1x8x4xbf16> to vector<8x4xbf16>
    %cst_429 = arith.constant dense<0.000000e+00> : vector<8x8xf32>
    %326 = tpu.matmul %325, %323, %cst_429 {dimension_numbers = #tpu.dot_dimension_numbers<[1], [0], [0], [1], [0, 0, 1, 1], [], []>} : vector<8x4xbf16>, vector<4x8xbf16>, vector<8x8xf32> -> vector<8x8xf32>
    %327 = arith.addf %322, %326 : vector<8x8xf32>
    %328 = vector.extract_strided_slice %317 {offsets = [0, 2], sizes = [4, 8], strides = [1, 1]} : vector<4x10xbf16> to vector<4x8xbf16>
    %c0_430 = arith.constant 0 : index
    %c2_431 = arith.constant 2 : index
    %c2_432 = arith.constant 2 : index
    %c0_433 = arith.constant 0 : index
    %c0_434 = arith.constant 0 : index
    %329 = vector.load %arg4[%c0_430, %c2_431, %c2_432, %c0_433, %c0_434] : memref<1x3x3x8x4xbf16, #tpu.memory_space<vmem>>, vector<1x1x1x8x4xbf16>
    %330 = vector.shape_cast %329 : vector<1x1x1x8x4xbf16> to vector<8x4xbf16>
    %cst_435 = arith.constant dense<0.000000e+00> : vector<8x8xf32>
    %331 = tpu.matmul %330, %328, %cst_435 {dimension_numbers = #tpu.dot_dimension_numbers<[1], [0], [0], [1], [0, 0, 1, 1], [], []>} : vector<8x4xbf16>, vector<4x8xbf16>, vector<8x8xf32> -> vector<8x8xf32>
    %332 = arith.addf %327, %331 : vector<8x8xf32>
    %c0_436 = arith.constant 0 : index
    %c5_437 = arith.constant 5 : index
    %c0_438 = arith.constant 0 : index
    %333 = vector.load %arg7[%c0_436, %c5_437, %c0_438] : memref<8x8x8xf32, #tpu.memory_space<vmem>>, vector<8x1x8xf32>
    %334 = vector.shape_cast %333 : vector<8x1x8xf32> to vector<8x8xf32>
    %335 = arith.addf %334, %332 : vector<8x8xf32>
    %c0_439 = arith.constant 0 : index
    %c5_440 = arith.constant 5 : index
    %c0_441 = arith.constant 0 : index
    %336 = vector.load %arg7[%c0_439, %c5_440, %c0_441] : memref<8x8x8xf32, #tpu.memory_space<vmem>>, vector<8x1x8xf32>
    %337 = vector.shape_cast %336 : vector<8x1x8xf32> to vector<8x8xf32>
    %338 = vector.shape_cast %335 : vector<8x8xf32> to vector<8x1x8xf32>
    tpu.vector_store %arg7[%c0_439, %c5_440, %c0_441], %338 {strides = array<i32>} : memref<8x8x8xf32, #tpu.memory_space<vmem>>, vector<8x1x8xf32>,
    %c0_442 = arith.constant 0 : index
    %c0_443 = arith.constant 0 : index
    %c6_444 = arith.constant 6 : index
    %c0_445 = arith.constant 0 : index
    %c0_446 = arith.constant 0 : index
    %339 = vector.load %arg3[%c0_442, %c0_443, %c6_444, %c0_445, %c0_446] : memref<1x1x10x4x10xbf16, #tpu.memory_space<vmem>>, vector<1x1x1x4x10xbf16>
    %340 = vector.shape_cast %339 : vector<1x1x1x4x10xbf16> to vector<4x10xbf16>
    %341 = vector.extract_strided_slice %340 {offsets = [0, 0], sizes = [4, 8], strides = [1, 1]} : vector<4x10xbf16> to vector<4x8xbf16>
    %c0_447 = arith.constant 0 : index
    %c0_448 = arith.constant 0 : index
    %c0_449 = arith.constant 0 : index
    %c0_450 = arith.constant 0 : index
    %c0_451 = arith.constant 0 : index
    %342 = vector.load %arg4[%c0_447, %c0_448, %c0_449, %c0_450, %c0_451] : memref<1x3x3x8x4xbf16, #tpu.memory_space<vmem>>, vector<1x1x1x8x4xbf16>
    %343 = vector.shape_cast %342 : vector<1x1x1x8x4xbf16> to vector<8x4xbf16>
    %cst_452 = arith.constant dense<0.000000e+00> : vector<8x8xf32>
    %344 = tpu.matmul %343, %341, %cst_452 {dimension_numbers = #tpu.dot_dimension_numbers<[1], [0], [0], [1], [0, 0, 1, 1], [], []>} : vector<8x4xbf16>, vector<4x8xbf16>, vector<8x8xf32> -> vector<8x8xf32>
    %345 = vector.extract_strided_slice %340 {offsets = [0, 1], sizes = [4, 8], strides = [1, 1]} : vector<4x10xbf16> to vector<4x8xbf16>
    %c0_453 = arith.constant 0 : index
    %c0_454 = arith.constant 0 : index
    %c1_455 = arith.constant 1 : index
    %c0_456 = arith.constant 0 : index
    %c0_457 = arith.constant 0 : index
    %346 = vector.load %arg4[%c0_453, %c0_454, %c1_455, %c0_456, %c0_457] : memref<1x3x3x8x4xbf16, #tpu.memory_space<vmem>>, vector<1x1x1x8x4xbf16>
    %347 = vector.shape_cast %346 : vector<1x1x1x8x4xbf16> to vector<8x4xbf16>
    %cst_458 = arith.constant dense<0.000000e+00> : vector<8x8xf32>
    %348 = tpu.matmul %347, %345, %cst_458 {dimension_numbers = #tpu.dot_dimension_numbers<[1], [0], [0], [1], [0, 0, 1, 1], [], []>} : vector<8x4xbf16>, vector<4x8xbf16>, vector<8x8xf32> -> vector<8x8xf32>
    %349 = arith.addf %344, %348 : vector<8x8xf32>
    %350 = vector.extract_strided_slice %340 {offsets = [0, 2], sizes = [4, 8], strides = [1, 1]} : vector<4x10xbf16> to vector<4x8xbf16>
    %c0_459 = arith.constant 0 : index
    %c0_460 = arith.constant 0 : index
    %c2_461 = arith.constant 2 : index
    %c0_462 = arith.constant 0 : index
    %c0_463 = arith.constant 0 : index
    %351 = vector.load %arg4[%c0_459, %c0_460, %c2_461, %c0_462, %c0_463] : memref<1x3x3x8x4xbf16, #tpu.memory_space<vmem>>, vector<1x1x1x8x4xbf16>
    %352 = vector.shape_cast %351 : vector<1x1x1x8x4xbf16> to vector<8x4xbf16>
    %cst_464 = arith.constant dense<0.000000e+00> : vector<8x8xf32>
    %353 = tpu.matmul %352, %350, %cst_464 {dimension_numbers = #tpu.dot_dimension_numbers<[1], [0], [0], [1], [0, 0, 1, 1], [], []>} : vector<8x4xbf16>, vector<4x8xbf16>, vector<8x8xf32> -> vector<8x8xf32>
    %354 = arith.addf %349, %353 : vector<8x8xf32>
    %c0_465 = arith.constant 0 : index
    %c0_466 = arith.constant 0 : index
    %c7_467 = arith.constant 7 : index
    %c0_468 = arith.constant 0 : index
    %c0_469 = arith.constant 0 : index
    %355 = vector.load %arg3[%c0_465, %c0_466, %c7_467, %c0_468, %c0_469] : memref<1x1x10x4x10xbf16, #tpu.memory_space<vmem>>, vector<1x1x1x4x10xbf16>
    %356 = vector.shape_cast %355 : vector<1x1x1x4x10xbf16> to vector<4x10xbf16>
    %357 = vector.extract_strided_slice %356 {offsets = [0, 0], sizes = [4, 8], strides = [1, 1]} : vector<4x10xbf16> to vector<4x8xbf16>
    %c0_470 = arith.constant 0 : index
    %c1_471 = arith.constant 1 : index
    %c0_472 = arith.constant 0 : index
    %c0_473 = arith.constant 0 : index
    %c0_474 = arith.constant 0 : index
    %358 = vector.load %arg4[%c0_470, %c1_471, %c0_472, %c0_473, %c0_474] : memref<1x3x3x8x4xbf16, #tpu.memory_space<vmem>>, vector<1x1x1x8x4xbf16>
    %359 = vector.shape_cast %358 : vector<1x1x1x8x4xbf16> to vector<8x4xbf16>
    %cst_475 = arith.constant dense<0.000000e+00> : vector<8x8xf32>
    %360 = tpu.matmul %359, %357, %cst_475 {dimension_numbers = #tpu.dot_dimension_numbers<[1], [0], [0], [1], [0, 0, 1, 1], [], []>} : vector<8x4xbf16>, vector<4x8xbf16>, vector<8x8xf32> -> vector<8x8xf32>
    %361 = arith.addf %354, %360 : vector<8x8xf32>
    %362 = vector.extract_strided_slice %356 {offsets = [0, 1], sizes = [4, 8], strides = [1, 1]} : vector<4x10xbf16> to vector<4x8xbf16>
    %c0_476 = arith.constant 0 : index
    %c1_477 = arith.constant 1 : index
    %c1_478 = arith.constant 1 : index
    %c0_479 = arith.constant 0 : index
    %c0_480 = arith.constant 0 : index
    %363 = vector.load %arg4[%c0_476, %c1_477, %c1_478, %c0_479, %c0_480] : memref<1x3x3x8x4xbf16, #tpu.memory_space<vmem>>, vector<1x1x1x8x4xbf16>
    %364 = vector.shape_cast %363 : vector<1x1x1x8x4xbf16> to vector<8x4xbf16>
    %cst_481 = arith.constant dense<0.000000e+00> : vector<8x8xf32>
    %365 = tpu.matmul %364, %362, %cst_481 {dimension_numbers = #tpu.dot_dimension_numbers<[1], [0], [0], [1], [0, 0, 1, 1], [], []>} : vector<8x4xbf16>, vector<4x8xbf16>, vector<8x8xf32> -> vector<8x8xf32>
    %366 = arith.addf %361, %365 : vector<8x8xf32>
    %367 = vector.extract_strided_slice %356 {offsets = [0, 2], sizes = [4, 8], strides = [1, 1]} : vector<4x10xbf16> to vector<4x8xbf16>
    %c0_482 = arith.constant 0 : index
    %c1_483 = arith.constant 1 : index
    %c2_484 = arith.constant 2 : index
    %c0_485 = arith.constant 0 : index
    %c0_486 = arith.constant 0 : index
    %368 = vector.load %arg4[%c0_482, %c1_483, %c2_484, %c0_485, %c0_486] : memref<1x3x3x8x4xbf16, #tpu.memory_space<vmem>>, vector<1x1x1x8x4xbf16>
    %369 = vector.shape_cast %368 : vector<1x1x1x8x4xbf16> to vector<8x4xbf16>
    %cst_487 = arith.constant dense<0.000000e+00> : vector<8x8xf32>
    %370 = tpu.matmul %369, %367, %cst_487 {dimension_numbers = #tpu.dot_dimension_numbers<[1], [0], [0], [1], [0, 0, 1, 1], [], []>} : vector<8x4xbf16>, vector<4x8xbf16>, vector<8x8xf32> -> vector<8x8xf32>
    %371 = arith.addf %366, %370 : vector<8x8xf32>
    %c0_488 = arith.constant 0 : index
    %c0_489 = arith.constant 0 : index
    %c8 = arith.constant 8 : index
    %c0_490 = arith.constant 0 : index
    %c0_491 = arith.constant 0 : index
    %372 = vector.load %arg3[%c0_488, %c0_489, %c8, %c0_490, %c0_491] : memref<1x1x10x4x10xbf16, #tpu.memory_space<vmem>>, vector<1x1x1x4x10xbf16>
    %373 = vector.shape_cast %372 : vector<1x1x1x4x10xbf16> to vector<4x10xbf16>
    %374 = vector.extract_strided_slice %373 {offsets = [0, 0], sizes = [4, 8], strides = [1, 1]} : vector<4x10xbf16> to vector<4x8xbf16>
    %c0_492 = arith.constant 0 : index
    %c2_493 = arith.constant 2 : index
    %c0_494 = arith.constant 0 : index
    %c0_495 = arith.constant 0 : index
    %c0_496 = arith.constant 0 : index
    %375 = vector.load %arg4[%c0_492, %c2_493, %c0_494, %c0_495, %c0_496] : memref<1x3x3x8x4xbf16, #tpu.memory_space<vmem>>, vector<1x1x1x8x4xbf16>
    %376 = vector.shape_cast %375 : vector<1x1x1x8x4xbf16> to vector<8x4xbf16>
    %cst_497 = arith.constant dense<0.000000e+00> : vector<8x8xf32>
    %377 = tpu.matmul %376, %374, %cst_497 {dimension_numbers = #tpu.dot_dimension_numbers<[1], [0], [0], [1], [0, 0, 1, 1], [], []>} : vector<8x4xbf16>, vector<4x8xbf16>, vector<8x8xf32> -> vector<8x8xf32>
    %378 = arith.addf %371, %377 : vector<8x8xf32>
    %379 = vector.extract_strided_slice %373 {offsets = [0, 1], sizes = [4, 8], strides = [1, 1]} : vector<4x10xbf16> to vector<4x8xbf16>
    %c0_498 = arith.constant 0 : index
    %c2_499 = arith.constant 2 : index
    %c1_500 = arith.constant 1 : index
    %c0_501 = arith.constant 0 : index
    %c0_502 = arith.constant 0 : index
    %380 = vector.load %arg4[%c0_498, %c2_499, %c1_500, %c0_501, %c0_502] : memref<1x3x3x8x4xbf16, #tpu.memory_space<vmem>>, vector<1x1x1x8x4xbf16>
    %381 = vector.shape_cast %380 : vector<1x1x1x8x4xbf16> to vector<8x4xbf16>
    %cst_503 = arith.constant dense<0.000000e+00> : vector<8x8xf32>
    %382 = tpu.matmul %381, %379, %cst_503 {dimension_numbers = #tpu.dot_dimension_numbers<[1], [0], [0], [1], [0, 0, 1, 1], [], []>} : vector<8x4xbf16>, vector<4x8xbf16>, vector<8x8xf32> -> vector<8x8xf32>
    %383 = arith.addf %378, %382 : vector<8x8xf32>
    %384 = vector.extract_strided_slice %373 {offsets = [0, 2], sizes = [4, 8], strides = [1, 1]} : vector<4x10xbf16> to vector<4x8xbf16>
    %c0_504 = arith.constant 0 : index
    %c2_505 = arith.constant 2 : index
    %c2_506 = arith.constant 2 : index
    %c0_507 = arith.constant 0 : index
    %c0_508 = arith.constant 0 : index
    %385 = vector.load %arg4[%c0_504, %c2_505, %c2_506, %c0_507, %c0_508] : memref<1x3x3x8x4xbf16, #tpu.memory_space<vmem>>, vector<1x1x1x8x4xbf16>
    %386 = vector.shape_cast %385 : vector<1x1x1x8x4xbf16> to vector<8x4xbf16>
    %cst_509 = arith.constant dense<0.000000e+00> : vector<8x8xf32>
    %387 = tpu.matmul %386, %384, %cst_509 {dimension_numbers = #tpu.dot_dimension_numbers<[1], [0], [0], [1], [0, 0, 1, 1], [], []>} : vector<8x4xbf16>, vector<4x8xbf16>, vector<8x8xf32> -> vector<8x8xf32>
    %388 = arith.addf %383, %387 : vector<8x8xf32>
    %c0_510 = arith.constant 0 : index
    %c6_511 = arith.constant 6 : index
    %c0_512 = arith.constant 0 : index
    %389 = vector.load %arg7[%c0_510, %c6_511, %c0_512] : memref<8x8x8xf32, #tpu.memory_space<vmem>>, vector<8x1x8xf32>
    %390 = vector.shape_cast %389 : vector<8x1x8xf32> to vector<8x8xf32>
    %391 = arith.addf %390, %388 : vector<8x8xf32>
    %c0_513 = arith.constant 0 : index
    %c6_514 = arith.constant 6 : index
    %c0_515 = arith.constant 0 : index
    %392 = vector.load %arg7[%c0_513, %c6_514, %c0_515] : memref<8x8x8xf32, #tpu.memory_space<vmem>>, vector<8x1x8xf32>
    %393 = vector.shape_cast %392 : vector<8x1x8xf32> to vector<8x8xf32>
    %394 = vector.shape_cast %391 : vector<8x8xf32> to vector<8x1x8xf32>
    tpu.vector_store %arg7[%c0_513, %c6_514, %c0_515], %394 {strides = array<i32>} : memref<8x8x8xf32, #tpu.memory_space<vmem>>, vector<8x1x8xf32>,
    %c0_516 = arith.constant 0 : index
    %c0_517 = arith.constant 0 : index
    %c7_518 = arith.constant 7 : index
    %c0_519 = arith.constant 0 : index
    %c0_520 = arith.constant 0 : index
    %395 = vector.load %arg3[%c0_516, %c0_517, %c7_518, %c0_519, %c0_520] : memref<1x1x10x4x10xbf16, #tpu.memory_space<vmem>>, vector<1x1x1x4x10xbf16>
    %396 = vector.shape_cast %395 : vector<1x1x1x4x10xbf16> to vector<4x10xbf16>
    %397 = vector.extract_strided_slice %396 {offsets = [0, 0], sizes = [4, 8], strides = [1, 1]} : vector<4x10xbf16> to vector<4x8xbf16>
    %c0_521 = arith.constant 0 : index
    %c0_522 = arith.constant 0 : index
    %c0_523 = arith.constant 0 : index
    %c0_524 = arith.constant 0 : index
    %c0_525 = arith.constant 0 : index
    %398 = vector.load %arg4[%c0_521, %c0_522, %c0_523, %c0_524, %c0_525] : memref<1x3x3x8x4xbf16, #tpu.memory_space<vmem>>, vector<1x1x1x8x4xbf16>
    %399 = vector.shape_cast %398 : vector<1x1x1x8x4xbf16> to vector<8x4xbf16>
    %cst_526 = arith.constant dense<0.000000e+00> : vector<8x8xf32>
    %400 = tpu.matmul %399, %397, %cst_526 {dimension_numbers = #tpu.dot_dimension_numbers<[1], [0], [0], [1], [0, 0, 1, 1], [], []>} : vector<8x4xbf16>, vector<4x8xbf16>, vector<8x8xf32> -> vector<8x8xf32>
    %401 = vector.extract_strided_slice %396 {offsets = [0, 1], sizes = [4, 8], strides = [1, 1]} : vector<4x10xbf16> to vector<4x8xbf16>
    %c0_527 = arith.constant 0 : index
    %c0_528 = arith.constant 0 : index
    %c1_529 = arith.constant 1 : index
    %c0_530 = arith.constant 0 : index
    %c0_531 = arith.constant 0 : index
    %402 = vector.load %arg4[%c0_527, %c0_528, %c1_529, %c0_530, %c0_531] : memref<1x3x3x8x4xbf16, #tpu.memory_space<vmem>>, vector<1x1x1x8x4xbf16>
    %403 = vector.shape_cast %402 : vector<1x1x1x8x4xbf16> to vector<8x4xbf16>
    %cst_532 = arith.constant dense<0.000000e+00> : vector<8x8xf32>
    %404 = tpu.matmul %403, %401, %cst_532 {dimension_numbers = #tpu.dot_dimension_numbers<[1], [0], [0], [1], [0, 0, 1, 1], [], []>} : vector<8x4xbf16>, vector<4x8xbf16>, vector<8x8xf32> -> vector<8x8xf32>
    %405 = arith.addf %400, %404 : vector<8x8xf32>
    %406 = vector.extract_strided_slice %396 {offsets = [0, 2], sizes = [4, 8], strides = [1, 1]} : vector<4x10xbf16> to vector<4x8xbf16>
    %c0_533 = arith.constant 0 : index
    %c0_534 = arith.constant 0 : index
    %c2_535 = arith.constant 2 : index
    %c0_536 = arith.constant 0 : index
    %c0_537 = arith.constant 0 : index
    %407 = vector.load %arg4[%c0_533, %c0_534, %c2_535, %c0_536, %c0_537] : memref<1x3x3x8x4xbf16, #tpu.memory_space<vmem>>, vector<1x1x1x8x4xbf16>
    %408 = vector.shape_cast %407 : vector<1x1x1x8x4xbf16> to vector<8x4xbf16>
    %cst_538 = arith.constant dense<0.000000e+00> : vector<8x8xf32>
    %409 = tpu.matmul %408, %406, %cst_538 {dimension_numbers = #tpu.dot_dimension_numbers<[1], [0], [0], [1], [0, 0, 1, 1], [], []>} : vector<8x4xbf16>, vector<4x8xbf16>, vector<8x8xf32> -> vector<8x8xf32>
    %410 = arith.addf %405, %409 : vector<8x8xf32>
    %c0_539 = arith.constant 0 : index
    %c0_540 = arith.constant 0 : index
    %c8_541 = arith.constant 8 : index
    %c0_542 = arith.constant 0 : index
    %c0_543 = arith.constant 0 : index
    %411 = vector.load %arg3[%c0_539, %c0_540, %c8_541, %c0_542, %c0_543] : memref<1x1x10x4x10xbf16, #tpu.memory_space<vmem>>, vector<1x1x1x4x10xbf16>
    %412 = vector.shape_cast %411 : vector<1x1x1x4x10xbf16> to vector<4x10xbf16>
    %413 = vector.extract_strided_slice %412 {offsets = [0, 0], sizes = [4, 8], strides = [1, 1]} : vector<4x10xbf16> to vector<4x8xbf16>
    %c0_544 = arith.constant 0 : index
    %c1_545 = arith.constant 1 : index
    %c0_546 = arith.constant 0 : index
    %c0_547 = arith.constant 0 : index
    %c0_548 = arith.constant 0 : index
    %414 = vector.load %arg4[%c0_544, %c1_545, %c0_546, %c0_547, %c0_548] : memref<1x3x3x8x4xbf16, #tpu.memory_space<vmem>>, vector<1x1x1x8x4xbf16>
    %415 = vector.shape_cast %414 : vector<1x1x1x8x4xbf16> to vector<8x4xbf16>
    %cst_549 = arith.constant dense<0.000000e+00> : vector<8x8xf32>
    %416 = tpu.matmul %415, %413, %cst_549 {dimension_numbers = #tpu.dot_dimension_numbers<[1], [0], [0], [1], [0, 0, 1, 1], [], []>} : vector<8x4xbf16>, vector<4x8xbf16>, vector<8x8xf32> -> vector<8x8xf32>
    %417 = arith.addf %410, %416 : vector<8x8xf32>
    %418 = vector.extract_strided_slice %412 {offsets = [0, 1], sizes = [4, 8], strides = [1, 1]} : vector<4x10xbf16> to vector<4x8xbf16>
    %c0_550 = arith.constant 0 : index
    %c1_551 = arith.constant 1 : index
    %c1_552 = arith.constant 1 : index
    %c0_553 = arith.constant 0 : index
    %c0_554 = arith.constant 0 : index
    %419 = vector.load %arg4[%c0_550, %c1_551, %c1_552, %c0_553, %c0_554] : memref<1x3x3x8x4xbf16, #tpu.memory_space<vmem>>, vector<1x1x1x8x4xbf16>
    %420 = vector.shape_cast %419 : vector<1x1x1x8x4xbf16> to vector<8x4xbf16>
    %cst_555 = arith.constant dense<0.000000e+00> : vector<8x8xf32>
    %421 = tpu.matmul %420, %418, %cst_555 {dimension_numbers = #tpu.dot_dimension_numbers<[1], [0], [0], [1], [0, 0, 1, 1], [], []>} : vector<8x4xbf16>, vector<4x8xbf16>, vector<8x8xf32> -> vector<8x8xf32>
    %422 = arith.addf %417, %421 : vector<8x8xf32>
    %423 = vector.extract_strided_slice %412 {offsets = [0, 2], sizes = [4, 8], strides = [1, 1]} : vector<4x10xbf16> to vector<4x8xbf16>
    %c0_556 = arith.constant 0 : index
    %c1_557 = arith.constant 1 : index
    %c2_558 = arith.constant 2 : index
    %c0_559 = arith.constant 0 : index
    %c0_560 = arith.constant 0 : index
    %424 = vector.load %arg4[%c0_556, %c1_557, %c2_558, %c0_559, %c0_560] : memref<1x3x3x8x4xbf16, #tpu.memory_space<vmem>>, vector<1x1x1x8x4xbf16>
    %425 = vector.shape_cast %424 : vector<1x1x1x8x4xbf16> to vector<8x4xbf16>
    %cst_561 = arith.constant dense<0.000000e+00> : vector<8x8xf32>
    %426 = tpu.matmul %425, %423, %cst_561 {dimension_numbers = #tpu.dot_dimension_numbers<[1], [0], [0], [1], [0, 0, 1, 1], [], []>} : vector<8x4xbf16>, vector<4x8xbf16>, vector<8x8xf32> -> vector<8x8xf32>
    %427 = arith.addf %422, %426 : vector<8x8xf32>
    %c0_562 = arith.constant 0 : index
    %c0_563 = arith.constant 0 : index
    %c9 = arith.constant 9 : index
    %c0_564 = arith.constant 0 : index
    %c0_565 = arith.constant 0 : index
    %428 = vector.load %arg3[%c0_562, %c0_563, %c9, %c0_564, %c0_565] : memref<1x1x10x4x10xbf16, #tpu.memory_space<vmem>>, vector<1x1x1x4x10xbf16>
    %429 = vector.shape_cast %428 : vector<1x1x1x4x10xbf16> to vector<4x10xbf16>
    %430 = vector.extract_strided_slice %429 {offsets = [0, 0], sizes = [4, 8], strides = [1, 1]} : vector<4x10xbf16> to vector<4x8xbf16>
    %c0_566 = arith.constant 0 : index
    %c2_567 = arith.constant 2 : index
    %c0_568 = arith.constant 0 : index
    %c0_569 = arith.constant 0 : index
    %c0_570 = arith.constant 0 : index
    %431 = vector.load %arg4[%c0_566, %c2_567, %c0_568, %c0_569, %c0_570] : memref<1x3x3x8x4xbf16, #tpu.memory_space<vmem>>, vector<1x1x1x8x4xbf16>
    %432 = vector.shape_cast %431 : vector<1x1x1x8x4xbf16> to vector<8x4xbf16>
    %cst_571 = arith.constant dense<0.000000e+00> : vector<8x8xf32>
    %433 = tpu.matmul %432, %430, %cst_571 {dimension_numbers = #tpu.dot_dimension_numbers<[1], [0], [0], [1], [0, 0, 1, 1], [], []>} : vector<8x4xbf16>, vector<4x8xbf16>, vector<8x8xf32> -> vector<8x8xf32>
    %434 = arith.addf %427, %433 : vector<8x8xf32>
    %435 = vector.extract_strided_slice %429 {offsets = [0, 1], sizes = [4, 8], strides = [1, 1]} : vector<4x10xbf16> to vector<4x8xbf16>
    %c0_572 = arith.constant 0 : index
    %c2_573 = arith.constant 2 : index
    %c1_574 = arith.constant 1 : index
    %c0_575 = arith.constant 0 : index
    %c0_576 = arith.constant 0 : index
    %436 = vector.load %arg4[%c0_572, %c2_573, %c1_574, %c0_575, %c0_576] : memref<1x3x3x8x4xbf16, #tpu.memory_space<vmem>>, vector<1x1x1x8x4xbf16>
    %437 = vector.shape_cast %436 : vector<1x1x1x8x4xbf16> to vector<8x4xbf16>
    %cst_577 = arith.constant dense<0.000000e+00> : vector<8x8xf32>
    %438 = tpu.matmul %437, %435, %cst_577 {dimension_numbers = #tpu.dot_dimension_numbers<[1], [0], [0], [1], [0, 0, 1, 1], [], []>} : vector<8x4xbf16>, vector<4x8xbf16>, vector<8x8xf32> -> vector<8x8xf32>
    %439 = arith.addf %434, %438 : vector<8x8xf32>
    %440 = vector.extract_strided_slice %429 {offsets = [0, 2], sizes = [4, 8], strides = [1, 1]} : vector<4x10xbf16> to vector<4x8xbf16>
    %c0_578 = arith.constant 0 : index
    %c2_579 = arith.constant 2 : index
    %c2_580 = arith.constant 2 : index
    %c0_581 = arith.constant 0 : index
    %c0_582 = arith.constant 0 : index
    %441 = vector.load %arg4[%c0_578, %c2_579, %c2_580, %c0_581, %c0_582] : memref<1x3x3x8x4xbf16, #tpu.memory_space<vmem>>, vector<1x1x1x8x4xbf16>
    %442 = vector.shape_cast %441 : vector<1x1x1x8x4xbf16> to vector<8x4xbf16>
    %cst_583 = arith.constant dense<0.000000e+00> : vector<8x8xf32>
    %443 = tpu.matmul %442, %440, %cst_583 {dimension_numbers = #tpu.dot_dimension_numbers<[1], [0], [0], [1], [0, 0, 1, 1], [], []>} : vector<8x4xbf16>, vector<4x8xbf16>, vector<8x8xf32> -> vector<8x8xf32>
    %444 = arith.addf %439, %443 : vector<8x8xf32>
    %c0_584 = arith.constant 0 : index
    %c7_585 = arith.constant 7 : index
    %c0_586 = arith.constant 0 : index
    %445 = vector.load %arg7[%c0_584, %c7_585, %c0_586] : memref<8x8x8xf32, #tpu.memory_space<vmem>>, vector<8x1x8xf32>
    %446 = vector.shape_cast %445 : vector<8x1x8xf32> to vector<8x8xf32>
    %447 = arith.addf %446, %444 : vector<8x8xf32>
    %c0_587 = arith.constant 0 : index
    %c7_588 = arith.constant 7 : index
    %c0_589 = arith.constant 0 : index
    %448 = vector.load %arg7[%c0_587, %c7_588, %c0_589] : memref<8x8x8xf32, #tpu.memory_space<vmem>>, vector<8x1x8xf32>
    %449 = vector.shape_cast %448 : vector<8x1x8xf32> to vector<8x8xf32>
    %450 = vector.shape_cast %447 : vector<8x8xf32> to vector<8x1x8xf32>
    tpu.vector_store %arg7[%c0_587, %c7_588, %c0_589], %450 {strides = array<i32>} : memref<8x8x8xf32, #tpu.memory_space<vmem>>, vector<8x1x8xf32>,
    %c2_i32 = arith.constant 2 : i32
    %451 = arith.cmpi eq, %arg2, %c2_i32 : i32
    %452 = arith.extui %451 : i1 to i32
    %c0_i32_590 = arith.constant 0 : i32
    %453 = arith.cmpi ne, %452, %c0_i32_590 : i32
    scf.if %453 {
      %c0_591 = arith.constant 0 : index
      %c0_592 = arith.constant 0 : index
      %c0_593 = arith.constant 0 : index
      %454 = vector.load %arg7[%c0_591, %c0_592, %c0_593] : memref<8x8x8xf32, #tpu.memory_space<vmem>>, vector<8x8x8xf32>
      %c0_594 = arith.constant 0 : index
      %c0_595 = arith.constant 0 : index
      %c0_596 = arith.constant 0 : index
      %455 = vector.load %arg5[%c0_594, %c0_595, %c0_596] : memref<8x1x1xf32, #tpu.memory_space<vmem>>, vector<8x1x1xf32>
      %456 = vector.broadcast %455 : vector<8x1x1xf32> to vector<8x8x8xf32>
      %457 = arith.addf %454, %456 : vector<8x8x8xf32>
      %c0_597 = arith.constant 0 : index
      %c0_598 = arith.constant 0 : index
      %c0_599 = arith.constant 0 : index
      %c0_600 = arith.constant 0 : index
      %c0_601 = arith.constant 0 : index
      %458 = vector.load %arg6[%c0_597, %c0_598, %c0_599, %c0_600, %c0_601] : memref<1x8x1x8x8xf32, #tpu.memory_space<vmem>>, vector<1x8x1x8x8xf32>
      %459 = vector.shape_cast %458 : vector<1x8x1x8x8xf32> to vector<8x8x8xf32>
      %460 = vector.shape_cast %457 : vector<8x8x8xf32> to vector<1x8x1x8x8xf32>
      tpu.vector_store %arg6[%c0_597, %c0_598, %c0_599, %c0_600, %c0_601], %460 {strides = array<i32>} : memref<1x8x1x8x8xf32, #tpu.memory_space<vmem>>, vector<1x8x1x8x8xf32>,
    } else {
    }
    return
  }
  func.func @transform_0(%arg0: i32, %arg1: i32, %arg2: i32) -> (i32, i32, i32, i32, i32) {
    %0 = arith.addi %arg1, %arg2 : i32
    %c0_i32 = arith.constant 0 : i32
    %c0_i32_0 = arith.constant 0 : i32
    %c0_i32_1 = arith.constant 0 : i32
    %c0_i32_2 = arith.constant 0 : i32
    return %arg0, %0, %c0_i32, %c0_i32_0, %c0_i32_1 : i32, i32, i32, i32, i32
  }
  func.func @transform_1(%arg0: i32, %arg1: i32, %arg2: i32) -> (i32, i32, i32, i32, i32) {
    %c0_i32 = arith.constant 0 : i32
    %c0_i32_0 = arith.constant 0 : i32
    %c0_i32_1 = arith.constant 0 : i32
    %c0_i32_2 = arith.constant 0 : i32
    %c0_i32_3 = arith.constant 0 : i32
    return %arg2, %c0_i32, %c0_i32_0, %c0_i32_1, %c0_i32_2 : i32, i32, i32, i32, i32
  }
  func.func @transform_2(%arg0: i32, %arg1: i32, %arg2: i32) -> (i32, i32, i32) {
    %c0_i32 = arith.constant 0 : i32
    %c0_i32_0 = arith.constant 0 : i32
    %c0_i32_1 = arith.constant 0 : i32
    %c0_i32_2 = arith.constant 0 : i32
    return %c0_i32, %c0_i32_0, %c0_i32_1 : i32, i32, i32
  }
  func.func @transform_3(%arg0: i32, %arg1: i32, %arg2: i32) -> (i32, i32, i32, i32, i32) {
    %c0_i32 = arith.constant 0 : i32
    %c0_i32_0 = arith.constant 0 : i32
    %c0_i32_1 = arith.constant 0 : i32
    %c0_i32_2 = arith.constant 0 : i32
    return %arg0, %c0_i32, %arg1, %c0_i32_0, %c0_i32_1 : i32, i32, i32, i32, i32
  }
}

</mosaic_0001>

<bundles_post_ra>
// kernel: tpu_custom_call.1
= control target key start
LH: loop header
LB: loop body
LE: loop exit
PB: predicated region body
PF: predicated region fallthrough
CT: control target
= control target key end

     0   :  { %8 = vsyncpa [#allocation4], 0  ;;  %s6655_s0 = inlined_call_operand.hbm [shape: bf16[2,10,10,4,10], index: 0, kind: input, shape index: {}]   ;;  %s6656_s1 = inlined_call_operand.vmem [shape: bf16[3,3,3,8,4], index: 1, kind: input, shape index: {}]   ;;  %s6657_s2 = inlined_call_operand.vmem [shape: f32[8,1,1], index: 2, kind: input, shape index: {}]   ;;  %s6658_s3 = inlined_call_operand.hbm [shape: f32[2,8,8,8,8], index: 3, kind: output, shape index: {}]  }
   0x1   :  { %10 = vsyncpa [#allocation4 + $0x1], 0 }
   0x2   :  { %11 = vsyncpa [#allocation5], 0 }
   0x3   :  { %13 = vsyncpa [#allocation5 + $0x1], 0  ;;  %s5675_s12 = smov 0   ;;  %s5677_s13 = smov 0  }
   0x4   :  { %s5679_s14 = smov 0   ;;  %s5681_s15 = smov 0  }
   0x5   :  { %s5683_s16 = smov 0   ;;  %s5685_s17 = smov 0  }
   0x6   :  { %s5687_s18 = smov 0   ;;  %s5689_s19 = smov 0  }
   0x7   :  { %s5691_s20 = smov 0   ;;  %s5693_s21 = smov 0  }
   0x8   :  { %s5695_s22 = smov 0   ;;  %s5697_s23 = smov 0  }
   0x9   :  { %s5699_s24 = smov 0  }
   0xa LB: > { %6667 = sst [smem:[#allocation9_spill]] %s5599_s14  ;;  %s4576_s25 = sadd.s32 4294967295, %s5639_s24   ;;  %s5639_s24 = sphi %s5699_s24, %s19_s24   ;;  %s5635_s23 = sphi %s5697_s23, %s6693_s23   ;;  %s5631_s22 = sphi %s5695_s22, %s6692_s22   ;;  %s5627_s21 = sphi %s5693_s21, %s6691_s21   ;;  %s5623_s20 = sphi %s5691_s20, %s6690_s20   ;;  %s5619_s19 = sphi %s5689_s19, %s6689_s19   ;;  %s5615_s18 = sphi %s5687_s18, %s6688_s18   ;;  %s5611_s17 = sphi %s5685_s17, %s6687_s17   ;;  %s5607_s16 = sphi %s5683_s16, %s6697_s16   ;;  %s5603_s15 = sphi %s5681_s15, %s6696_s15   ;;  %s5599_s14 = sphi %s5679_s14, %s6685_s14   ;;  %s5595_s13 = sphi %s5677_s13, %s6695_s13   ;;  %s5591_s12 = sphi %s5675_s12, %s6694_s12  }
   0xb   : > { %6668 = sst [smem:[#allocation10_spill]] %s5611_s17  ;;  %s31_s27 = sadd.s32 1, %s5627_s21 }
   0xc   : > { %6669 = sst [smem:[#allocation11_spill]] %s5627_s21  ;;  %s34_s28 = sadd.s32 1, %s5631_s22 }
   0xd   : > { %6670 = sst [smem:[#allocation12_spill]] %s5631_s22  ;;  %p32_p0 = scmp.ge.s32.totalorder %s31_s27, 3 }
   0xe   : > { %6671 = sst [smem:[#allocation13_spill]] %s5635_s23  ;;  %s38_s29 = sadd.s32 1, %s5635_s23 }
   0xf   : > { %s5747_s30 = sadd.s32 %s5627_s21, %s5631_s22  ;;  %s49_s4 = sadd.s32 1, %s5611_s17 }
  0x10   : > { %s6699_s27 = smov (%p32_p0, %s31_s27), 0  ;;  %s6701_s28 = smov (!%p32_p0, %s34_s28), %s5631_s22 }
  0x11   : > { %6672 = sst [smem:[#allocation14_spill]] %s6699_s27  ;;  %p56_p1 = scmp.ne.s32.totalorder %s5611_s17, %s5607_s16 }
  0x12   : > { %p57_p2 = scmp.eq.s32.totalorder %s5639_s24, 0  ;;  %p36_p3 = scmp.ge.s32.totalorder %s6701_s28, 8 }
  0x13   : > { %p62_p4 = scmp.ne.s32.totalorder %s5607_s16, %s5603_s15  ;;  %p63_p6 = scmp.eq.s32.totalorder %s4576_s25, 0 }
  0x14   : > { %p5758_p5 = por %p57_p2, %p56_p1  ;;  %s6703_s28 = smov (%p36_p3, %s6701_s28), 0 }
  0x15   : > { %6674 = sst [smem:[#allocation15_spill]] %s6703_s28  ;;  %s6705_s29 = smov (!%p36_p3, %s38_s29), %s5635_s23 }
  0x16   : > { %s43_s6 = sadd.s32 %s6703_s28, %s6699_s27  ;;  %p5767_p7 = por %p63_p6, %p62_p4 }
  0x17   : > { %p40_p8 = scmp.ge.s32.totalorder %s6705_s29, 2  ;;  %s45_s8 = ssub.s32 %s5747_s30, %s43_s6 }
  0x18   : > { %s120_s9 = ssub.s32 %s5631_s22, %s6703_s28  ;;  %s124_s10 = sadd.s32 1, %s5599_s14 }
  0x19   : > { %s6707_s29 = smov (%p40_p8, %s6705_s29), 0  ;;  %p134_p9 = scmp.ne.s32.totalorder %s5599_s14, %s5595_s13 }
  0x1a   : > { %6676 = sst [smem:[#allocation16_spill]] %s6707_s29  ;;  %p135_p10 = scmp.eq.s32.totalorder %s4576_s25, 47 }
  0x1b   : > { %s44_s11 = ssub.s32 %s5635_s23, %s6707_s29  ;;  %p140_p11 = scmp.ne.s32.totalorder %s5595_s13, %s5591_s12 }
  0x1c   : > { %s46_s15 = sor.u32 %s45_s8, %s44_s11  ;;  %s121_s26 = sor.u32 %s120_s9, %s44_s11 }
  0x1d   : > { %p47_p12 = scmp.eq.s32.totalorder %s46_s15, 0  ;;  %p122_p13 = scmp.eq.s32.totalorder %s121_s26, 0 }
  0x1e   : > { %p5783_p0 = por %p135_p10, %p134_p9  ;;  %s6678_s28 = sadd.s32 4294967294, %s5639_s24  }
  0x1f   : > { %p141_p1 = scmp.eq.s32.totalorder %s6678_s28, 47  ;;  %p5351_p3 = scmp.lt.s32.totalorder %s5639_s24, 48 }
  0x20   : > { %s5790_s27 = scalar_select %p47_p12, %s5611_s17, %s49_s4  }
  0x21   : > { %s5793_s22 = scalar_select %p122_p13, %s5599_s14, %s124_s10  }
  0x22   : > { %6679 = sst [smem:[#allocation17_spill]] %s5790_s27  ;;  %p5795_p2 = por %p141_p1, %p140_p11 }
  0x23   : > { %6680 = sst [smem:[#allocation18_spill]] %s5793_s22  ;;  %s164_s29 = sand.u32 1, %s5611_s17  }
  0x24   : > { %s5334_s8 = smul.u32 20, %s164_s29  ;;  %p5804_p4 = pnand %p5351_p3, %p5758_p5 }
  0x25   : > { %s5335_s9 = smul.u32 10, %s5747_s30  ;;  %s165_s14 = scalar_lea.sflag [#allocation4], %s164_s29 }
  0x26   : > { %s5336_s11 = smul.u32 100, %s5635_s23  ;;  %s168_s28 = scalar_lea.vmem [#allocation3], %s5334_s8 }
  0x27   : > { %s178_s4 = sshll.u32 %s168_s28, 4  ;;  %p5477_p6 = pneg %p5804_p4  ;;  %s179_s4 = int_to_ptr.vmem [resolvable:$true] %s178_s4 }
  0x28   : > { %s175_s15 = sadd.s32 %s5336_s11, %s5335_s9  ;;  %s5488_s30 = scalar_lea.vmem %s179_s4, 320 }
  0x29   : > { %s4580_s10 = sshll.u32 %s175_s15, 5  ;;  %p5489_p8 = scmp.ne.s32.totalorder %s179_s4, %s5488_s30 }
  0x2a   : > { %s177_s22 = scalar_lea.hbm %s6655_s0, %s4580_s10  ;;  %s5641_s5 = smov [#allocation3]  }
  0x2b   : > { %p5491_p5 = pnand %p5489_p8, %p5477_p6  ;;  %s5493_s17 = sshll.u32 %s5641_s5, 4  ;;  %s5494_s17 = int_to_ptr.vmem [resolvable:$false] %s5493_s17 }
  0x2c   : > { %s5495_s23 = scalar_lea.vmem %s5494_s17, 640  ;;  %p5496_p10 = scmp.lt.s32.totalorder %s179_s4, %s5494_s17 }
  0x2d   : > { %p5492_p9 = pneg %p5491_p5  ;;  %p5497_p11 = scmp.lt.s32.totalorder %s5495_s23, %s5488_s30 }
  0x2f   : > { %p5498_p12 = por %p5497_p11, %p5496_p10 }
  0x31   : > { %p5499_p13 = pnand %p5498_p12, %p5492_p9 }
  0x33   : > { %5502 = shalt.err (!%p5499_p13)
}
  0x34   : > { %s5642_s8 = smov 32   ;;  %s5643_s21 = smov 2  }
  0x35   : > { %5346 = dma.hbm_to_vmem [thread:$0]  (!%p5804_p4), %s177_s22, 320, %s179_s4, %s165_s14, %s5642_s8, %s5642_s8, %s5643_s21  }
  0x36   : > { %p4581_p1 = scmp.ge.s32.totalorder %s5639_s24, 1  ;;  %p194_p3 = scmp.lt.s32.totalorder %s5639_s24, 49 }
  0x38   : > { %p195_p6 = pnand %p4581_p1, %p194_p3 }
  0x39   : > { %s200_s27 = sand.u32 (!%p195_p6), 1, %s5607_s16  }
  0x3a   : > { %198 = sbr.rel (%p195_p6) target bundleno = 858 (0x35a), region = 32  ;;  %s201_s17 = scalar_lea.sflag (!%p195_p6), [#allocation4], %s200_s27 }
  0x3b   : > { %s5337_s29 = smul.u32 (!%p195_p6), 20, %s200_s27 }
  0x3d   : > { %s5819_s23 = scalar_lea.vmem (!%p195_p6), [#allocation3], %s5337_s29 }
  0x3f   : > { %5582 = dma.done.wait (%p5767_p7), %s201_s17, 320  }
  0x40   : > { %5584 = vsyncadd (%p5767_p7), %s201_s17, 4294966976  ;;  %s229_s14 = sand.u32 1, %s5595_s13   ;;  %p233_p4 = scmp.lt.s32.totalorder %s5615_s18, 2 }
  0x41   : > { %s4582_s22 = sshll.u32 %s229_s14, 6  ;;  %p4584_p8 = scmp.ne.s32.totalorder %s5615_s18, 0 }
  0x42   : > { %s234_s9 = scalar_select %p233_p4, %s5615_s18, 2 }
  0x43   : > { %s5835_s15 = scalar_lea.vmem [#allocation6], %s4582_s22  ;;  %242 = sbr.rel (%p4584_p8) target bundleno = 77 (0x4d), region = 40 }
  0x44   : > { %s5338_s26 = smul.u32 36, %s234_s9 }
  0x46   : > { %s5833_s4 = scalar_lea.vmem %s6656_s1, %s5338_s26 }
  0x48   : > { %vm243_vm0 = vcmask 64512   ;;  %v5644_v0 = vmov 0.0  }
  0x49   : > { %244 = vst.msk [vmem:[#allocation2] sm:$0xff] %vm243_vm0, %v5644_v0  ;;  %245 = vst.msk [vmem:[#allocation2 + $0x8] sm:$0xff] %vm243_vm0, %v5644_v0 }
  0x4a   : > { %246 = vst.msk [vmem:[#allocation2 + $0x10] sm:$0xff] %vm243_vm0, %v5644_v0  ;;  %247 = vst.msk [vmem:[#allocation2 + $0x18] sm:$0xff] %vm243_vm0, %v5644_v0 }
  0x4b   : > { %248 = vst.msk [vmem:[#allocation2 + $0x20] sm:$0xff] %vm243_vm0, %v5644_v0  ;;  %249 = vst.msk [vmem:[#allocation2 + $0x28] sm:$0xff] %vm243_vm0, %v5644_v0 }
  0x4c   : > { %250 = vst.msk [vmem:[#allocation2 + $0x30] sm:$0xff] %vm243_vm0, %v5644_v0  ;;  %251 = vst.msk [vmem:[#allocation2 + $0x38] sm:$0xff] %vm243_vm0, %v5644_v0 }
  0x4d PF: > { %v260_v1 = vlaneseq  ;;  %v5645_v2 = vmov 1983009808   ;;  %v5646_v6 = vmov 0.0   ;;  %v252_v7 = vld [vmem:[%s5819_s23] sm:$0x3]  ;;  %vm270_vm1 = vcmask 1041408  }
  0x4e   : > { %v258_v3 = vunpack.c.l.s4 %v5645_v2  ;;  %4908 = vmatprep.subr.bf16.mxu1 %v5646_v6  ;;  %4902 = vmatprep.subr.bf16.mxu0 %v5646_v6  ;;  %v4590_v8 = vld [vmem:[%s5819_s23 + $0x2] sm:$0x3]  ;;  %v318_v10 = vsel %vm270_vm1, %v252_v7, 0  ;;  %vm5647_vm2 = vmmov 0   ;;  %vm266_vm3 = vcmask 31744   ;;  %s5648_s7 = smov 127  }
  0x4f   : > { %v261_v4 = vshrl.u32 %v260_v1, 7  ;;  %4910 = vmatprep.mubr.msk.bf16.mxu1 %vm5647_vm2, %v5646_v6  ;;  %4904 = vmatprep.mubr.msk.bf16.mxu0 %vm5647_vm2, %v5646_v6  ;;  %v253_v13 = vld [vmem:[%s5833_s4] sm:$0xf]  ;;  %v419_v14 = vsel %vm270_vm1, %v4590_v8, 0  ;;  %v5857_v15 = vld [vmem:[%s5819_s23 + $0x4] sm:$0x3] }
  0x50   : > { %v259_v5 = vunpack.c.0.s8 %v258_v3  ;;  %4909 = vmatpush3.bf16.msra.mxu1 %v318_v10  ;;  %s5649_s10 = smov 126   ;;  %v5868_v17 = vld [vmem:[%s5819_s23 + $0x2] sm:$0x3]  ;;  %v4591_v18 = vld [vmem:[%s5833_s4 + $0xc] sm:$0xf]  ;;  %vm765_vm4 = vcmask 57344  }
  0x51   : > { %4920 = vmatprep.subr.bf16.mxu1 %v5646_v6  ;;  %v5876_v20 = vld [vmem:[%s5819_s23 + $0x4] sm:$0x3]  ;;  %v5886_v22 = vld [vmem:[%s5819_s23 + $0x6] sm:$0x3]  ;;  %v5907_v28 = vld [vmem:[%s5819_s23 + $0x8] sm:$0x3] }
  0x52   : > { %v5842_v9 = vsub.s32 %v259_v5, %v261_v4  ;;  %v5893_v24 = vld [vmem:[%s5819_s23 + $0x4] sm:$0x3]  ;;  %v5900_v26 = vld [vmem:[%s5819_s23 + $0x6] sm:$0x3]  ;;  %v5921_v32 = vld [vmem:[%s5819_s23 + $0x8] sm:$0x3] }
  0x53   : > { %4911 = vmatmul.mubr.msk.bf16.vlgmr.msra.gmra.mxu1 %vm266_vm3, %v253_v13  ;;  %v5914_v30 = vld [vmem:[%s5819_s23 + $0x6] sm:$0x3]  ;;  %v5928_v34 = vld [vmem:[%s5819_s23 + $0xa] sm:$0x3]  ;;  %v5935_v36 = vld [vmem:[%s5819_s23 + $0x8] sm:$0x3] }
  0x54   : > { %v263_v11 = vrot.slane %v252_v7, %v5842_v9  ;;  %v471_v12 = vrot.slane %v4590_v8, %v5842_v9  ;;  %4921 = vmatpush3.bf16.msra.mxu1 %v419_v14  ;;  %4922 = vmatprep.mubr.msk.bf16.mxu1 %vm5647_vm2, %v5646_v6  ;;  %v632_v16 = vrot.slane %v5857_v15, %v5842_v9  ;;  %v5942_v38 = vld [vmem:[%s5819_s23 + $0xa] sm:$0x3]  ;;  %v5949_v40 = vld [vmem:[%s5819_s23 + $0xc] sm:$0x3]  ;;  %v5972_v46 = vld [vmem:[%s5819_s23 + $0xe] sm:$0x3] }
  0x55   : > { %4932 = vmatprep.subr.bf16.mxu1 %v5646_v6  ;;  %v784_v19 = vrot.slane %v5868_v17, %v5842_v9  ;;  %v986_v21 = vrot.slane %v5876_v20, %v5842_v9  ;;  %v1144_v23 = vrot.slane %v5886_v22, %v5842_v9  ;;  %v1294_v25 = vrot.slane %v5893_v24, %v5842_v9  ;;  %v5956_v42 = vld [vmem:[%s5819_s23 + $0xa] sm:$0x3]  ;;  %v5963_v44 = vld [vmem:[%s5819_s23 + $0xc] sm:$0x3]  ;;  %v5986_v50 = vld [vmem:[%s5819_s23 + $0xe] sm:$0x3] }
  0x56   : > { %264 = vrot.lane.b32.xlu0 %v263_v11, %s5648_s7  ;;  %472 = vrot.lane.b32.xlu1 %v471_v12, %s5648_s7  ;;  %v1496_v27 = vrot.slane %v5900_v26, %v5842_v9  ;;  %v1654_v29 = vrot.slane %v5907_v28, %v5842_v9  ;;  %v1804_v31 = vrot.slane %v5914_v30, %v5842_v9  ;;  %v5979_v48 = vld [vmem:[%s5819_s23 + $0xc] sm:$0x3]  ;;  %v5993_v52 = vld [vmem:[%s5819_s23 + $0x10] sm:$0x3]  ;;  %p4744_p7 = scmp.ne.s32.totalorder %s5615_s18, 2 }
  0x57   : > { %v2006_v33 = vrot.slane %v5921_v32, %v5842_v9  ;;  %v2164_v35 = vrot.slane %v5928_v34, %v5842_v9  ;;  %v2314_v37 = vrot.slane %v5935_v36, %v5842_v9  ;;  %v2516_v39 = vrot.slane %v5942_v38, %v5842_v9  ;;  %v5473_v54 = vld.sshfl [vmem:[%s5819_s23 + $0xe] sm:$0x3 pattern:$0x76325410]  ;;  %v4585_v58 = vld [vmem:[%s5833_s4 + $0x4] sm:$0xf] }
  0x58   : > { %v2674_v41 = vrot.slane %v5949_v40, %v5842_v9  ;;  %v2824_v43 = vrot.slane %v5956_v42, %v5842_v9  ;;  %v3026_v45 = vrot.slane %v5963_v44, %v5842_v9  ;;  %v3184_v47 = vrot.slane %v5972_v46, %v5842_v9  ;;  %v4595_v63 = vld [vmem:[%s5833_s4 + $0x14] sm:$0xf]  ;;  %v4588_v2 = vld [vmem:[%s5833_s4 + $0x8] sm:$0xf]  ;;  %v4600_v7 = vld [vmem:[%s5833_s4 + $0x1c] sm:$0xf] }
  0x59   : > { %v3334_v49 = vrot.slane %v5979_v48, %v5842_v9  ;;  %v3536_v51 = vrot.slane %v5986_v50, %v5842_v9  ;;  %v3694_v53 = vrot.slane %v5993_v52, %v5842_v9  ;;  %v5474_v5 = vld.sshfl [vmem:[%s5819_s23 + $0x10] sm:$0x3 pattern:$0x76325410] }
  0x5a   : > { %362 = vrot.lane.b32.xlu0 %v263_v11, %s5649_s10  ;;  %523 = vrot.lane.b32.xlu1 %v471_v12, %s5649_s10  ;;  %v4593_v11 = vld [vmem:[%s5833_s4 + $0x10] sm:$0xf]  ;;  %v580_v12 = vsel %vm270_vm1, %v5857_v15, 0  ;;  %v4605_v14 = vld [vmem:[%s5833_s4 + $0x4] sm:$0xf] }
  0x5b   : > { %4923 = vmatmul.mubr.msk.bf16.vlgmr.msra.gmra.mxu1 %vm266_vm3, %v4591_v18 }
  0x5c   : > { %4934 = vmatprep.mubr.msk.bf16.mxu1 %vm5647_vm2, %v5646_v6 }
  0x5e   : > { %633 = vrot.lane.b32.xlu0 %v632_v16, %s5648_s7  ;;  %684 = vrot.lane.b32.xlu1 %v632_v16, %s5649_s10  ;;  %v4598_v16 = vld [vmem:[%s5833_s4 + $0x18] sm:$0xf] }
  0x62   : > { %785 = vrot.lane.b32.xlu0 %v784_v19, %s5648_s7  ;;  %880 = vrot.lane.b32.xlu1 %v784_v19, %s5649_s10 }
  0x66   : > { %987 = vrot.lane.b32.xlu0 %v986_v21, %s5648_s7  ;;  %1037 = vrot.lane.b32.xlu1 %v986_v21, %s5649_s10  ;;  %v6052_v21 = vld [vmem:[%s5819_s23 + $0x12] sm:$0x3] }
  0x6a   : > { %1145 = vrot.lane.b32.xlu0 %v1144_v23, %s5648_s7  ;;  %1195 = vrot.lane.b32.xlu1 %v1144_v23, %s5649_s10  ;;  %v4608_v23 = vld [vmem:[%s5833_s4 + $0x8] sm:$0xf] }
  0x6e   : > { %1295 = vrot.lane.b32.xlu0 %v1294_v25, %s5648_s7  ;;  %1390 = vrot.lane.b32.xlu1 %v1294_v25, %s5649_s10  ;;  %v4204_v25 = vrot.slane %v6052_v21, %v5842_v9  ;;  %v4613_v9 = vld [vmem:[%s5833_s4 + $0x10] sm:$0xf] }
  0x72   : > { %1497 = vrot.lane.b32.xlu0 %v1496_v27, %s5648_s7  ;;  %1547 = vrot.lane.b32.xlu1 %v1496_v27, %s5649_s10 }
  0x76   : > { %1655 = vrot.lane.b32.xlu0 %v1654_v29, %s5648_s7  ;;  %1705 = vrot.lane.b32.xlu1 %v1654_v29, %s5649_s10  ;;  %v4602_v29 = vld [vmem:[%s5833_s4 + $0x20] sm:$0xf] }
  0x7a   : > { %1805 = vrot.lane.b32.xlu0 %v1804_v31, %s5648_s7  ;;  %1900 = vrot.lane.b32.xlu1 %v1804_v31, %s5649_s10  ;;  %v837_v31 = vsel %vm270_vm1, %v5868_v17, 0  ;;  %v1093_v17 = vsel %vm270_vm1, %v5886_v22, 0  ;;  %v4618_v22 = vld [vmem:[%s5833_s4 + $0x18] sm:$0xf] }
  0x7e   : > { %2007 = vrot.lane.b32.xlu0 %v2006_v33, %s5648_s7  ;;  %2057 = vrot.lane.b32.xlu1 %v2006_v33, %s5649_s10 }
  0x82   : > { %2165 = vrot.lane.b32.xlu0 %v2164_v35, %s5648_s7  ;;  %2215 = vrot.lane.b32.xlu1 %v2164_v35, %s5649_s10  ;;  %v775_v35 = vld [vmem:[%s5833_s4] sm:$0xf] }
  0x86   : > { %2315 = vrot.lane.b32.xlu0 %v2314_v37, %s5648_s7  ;;  %2410 = vrot.lane.b32.xlu1 %v2314_v37, %s5649_s10  ;;  %v935_v37 = vsel %vm270_vm1, %v5876_v20, 0 }
  0x8a   : > { %2517 = vrot.lane.b32.xlu0 %v2516_v39, %s5648_s7  ;;  %2567 = vrot.lane.b32.xlu1 %v2516_v39, %s5649_s10 }
  0x8e   : > { %2675 = vrot.lane.b32.xlu0 %v2674_v41, %s5648_s7  ;;  %2725 = vrot.lane.b32.xlu1 %v2674_v41, %s5649_s10  ;;  %v4611_v41 = vld [vmem:[%s5833_s4 + $0xc] sm:$0xf] }
  0x92   : > { %2825 = vrot.lane.b32.xlu0 %v2824_v43, %s5648_s7  ;;  %2920 = vrot.lane.b32.xlu1 %v2824_v43, %s5649_s10 }
  0x96   : > { %3027 = vrot.lane.b32.xlu0 %v3026_v45, %s5648_s7  ;;  %3077 = vrot.lane.b32.xlu1 %v3026_v45, %s5649_s10  ;;  %v4622_v45 = vld [vmem:[%s5833_s4 + $0x20] sm:$0xf] }
  0x9a   : > { %3185 = vrot.lane.b32.xlu0 %v3184_v47, %s5648_s7  ;;  %3235 = vrot.lane.b32.xlu1 %v3184_v47, %s5649_s10 }
  0x9e   : > { %3335 = vrot.lane.b32.xlu0 %v3334_v49, %s5648_s7  ;;  %3430 = vrot.lane.b32.xlu1 %v3334_v49, %s5649_s10  ;;  %v1347_v49 = vsel %vm270_vm1, %v5893_v24, 0  ;;  %v1285_v24 = vld [vmem:[%s5833_s4] sm:$0xf] }
  0xa2   : > { %3537 = vrot.lane.b32.xlu0 %v3536_v51, %s5648_s7  ;;  %3587 = vrot.lane.b32.xlu1 %v3536_v51, %s5649_s10  ;;  %v4615_v51 = vld [vmem:[%s5833_s4 + $0x14] sm:$0xf] }
  0xa6   : > { %3695 = vrot.lane.b32.xlu0 %v3694_v53, %s5648_s7  ;;  %3745 = vrot.lane.b32.xlu1 %v3694_v53, %s5649_s10 }
  0xaa   : > { %3845 = vrot.lane.b32.xlu0 %v5473_v54, %s5648_s7  ;;  %3940 = vrot.lane.b32.xlu1 %v5473_v54, %s5649_s10 }
  0xae   : > { %4047 = vrot.lane.b32.xlu0 %v5474_v5, %s5648_s7  ;;  %4097 = vrot.lane.b32.xlu1 %v5474_v5, %s5649_s10  ;;  %v4628_v5 = vld [vmem:[%s5833_s4 + $0x8] sm:$0xf] }
  0xb2   : > { %4205 = vrot.lane.b32.xlu0 %v4204_v25, %s5648_s7  ;;  %4255 = vrot.lane.b32.xlu1 %v4204_v25, %s5649_s10 }
  0xc8   : > { %v265_v55 = vpop.permute.xlu0 %264  ;;  %v473_v56 = vpop.permute.xlu1 %472 }
  0xc9   : > { %v272_v57 = vsel %vm270_vm1, %v265_v55, 0  ;;  %v478_v3 = vsel %vm270_vm1, %v473_v56, 0  ;;  %v1445_v56 = vsel %vm270_vm1, %v5900_v26, 0  ;;  %v4631_v26 = vld [vmem:[%s5833_s4 + $0xc] sm:$0xf] }
  0xca   : > { %4903 = vmatpush3.bf16.msra.mxu0 %v272_v57  ;;  %v4620_v57 = vld [vmem:[%s5833_s4 + $0x1c] sm:$0xf] }
  0xcb   : > { %4914 = vmatprep.subr.bf16.mxu0 %v5646_v6 }
  0xcc   : > { %v363_v59 = vpop.permute.xlu0 %362  ;;  %v524_v60 = vpop.permute.xlu1 %523 }
  0xcd   : > { %v368_v61 = vsel %vm270_vm1, %v363_v59, 0  ;;  %4905 = vmatmul.mubr.msk.bf16.vlgmr.msra.gmra.mxu0 %vm266_vm3, %v4585_v58  ;;  %v529_v62 = vsel %vm270_vm1, %v524_v60, 0 }
  0xce   : > { %4915 = vmatpush3.bf16.msra.mxu0 %v368_v61  ;;  %4916 = vmatprep.mubr.msk.bf16.mxu0 %vm5647_vm2, %v5646_v6 }
  0xcf   : > { %4926 = vmatprep.subr.bf16.mxu0 %v5646_v6  ;;  %4933 = vmatpush3.bf16.msra.mxu1 %v529_v62  ;;  %v4625_v62 = vld [vmem:[%s5833_s4 + $0x4] sm:$0xf] }
  0xd0   : > { %v634_v0 = vpop.permute.xlu0 %633  ;;  %4944 = vmatprep.subr.bf16.mxu1 %v5646_v6  ;;  %v685_v8 = vpop.permute.xlu1 %684 }
  0xd1   : > { %v639_v1 = vsel %vm270_vm1, %v634_v0, 0  ;;  %v690_v18 = vsel %vm270_vm1, %v685_v8, 0 }
  0xd2   : > { %4935 = vmatmul.mubr.msk.bf16.vlgmr.msra.gmra.mxu1 %vm266_vm3, %v4595_v63 }
  0xd3   : > { %4945 = vmatpush3.bf16.msra.mxu1 %v639_v1  ;;  %4946 = vmatprep.mubr.msk.bf16.mxu1 %vm5647_vm2, %v5646_v6  ;;  %v4635_v1 = vld [vmem:[%s5833_s4 + $0x14] sm:$0xf] }
  0xd4   : > { %4956 = vmatprep.subr.bf16.mxu1 %v5646_v6  ;;  %v786_v4 = vpop.permute.xlu0 %785  ;;  %v881_v13 = vpop.permute.xlu1 %880 }
  0xd5   : > { %4917 = vmatmul.mubr.msk.bf16.vlgmr.msra.gmra.mxu0 %vm266_vm3, %v4588_v2  ;;  %v791_v10 = vsel %vm270_vm1, %v786_v4, 0  ;;  %v886_v15 = vsel %vm270_vm1, %v881_v13, 0 }
  0xd6   : > { %4927 = vmatpush3.bf16.msra.mxu0 %v478_v3  ;;  %4928 = vmatprep.mubr.msk.bf16.mxu0 %vm5647_vm2, %v5646_v6 }
  0xd7   : > { %4938 = vmatprep.subr.bf16.mxu0 %v5646_v6 }
  0xd8   : > { %v988_v19 = vpop.permute.xlu0 %987  ;;  %v1038_v33 = vpop.permute.xlu1 %1037 }
  0xd9   : > { %v993_v27 = vsel %vm270_vm1, %v988_v19, 0  ;;  %v1043_v43 = vsel %vm270_vm1, %v1038_v33, 0  ;;  %v1603_v19 = vsel %vm270_vm1, %v5907_v28, 0  ;;  %v4645_v28 = vld [vmem:[%s5833_s4 + $0x4] sm:$0xf] }
  0xda   : > { %4947 = vmatmul.mubr.msk.bf16.vlgmr.msra.gmra.mxu1 %vm266_vm3, %v4600_v7 }
  0xdb   : > { %4957 = vmatpush3.bf16.msra.mxu1 %v791_v10  ;;  %4958 = vmatprep.mubr.msk.bf16.mxu1 %vm5647_vm2, %v5646_v6 }
  0xdc   : > { %4968 = vmatprep.subr.bf16.mxu1 %v5646_v6  ;;  %v1196_v39 = vpop.permute.xlu1 %1195  ;;  %v1146_v47 = vpop.permute.xlu0 %1145 }
  0xdd   : > { %4929 = vmatmul.mubr.msk.bf16.vlgmr.msra.gmra.mxu0 %vm266_vm3, %v4593_v11  ;;  %v1201_v20 = vsel %vm270_vm1, %v1196_v39, 0  ;;  %v1151_v53 = vsel %vm270_vm1, %v1146_v47, 0  ;;  %v1857_v39 = vsel %vm270_vm1, %v5914_v30, 0  ;;  %v2113_v30 = vsel %vm270_vm1, %v5928_v34, 0  ;;  %v4658_v34 = vld [vmem:[%s5833_s4 + $0x18] sm:$0xf] }
  0xde   : > { %4939 = vmatpush3.bf16.msra.mxu0 %v580_v12  ;;  %4940 = vmatprep.mubr.msk.bf16.mxu0 %vm5647_vm2, %v5646_v6  ;;  %v4640_v12 = vld [vmem:[%s5833_s4 + $0x1c] sm:$0xf]  ;;  %v4651_v47 = vld [vmem:[%s5833_s4 + $0xc] sm:$0xf] }
  0xdf   : > { %4950 = vmatprep.subr.bf16.mxu0 %v5646_v6 }
  0xe0   : > { %v1391_v54 = vpop.permute.xlu1 %1390  ;;  %v1296_v55 = vpop.permute.xlu0 %1295 }
  0xe1   : > { %v1301_v58 = vsel %vm270_vm1, %v1296_v55, 0  ;;  %v1396_v63 = vsel %vm270_vm1, %v1391_v54, 0  ;;  %v4655_v54 = vld [vmem:[%s5833_s4 + $0x14] sm:$0xf] }
  0xe2   : > { %4959 = vmatmul.mubr.msk.bf16.vlgmr.msra.gmra.mxu1 %vm266_vm3, %v4605_v14 }
  0xe3   : > { %4969 = vmatpush3.bf16.msra.mxu1 %v886_v15  ;;  %4970 = vmatprep.mubr.msk.bf16.mxu1 %vm5647_vm2, %v5646_v6 }
  0xe4   : > { %4980 = vmatprep.subr.bf16.mxu1 %v5646_v6  ;;  %v1548_v59 = vpop.permute.xlu1 %1547  ;;  %v1498_v60 = vpop.permute.xlu0 %1497 }
  0xe5   : > { %4941 = vmatmul.mubr.msk.bf16.vlgmr.msra.gmra.mxu0 %vm266_vm3, %v4598_v16  ;;  %v1553_v61 = vsel %vm270_vm1, %v1548_v59, 0  ;;  %v1503_v7 = vsel %vm270_vm1, %v1498_v60, 0  ;;  %v4660_v59 = vld [vmem:[%s5833_s4 + $0x1c] sm:$0xf] }
  0xe6   : > { %4951 = vmatpush3.bf16.msra.mxu0 %v690_v18  ;;  %4952 = vmatprep.mubr.msk.bf16.mxu0 %vm5647_vm2, %v5646_v6  ;;  %v4633_v18 = vld [vmem:[%s5833_s4 + $0x10] sm:$0xf] }
  0xe7   : > { %4962 = vmatprep.subr.bf16.mxu0 %v5646_v6 }
  0xe8   : > { %v1656_v0 = vpop.permute.xlu0 %1655  ;;  %v1706_v13 = vpop.permute.xlu1 %1705 }
  0xe9   : > { %v1661_v3 = vsel %vm270_vm1, %v1656_v0, 0 }
  0xea   : > { %4971 = vmatmul.mubr.msk.bf16.vlgmr.msra.gmra.mxu1 %vm266_vm3, %v4608_v23 }
  0xeb   : > { %4981 = vmatpush3.bf16.msra.mxu1 %v993_v27  ;;  %4982 = vmatprep.mubr.msk.bf16.mxu1 %vm5647_vm2, %v5646_v6 }
  0xec   : > { %4992 = vmatprep.subr.bf16.mxu1 %v5646_v6  ;;  %v1806_v10 = vpop.permute.xlu0 %1805  ;;  %v1901_v25 = vpop.permute.xlu1 %1900 }
  0xed   : > { %4953 = vmatmul.mubr.msk.bf16.vlgmr.msra.gmra.mxu0 %vm266_vm3, %v4602_v29  ;;  %v1811_v15 = vsel %vm270_vm1, %v1806_v10, 0  ;;  %v1906_v29 = vsel %vm270_vm1, %v1901_v25, 0  ;;  %v4680_v10 = vld [vmem:[%s5833_s4 + $0x1c] sm:$0xf] }
  0xee   : > { %4963 = vmatpush3.bf16.msra.mxu0 %v837_v31  ;;  %4964 = vmatprep.mubr.msk.bf16.mxu0 %vm5647_vm2, %v5646_v6  ;;  %v4638_v31 = vld [vmem:[%s5833_s4 + $0x18] sm:$0xf] }
  0xef   : > { %4974 = vmatprep.subr.bf16.mxu0 %v5646_v6 }
  0xf0   : > { %v2008_v33 = vpop.permute.xlu0 %2007 }
  0xf2   : > { %4983 = vmatmul.mubr.msk.bf16.vlgmr.msra.gmra.mxu1 %vm266_vm3, %v4613_v9  ;;  %v1711_v9 = vsel %vm270_vm1, %v1706_v13, 0  ;;  %v4673_v13 = vld [vmem:[%s5833_s4 + $0x10] sm:$0xf] }
  0xf3   : > { %4993 = vmatpush3.bf16.msra.mxu1 %v1093_v17  ;;  %4994 = vmatprep.mubr.msk.bf16.mxu1 %vm5647_vm2, %v5646_v6  ;;  %v4648_v17 = vld [vmem:[%s5833_s4 + $0x8] sm:$0xf] }
  0xf4   : > { %5004 = vmatprep.subr.bf16.mxu1 %v5646_v6 }
  0xf5   : > { %4965 = vmatmul.mubr.msk.bf16.vlgmr.msra.gmra.mxu0 %vm266_vm3, %v775_v35  ;;  %v2013_v35 = vsel %vm270_vm1, %v2008_v33, 0 }
  0xf6   : > { %4975 = vmatpush3.bf16.msra.mxu0 %v935_v37  ;;  %4976 = vmatprep.mubr.msk.bf16.mxu0 %vm5647_vm2, %v5646_v6  ;;  %v4642_v37 = vld [vmem:[%s5833_s4 + $0x20] sm:$0xf] }
  0xf7   : > { %4986 = vmatprep.subr.bf16.mxu0 %v5646_v6 }
  0xfa   : > { %4995 = vmatmul.mubr.msk.bf16.vlgmr.msra.gmra.mxu1 %vm266_vm3, %v4618_v22  ;;  %v4653_v22 = vld [vmem:[%s5833_s4 + $0x10] sm:$0xf] }
  0xfb   : > { %5005 = vmatpush3.bf16.msra.mxu1 %v1201_v20  ;;  %5006 = vmatprep.mubr.msk.bf16.mxu1 %vm5647_vm2, %v5646_v6  ;;  %v2058_v20 = vpop.permute.xlu1 %2057 }
  0xfc   : > { %5016 = vmatprep.subr.bf16.mxu1 %v5646_v6 }
  0xfd   : > { %4977 = vmatmul.mubr.msk.bf16.vlgmr.msra.gmra.mxu0 %vm266_vm3, %v4611_v41  ;;  %v1795_v41 = vld [vmem:[%s5833_s4] sm:$0xf] }
  0xfe   : > { %4987 = vmatpush3.bf16.msra.mxu0 %v1043_v43  ;;  %4988 = vmatprep.mubr.msk.bf16.mxu0 %vm5647_vm2, %v5646_v6  ;;  %v1955_v43 = vsel %vm270_vm1, %v5921_v32, 0 }
  0xff   : > { %4998 = vmatprep.subr.bf16.mxu0 %v5646_v6 }
 0x102   : > { %5007 = vmatmul.mubr.msk.bf16.vlgmr.msra.gmra.mxu1 %vm266_vm3, %v4622_v45  ;;  %v2216_v45 = vpop.permute.xlu1 %2215 }
 0x103   : > { %5017 = vmatpush3.bf16.msra.mxu1 %v1347_v49  ;;  %5018 = vmatprep.mubr.msk.bf16.mxu1 %vm5647_vm2, %v5646_v6  ;;  %v2221_v32 = vsel %vm270_vm1, %v2216_v45, 0  ;;  %v2063_v49 = vsel %vm270_vm1, %v2058_v20, 0  ;;  %v3387_v45 = vsel %vm270_vm1, %v5979_v48, 0 }
 0x104   : > { %5028 = vmatprep.subr.bf16.mxu1 %v5646_v6 }
 0x105   : > { %4989 = vmatmul.mubr.msk.bf16.vlgmr.msra.gmra.mxu0 %vm266_vm3, %v4615_v51  ;;  %v4662_v51 = vld [vmem:[%s5833_s4 + $0x20] sm:$0xf] }
 0x106   : > { %4999 = vmatpush3.bf16.msra.mxu0 %v1151_v53  ;;  %5000 = vmatprep.mubr.msk.bf16.mxu0 %vm5647_vm2, %v5646_v6  ;;  %v2166_v53 = vpop.permute.xlu0 %2165 }
 0x107   : > { %5010 = vmatprep.subr.bf16.mxu0 %v5646_v6  ;;  %v2171_v55 = vsel %vm270_vm1, %v2166_v53, 0 }
 0x10a   : > { %5019 = vmatmul.mubr.msk.bf16.vlgmr.msra.gmra.mxu1 %vm266_vm3, %v1285_v24  ;;  %v2367_v24 = vsel %vm270_vm1, %v5935_v36, 0  ;;  %v2305_v36 = vld [vmem:[%s5833_s4] sm:$0xf] }
 0x10b   : > { %5029 = vmatpush3.bf16.msra.mxu1 %v1445_v56  ;;  %5030 = vmatprep.mubr.msk.bf16.mxu1 %vm5647_vm2, %v5646_v6  ;;  %v2411_v56 = vpop.permute.xlu1 %2410 }
 0x10c   : > { %5040 = vmatprep.subr.bf16.mxu1 %v5646_v6  ;;  %v2416_v0 = vsel %vm270_vm1, %v2411_v56, 0 }
 0x10d   : > { %5001 = vmatmul.mubr.msk.bf16.vlgmr.msra.gmra.mxu0 %vm266_vm3, %v4620_v57  ;;  %v2316_v57 = vpop.permute.xlu0 %2315 }
 0x10e   : > { %5011 = vmatpush3.bf16.msra.mxu0 %v1301_v58  ;;  %5012 = vmatprep.mubr.msk.bf16.mxu0 %vm5647_vm2, %v5646_v6  ;;  %v2465_v58 = vsel %vm270_vm1, %v5942_v38, 0  ;;  %v4671_v38 = vld [vmem:[%s5833_s4 + $0xc] sm:$0xf] }
 0x10f   : > { %5022 = vmatprep.subr.bf16.mxu0 %v5646_v6  ;;  %v2568_v60 = vpop.permute.xlu1 %2567 }
 0x112   : > { %5031 = vmatmul.mubr.msk.bf16.vlgmr.msra.gmra.mxu1 %vm266_vm3, %v4631_v26  ;;  %v2321_v26 = vsel %vm270_vm1, %v2316_v57, 0 }
 0x113   : > { %5041 = vmatpush3.bf16.msra.mxu1 %v1553_v61  ;;  %5042 = vmatprep.mubr.msk.bf16.mxu1 %vm5647_vm2, %v5646_v6  ;;  %v6137_v2 = vpop.f32.mrf.mxu1  ;;  %v2518_v61 = vpop.permute.xlu0 %2517 }
 0x114   : > { %5052 = vmatprep.subr.bf16.mxu1 %v5646_v6 }
 0x115   : > { %5013 = vmatmul.mubr.msk.bf16.vlgmr.msra.gmra.mxu0 %vm266_vm3, %v4625_v62  ;;  %v4912_v4 = vpop.f32.mrf.mxu1  ;;  %v2573_v62 = vsel %vm270_vm1, %v2568_v60, 0  ;;  %v4700_v60 = vld [vmem:[%s5833_s4 + $0x1c] sm:$0xf] }
 0x116   : > { %5023 = vmatpush3.bf16.msra.mxu0 %v1396_v63  ;;  %5024 = vmatprep.mubr.msk.bf16.mxu0 %vm5647_vm2, %v5646_v6  ;;  %v4665_v63 = vld [vmem:[%s5833_s4 + $0x4] sm:$0xf] }
 0x117   : > { %5034 = vmatprep.subr.bf16.mxu0 %v5646_v6  ;;  %v357_v8 = vpop.f32.mrf.mxu1 }
 0x119   : > { %v4913_v11 = vpop.f32.mrf.mxu1 }
 0x11a   : > { %5043 = vmatmul.mubr.msk.bf16.vlgmr.msra.gmra.mxu1 %vm266_vm3, %v4635_v1  ;;  %v2676_v1 = vpop.permute.xlu0 %2675  ;;  %v2726_v11 = vpop.permute.xlu1 %2725 }
 0x11b   : > { %5053 = vmatpush3.bf16.msra.mxu1 %v1661_v3  ;;  %5054 = vmatprep.mubr.msk.bf16.mxu1 %vm5647_vm2, %v5646_v6  ;;  %v6151_v14 = vpop.f32.mrf.mxu1  ;;  %v4675_v3 = vld [vmem:[%s5833_s4 + $0x14] sm:$0xf]  ;;  %v2681_v4 = vsel %vm270_vm1, %v2676_v1, 0 }
 0x11c   : > { %5064 = vmatprep.subr.bf16.mxu1 %v5646_v6 }
 0x11d   : > { %5025 = vmatmul.mubr.msk.bf16.vlgmr.msra.gmra.mxu0 %vm266_vm3, %v4628_v5  ;;  %v4924_v16 = vpop.f32.mrf.mxu1  ;;  %v4668_v5 = vld [vmem:[%s5833_s4 + $0x8] sm:$0xf] }
 0x11e   : > { %5035 = vmatpush3.bf16.msra.mxu0 %v1503_v7  ;;  %5036 = vmatprep.mubr.msk.bf16.mxu0 %vm5647_vm2, %v5646_v6  ;;  %v2523_v7 = vsel %vm270_vm1, %v2518_v61, 0  ;;  %v2826_v8 = vpop.permute.xlu0 %2825  ;;  %v2921_v16 = vpop.permute.xlu1 %2920 }
 0x11f   : > { %5046 = vmatprep.subr.bf16.mxu0 %v5646_v6  ;;  %v458_v23 = vpop.f32.mrf.mxu1 }
 0x120   : > { %v2731_v23 = vsel %vm270_vm1, %v2726_v11, 0 }
 0x121   : > { %v4925_v27 = vpop.f32.mrf.mxu1 }
 0x122   : > { %5055 = vmatmul.mubr.msk.bf16.vlgmr.msra.gmra.mxu1 %vm266_vm3, %v4640_v12  ;;  %v2831_v12 = vsel %vm270_vm1, %v2826_v8, 0  ;;  %v3028_v25 = vpop.permute.xlu0 %3027  ;;  %v4688_v27 = vld [vmem:[%s5833_s4 + $0x8] sm:$0xf]  ;;  %v3078_v33 = vpop.permute.xlu1 %3077 }
 0x123   : > { %5065 = vmatpush3.bf16.msra.mxu1 %v1811_v15  ;;  %5066 = vmatprep.mubr.msk.bf16.mxu1 %vm5647_vm2, %v5646_v6  ;;  %v2623_v15 = vsel %vm270_vm1, %v5949_v40, 0  ;;  %v2926_v40 = vsel %vm270_vm1, %v2921_v16, 0 }
 0x124   : > { %5076 = vmatprep.subr.bf16.mxu1 %v5646_v6 }
 0x125   : > { %5037 = vmatmul.mubr.msk.bf16.vlgmr.msra.gmra.mxu0 %vm266_vm3, %v4633_v18  ;;  %v4685_v18 = vld [vmem:[%s5833_s4 + $0x4] sm:$0xf] }
 0x126   : > { %5047 = vmatpush3.bf16.msra.mxu0 %v1603_v19  ;;  %5048 = vmatprep.mubr.msk.bf16.mxu0 %vm5647_vm2, %v5646_v6  ;;  %v4678_v19 = vld [vmem:[%s5833_s4 + $0x18] sm:$0xf] }
 0x127   : > { %5058 = vmatprep.subr.bf16.mxu0 %v5646_v6 }
 0x12a   : > { %5067 = vmatmul.mubr.msk.bf16.vlgmr.msra.gmra.mxu1 %vm266_vm3, %v4645_v28  ;;  %v3033_v28 = vsel %vm270_vm1, %v3028_v25, 0 }
 0x12b   : > { %5077 = vmatpush3.bf16.msra.mxu1 %v1906_v29  ;;  %5078 = vmatprep.mubr.msk.bf16.mxu1 %vm5647_vm2, %v5646_v6  ;;  %v4682_v29 = vld [vmem:[%s5833_s4 + $0x20] sm:$0xf] }
 0x12c   : > { %5088 = vmatprep.subr.bf16.mxu1 %v5646_v6 }
 0x12d   : > { %5049 = vmatmul.mubr.msk.bf16.vlgmr.msra.gmra.mxu0 %vm266_vm3, %v4638_v31  ;;  %v2877_v31 = vsel %vm270_vm1, %v5956_v42, 0  ;;  %v3133_v42 = vsel %vm270_vm1, %v5972_v46, 0  ;;  %v4698_v46 = vld [vmem:[%s5833_s4 + $0x18] sm:$0xf] }
 0x12e   : > { %5059 = vmatpush3.bf16.msra.mxu0 %v1711_v9  ;;  %5060 = vmatprep.mubr.msk.bf16.mxu0 %vm5647_vm2, %v5646_v6  ;;  %v4693_v9 = vld [vmem:[%s5833_s4 + $0x10] sm:$0xf] }
 0x12f   : > { %5070 = vmatprep.subr.bf16.mxu0 %v5646_v6 }
 0x132   : > { %5079 = vmatmul.mubr.msk.bf16.vlgmr.msra.gmra.mxu1 %vm266_vm3, %v4648_v17  ;;  %v2815_v17 = vld [vmem:[%s5833_s4] sm:$0xf] }
 0x133   : > { %5089 = vmatpush3.bf16.msra.mxu1 %v2013_v35  ;;  %5090 = vmatprep.mubr.msk.bf16.mxu1 %vm5647_vm2, %v5646_v6  ;;  %v2975_v35 = vsel %vm270_vm1, %v5963_v44, 0  ;;  %v4691_v44 = vld [vmem:[%s5833_s4 + $0xc] sm:$0xf] }
 0x134   : > { %5100 = vmatprep.subr.bf16.mxu1 %v5646_v6 }
 0x135   : > { %5061 = vmatmul.mubr.msk.bf16.vlgmr.msra.gmra.mxu0 %vm266_vm3, %v4642_v37  ;;  %v3236_v37 = vpop.permute.xlu1 %3235 }
 0x136   : > { %5071 = vmatpush3.bf16.msra.mxu0 %v1857_v39  ;;  %5072 = vmatprep.mubr.msk.bf16.mxu0 %vm5647_vm2, %v5646_v6  ;;  %v3241_v39 = vsel %vm270_vm1, %v3236_v37, 0 }
 0x137   : > { %5082 = vmatprep.subr.bf16.mxu0 %v5646_v6 }
 0x13a   : > { %5091 = vmatmul.mubr.msk.bf16.vlgmr.msra.gmra.mxu1 %vm266_vm3, %v4653_v22  ;;  %v3083_v22 = vsel %vm270_vm1, %v3078_v33, 0 }
 0x13b   : > { %5101 = vmatpush3.bf16.msra.mxu1 %v2113_v30  ;;  %5102 = vmatprep.mubr.msk.bf16.mxu1 %vm5647_vm2, %v5646_v6 }
 0x13c   : > { %5112 = vmatprep.subr.bf16.mxu1 %v5646_v6 }
 0x13d   : > { %5073 = vmatmul.mubr.msk.bf16.vlgmr.msra.gmra.mxu0 %vm266_vm3, %v1795_v41  ;;  %v4702_v41 = vld [vmem:[%s5833_s4 + $0x20] sm:$0xf] }
 0x13e   : > { %5083 = vmatpush3.bf16.msra.mxu0 %v1955_v43  ;;  %5084 = vmatprep.mubr.msk.bf16.mxu0 %vm5647_vm2, %v5646_v6  ;;  %v3186_v43 = vpop.permute.xlu0 %3185 }
 0x13f   : > { %5094 = vmatprep.subr.bf16.mxu0 %v5646_v6 }
 0x142   : > { %5103 = vmatmul.mubr.msk.bf16.vlgmr.msra.gmra.mxu1 %vm266_vm3, %v4658_v34  ;;  %v3336_v56 = vpop.permute.xlu0 %3335 }
 0x143   : > { %5113 = vmatpush3.bf16.msra.mxu1 %v2221_v32  ;;  %5114 = vmatprep.mubr.msk.bf16.mxu1 %vm5647_vm2, %v5646_v6  ;;  %v4695_v32 = vld [vmem:[%s5833_s4 + $0x14] sm:$0xf] }
 0x144   : > { %5124 = vmatprep.subr.bf16.mxu1 %v5646_v6 }
 0x145   : > { %5085 = vmatmul.mubr.msk.bf16.vlgmr.msra.gmra.mxu0 %vm266_vm3, %v4651_v47 }
 0x146   : > { %5095 = vmatpush3.bf16.msra.mxu0 %v2063_v49  ;;  %5096 = vmatprep.mubr.msk.bf16.mxu0 %vm5647_vm2, %v5646_v6 }
 0x147   : > { %5106 = vmatprep.subr.bf16.mxu0 %v5646_v6 }
 0x14a   : > { %5115 = vmatmul.mubr.msk.bf16.vlgmr.msra.gmra.mxu1 %vm266_vm3, %v4662_v51  ;;  %v3191_v51 = vsel %vm270_vm1, %v3186_v43, 0 }
 0x14b   : > { %5125 = vmatpush3.bf16.msra.mxu1 %v2367_v24  ;;  %5126 = vmatprep.mubr.msk.bf16.mxu1 %vm5647_vm2, %v5646_v6 }
 0x14c   : > { %5136 = vmatprep.subr.bf16.mxu1 %v5646_v6 }
 0x14d   : > { %5097 = vmatmul.mubr.msk.bf16.vlgmr.msra.gmra.mxu0 %vm266_vm3, %v4655_v54 }
 0x14e   : > { %5107 = vmatpush3.bf16.msra.mxu0 %v2171_v55  ;;  %5108 = vmatprep.mubr.msk.bf16.mxu0 %vm5647_vm2, %v5646_v6  ;;  %v3325_v55 = vld [vmem:[%s5833_s4] sm:$0xf] }
 0x14f   : > { %5118 = vmatprep.subr.bf16.mxu0 %v5646_v6 }
 0x152   : > { %5127 = vmatmul.mubr.msk.bf16.vlgmr.msra.gmra.mxu1 %vm266_vm3, %v2305_v36  ;;  %v3431_v36 = vpop.permute.xlu1 %3430 }
 0x153   : > { %5137 = vmatpush3.bf16.msra.mxu1 %v2465_v58  ;;  %5138 = vmatprep.mubr.msk.bf16.mxu1 %vm5647_vm2, %v5646_v6  ;;  %v3485_v58 = vsel %vm270_vm1, %v5986_v50, 0 }
 0x154   : > { %5148 = vmatprep.subr.bf16.mxu1 %v5646_v6 }
 0x155   : > { %5109 = vmatmul.mubr.msk.bf16.vlgmr.msra.gmra.mxu0 %vm266_vm3, %v4660_v59 }
 0x156   : > { %5119 = vmatpush3.bf16.msra.mxu0 %v2321_v26  ;;  %5120 = vmatprep.mubr.msk.bf16.mxu0 %vm5647_vm2, %v5646_v6 }
 0x157   : > { %5130 = vmatprep.subr.bf16.mxu0 %v5646_v6 }
 0x15a   : > { %5139 = vmatmul.mubr.msk.bf16.vlgmr.msra.gmra.mxu1 %vm266_vm3, %v4671_v38 }
 0x15b   : > { %5149 = vmatpush3.bf16.msra.mxu1 %v2573_v62  ;;  %5150 = vmatprep.mubr.msk.bf16.mxu1 %vm5647_vm2, %v5646_v6  ;;  %v3341_v62 = vsel %vm270_vm1, %v3336_v56, 0 }
 0x15c   : > { %5160 = vmatprep.subr.bf16.mxu1 %v5646_v6 }
 0x15d   : > { %5121 = vmatmul.mubr.msk.bf16.vlgmr.msra.gmra.mxu0 %vm266_vm3, %v4665_v63 }
 0x15e   : > { %5131 = vmatpush3.bf16.msra.mxu0 %v2416_v0  ;;  %5132 = vmatprep.mubr.msk.bf16.mxu0 %vm5647_vm2, %v5646_v6 }
 0x15f   : > { %5142 = vmatprep.subr.bf16.mxu0 %v5646_v6 }
 0x162   : > { %5151 = vmatmul.mubr.msk.bf16.vlgmr.msra.gmra.mxu1 %vm266_vm3, %v4675_v3 }
 0x163   : > { %5161 = vmatpush3.bf16.msra.mxu1 %v2681_v4  ;;  %5162 = vmatprep.mubr.msk.bf16.mxu1 %vm5647_vm2, %v5646_v6  ;;  %v4711_v4 = vld [vmem:[%s5833_s4 + $0xc] sm:$0xf] }
 0x164   : > { %5172 = vmatprep.subr.bf16.mxu1 %v5646_v6 }
 0x165   : > { %5133 = vmatmul.mubr.msk.bf16.vlgmr.msra.gmra.mxu0 %vm266_vm3, %v4668_v5  ;;  %v3538_v5 = vpop.permute.xlu0 %3537 }
 0x166   : > { %5143 = vmatpush3.bf16.msra.mxu0 %v2523_v7  ;;  %5144 = vmatprep.mubr.msk.bf16.mxu0 %vm5647_vm2, %v5646_v6  ;;  %v3543_v37 = vsel %vm270_vm1, %v3538_v5, 0 }
 0x167   : > { %5154 = vmatprep.subr.bf16.mxu0 %v5646_v6 }
 0x16a   : > { %5163 = vmatmul.mubr.msk.bf16.vlgmr.msra.gmra.mxu1 %vm266_vm3, %v4680_v10 }
 0x16b   : > { %5173 = vmatpush3.bf16.msra.mxu1 %v2831_v12  ;;  %5174 = vmatprep.mubr.msk.bf16.mxu1 %vm5647_vm2, %v5646_v6 }
 0x16c   : > { %5184 = vmatprep.subr.bf16.mxu1 %v5646_v6 }
 0x16d   : > { %5145 = vmatmul.mubr.msk.bf16.vlgmr.msra.gmra.mxu0 %vm266_vm3, %v4673_v13  ;;  %v4705_v13 = vld [vmem:[%s5833_s4 + $0x4] sm:$0xf] }
 0x16e   : > { %5155 = vmatpush3.bf16.msra.mxu0 %v2623_v15  ;;  %5156 = vmatprep.mubr.msk.bf16.mxu0 %vm5647_vm2, %v5646_v6 }
 0x16f   : > { %5166 = vmatprep.subr.bf16.mxu0 %v5646_v6 }
 0x172   : > { %5175 = vmatmul.mubr.msk.bf16.vlgmr.msra.gmra.mxu1 %vm266_vm3, %v4685_v18  ;;  %v3436_v18 = vsel %vm270_vm1, %v3431_v36, 0 }
 0x173   : > { %5185 = vmatpush3.bf16.msra.mxu1 %v2926_v40  ;;  %5186 = vmatprep.mubr.msk.bf16.mxu1 %vm5647_vm2, %v5646_v6 }
 0x174   : > { %5196 = vmatprep.subr.bf16.mxu1 %v5646_v6 }
 0x175   : > { %5157 = vmatmul.mubr.msk.bf16.vlgmr.msra.gmra.mxu0 %vm266_vm3, %v4678_v19  ;;  %v3696_v19 = vpop.permute.xlu0 %3695 }
 0x176   : > { %5167 = vmatpush3.bf16.msra.mxu0 %v2731_v23  ;;  %5168 = vmatprep.mubr.msk.bf16.mxu0 %vm5647_vm2, %v5646_v6 }
 0x177   : > { %5178 = vmatprep.subr.bf16.mxu0 %v5646_v6 }
 0x17a   : > { %5187 = vmatmul.mubr.msk.bf16.vlgmr.msra.gmra.mxu1 %vm266_vm3, %v4688_v27 }
 0x17b   : > { %5197 = vmatpush3.bf16.msra.mxu1 %v3033_v28  ;;  %5198 = vmatprep.mubr.msk.bf16.mxu1 %vm5647_vm2, %v5646_v6  ;;  %v4715_v28 = vld [vmem:[%s5833_s4 + $0x14] sm:$0xf] }
 0x17c   : > { %5208 = vmatprep.subr.bf16.mxu1 %v5646_v6 }
 0x17d   : > { %5169 = vmatmul.mubr.msk.bf16.vlgmr.msra.gmra.mxu0 %vm266_vm3, %v4682_v29 }
 0x17e   : > { %5179 = vmatpush3.bf16.msra.mxu0 %v2877_v31  ;;  %5180 = vmatprep.mubr.msk.bf16.mxu0 %vm5647_vm2, %v5646_v6 }
 0x17f   : > { %5190 = vmatprep.subr.bf16.mxu0 %v5646_v6 }
 0x182   : > { %5199 = vmatmul.mubr.msk.bf16.vlgmr.msra.gmra.mxu1 %vm266_vm3, %v4693_v9  ;;  %v3701_v9 = vsel %vm270_vm1, %v3696_v19, 0  ;;  %v4718_v19 = vld [vmem:[%s5833_s4 + $0x18] sm:$0xf] }
 0x183   : > { %5209 = vmatpush3.bf16.msra.mxu1 %v3133_v42  ;;  %5210 = vmatprep.mubr.msk.bf16.mxu1 %vm5647_vm2, %v5646_v6  ;;  %v4708_v42 = vld [vmem:[%s5833_s4 + $0x8] sm:$0xf] }
 0x184   : > { %5220 = vmatprep.subr.bf16.mxu1 %v5646_v6 }
 0x185   : > { %5181 = vmatmul.mubr.msk.bf16.vlgmr.msra.gmra.mxu0 %vm266_vm3, %v2815_v17 }
 0x186   : > { %5191 = vmatpush3.bf16.msra.mxu0 %v2975_v35  ;;  %5192 = vmatprep.mubr.msk.bf16.mxu0 %vm5647_vm2, %v5646_v6 }
 0x187   : > { %5202 = vmatprep.subr.bf16.mxu0 %v5646_v6 }
 0x18a   : > { %5211 = vmatmul.mubr.msk.bf16.vlgmr.msra.gmra.mxu1 %vm266_vm3, %v4698_v46 }
 0x18b   : > { %5221 = vmatpush3.bf16.msra.mxu1 %v3241_v39  ;;  %5222 = vmatprep.mubr.msk.bf16.mxu1 %vm5647_vm2, %v5646_v6 }
 0x18c   : > { %5232 = vmatprep.subr.bf16.mxu1 %v5646_v6 }
 0x18d   : > { %v308_v20 = vpop.f32.mrf.mxu0  ;;  %5193 = vmatmul.mubr.msk.bf16.vlgmr.msra.gmra.mxu0 %vm266_vm3, %v4691_v44  ;;  %v3846_v44 = vpop.permute.xlu0 %3845 }
 0x18e   : > { %5203 = vmatpush3.bf16.msra.mxu0 %v3083_v22  ;;  %5204 = vmatprep.mubr.msk.bf16.mxu0 %vm5647_vm2, %v5646_v6  ;;  %v355_v26 = vadd.f32 %v6137_v2, %v308_v20  ;;  %v3588_v2 = vpop.permute.xlu1 %3587  ;;  %v733_v20 = vld [vmem:[#allocation2] sm:$0x1] }
 0x18f   : > { %v4906_v30 = vpop.f32.mrf.mxu0  ;;  %5214 = vmatprep.subr.bf16.mxu0 %v5646_v6  ;;  %v3593_v10 = vsel %vm270_vm1, %v3588_v2, 0  ;;  %v4713_v2 = vld [vmem:[%s5833_s4 + $0x10] sm:$0xf] }
 0x190   : > { %v734_v30 = vld [vmem:[#allocation2 + $0x8] sm:$0x1] }
 0x191   : > { %v311_v34 = vpop.f32.mrf.mxu0 }
 0x192   : > { %v565_v47 = vpop.f32.mrf.mxu1  ;;  %5223 = vmatmul.mubr.msk.bf16.vlgmr.msra.gmra.mxu1 %vm266_vm3, %v4702_v41  ;;  %v735_v41 = vld [vmem:[#allocation2 + $0x10] sm:$0x1]  ;;  %v737_v34 = vld [vmem:[#allocation2 + $0x20] sm:$0x1] }
 0x193   : > { %v4907_v49 = vpop.f32.mrf.mxu0  ;;  %5233 = vmatpush3.bf16.msra.mxu1 %v3387_v45  ;;  %5234 = vmatprep.mubr.msk.bf16.mxu1 %vm5647_vm2, %v5646_v6  ;;  %v736_v45 = vld [vmem:[#allocation2 + $0x18] sm:$0x1] }
 0x194   : > { %v4936_v53 = vpop.f32.mrf.mxu1  ;;  %5244 = vmatprep.subr.bf16.mxu1 %v5646_v6  ;;  %v739_v49 = vld [vmem:[#allocation2 + $0x30] sm:$0x1] }
 0x195   : > { %v404_v24 = vpop.f32.mrf.mxu0  ;;  %5205 = vmatmul.mubr.msk.bf16.vlgmr.msra.gmra.mxu0 %vm266_vm3, %v4695_v32  ;;  %v738_v32 = vld [vmem:[#allocation2 + $0x28] sm:$0x1]  ;;  %v4720_v53 = vld [vmem:[%s5833_s4 + $0x1c] sm:$0xf] }
 0x196   : > { %5215 = vmatpush3.bf16.msra.mxu0 %v3191_v51  ;;  %5216 = vmatprep.mubr.msk.bf16.mxu0 %vm5647_vm2, %v5646_v6  ;;  %v568_v48 = vpop.f32.mrf.mxu1  ;;  %v410_v63 = vadd.f32 %v404_v24, %v355_v26  ;;  %v3746_v24 = vpop.permute.xlu1 %3745 }
 0x197   : > { %v4918_v54 = vpop.f32.mrf.mxu0  ;;  %5226 = vmatprep.subr.bf16.mxu0 %v5646_v6  ;;  %v3851_v48 = vsel %vm270_vm1, %v3846_v44, 0 }
 0x198   : > { %v4937_v57 = vpop.f32.mrf.mxu1  ;;  %v461_v7 = vadd.f32 %v6151_v14, %v410_v63  ;;  %v740_v54 = vld [vmem:[#allocation2 + $0x38] sm:$0x1] }
 0x199   : > { %v407_v59 = vpop.f32.mrf.mxu0 }
 0x19a   : > { %v675_v38 = vpop.f32.mrf.mxu1  ;;  %5235 = vmatmul.mubr.msk.bf16.vlgmr.msra.gmra.mxu1 %vm266_vm3, %v3325_v55 }
 0x19b   : > { %v4919_v61 = vpop.f32.mrf.mxu0  ;;  %5245 = vmatpush3.bf16.msra.mxu1 %v3485_v58  ;;  %5246 = vmatprep.mubr.msk.bf16.mxu1 %vm5647_vm2, %v5646_v6 }
 0x19c   : > { %v4948_v0 = vpop.f32.mrf.mxu1  ;;  %5256 = vmatprep.subr.bf16.mxu1 %v5646_v6 }
 0x19d   : > { %v514_v50 = vpop.f32.mrf.mxu0  ;;  %5217 = vmatmul.mubr.msk.bf16.vlgmr.msra.gmra.mxu0 %vm266_vm3, %v4700_v60 }
 0x19e   : > { %5227 = vmatpush3.bf16.msra.mxu0 %v3341_v62  ;;  %5228 = vmatprep.mubr.msk.bf16.mxu0 %vm5647_vm2, %v5646_v6  ;;  %v678_v1 = vpop.f32.mrf.mxu1  ;;  %v520_v12 = vadd.f32 %v514_v50, %v461_v7 }
 0x19f   : > { %v4930_v3 = vpop.f32.mrf.mxu0  ;;  %5238 = vmatprep.subr.bf16.mxu0 %v5646_v6 }
 0x1a0   : > { %v4949_v8 = vpop.f32.mrf.mxu1  ;;  %v571_v23 = vadd.f32 %v565_v47, %v520_v12 }
 0x1a1   : > { %v517_v11 = vpop.f32.mrf.mxu0  ;;  %v3643_v8 = vsel %vm270_vm1, %v5993_v52, 0 }
 0x1a2   : > { %v6361_v15 = vpop.f32.mrf.mxu1  ;;  %5247 = vmatmul.mubr.msk.bf16.vlgmr.msra.gmra.mxu1 %vm266_vm3, %v4711_v4  ;;  %v3941_v11 = vpop.permute.xlu1 %3940 }
 0x1a3   : > { %v4931_v16 = vpop.f32.mrf.mxu0  ;;  %5257 = vmatpush3.bf16.msra.mxu1 %v3593_v10  ;;  %5258 = vmatprep.mubr.msk.bf16.mxu1 %vm5647_vm2, %v5646_v6 }
 0x1a4   : > { %v4960_v40 = vpop.f32.mrf.mxu1  ;;  %5268 = vmatprep.subr.bf16.mxu1 %v5646_v6  ;;  %v4725_v16 = vld [vmem:[%s5833_s4 + $0x4] sm:$0xf] }
 0x1a5   : > { %v616_v14 = vpop.f32.mrf.mxu0  ;;  %5229 = vmatmul.mubr.msk.bf16.vlgmr.msra.gmra.mxu0 %vm266_vm3, %v4705_v13  ;;  %v3946_v40 = vsel %vm270_vm1, %v3941_v11, 0 }
 0x1a6   : > { %5239 = vmatpush3.bf16.msra.mxu0 %v3436_v18  ;;  %5240 = vmatprep.mubr.msk.bf16.mxu0 %vm5647_vm2, %v5646_v6  ;;  %v830_v25 = vpop.f32.mrf.mxu1  ;;  %v622_v29 = vadd.f32 %v616_v14, %v571_v23 }
 0x1a7   : > { %v4942_v27 = vpop.f32.mrf.mxu0  ;;  %5250 = vmatprep.subr.bf16.mxu0 %v5646_v6 }
 0x1a8   : > { %v4961_v31 = vpop.f32.mrf.mxu1  ;;  %v681_v46 = vadd.f32 %v675_v38, %v622_v29  ;;  %v3751_v27 = vsel %vm270_vm1, %v3746_v24, 0 }
 0x1a9   : > { %v619_v33 = vpop.f32.mrf.mxu0 }
 0x1aa   : > { %v6375_v17 = vpop.f32.mrf.mxu1  ;;  %5259 = vmatmul.mubr.msk.bf16.vlgmr.msra.gmra.mxu1 %vm266_vm3, %v4715_v28 }
 0x1ab   : > { %v4943_v35 = vpop.f32.mrf.mxu0  ;;  %5269 = vmatpush3.bf16.msra.mxu1 %v3701_v9  ;;  %5270 = vmatprep.mubr.msk.bf16.mxu1 %vm5647_vm2, %v5646_v6  ;;  %v4048_v9 = vpop.permute.xlu0 %4047 }
 0x1ac   : > { %v4972_v39 = vpop.f32.mrf.mxu1  ;;  %5280 = vmatprep.subr.bf16.mxu1 %v5646_v6  ;;  %v4728_v35 = vld [vmem:[%s5833_s4 + $0x8] sm:$0xf] }
 0x1ad   : > { %v726_v22 = vpop.f32.mrf.mxu0  ;;  %5241 = vmatmul.mubr.msk.bf16.vlgmr.msra.gmra.mxu0 %vm266_vm3, %v4708_v42 }
 0x1ae   : > { %v732_v43 = vadd.f32 %v726_v22, %v681_v46  ;;  %5251 = vmatpush3.bf16.msra.mxu0 %v3543_v37  ;;  %5252 = vmatprep.mubr.msk.bf16.mxu0 %vm5647_vm2, %v5646_v6  ;;  %v925_v47 = vpop.f32.mrf.mxu1  ;;  %v4053_v46 = vsel %vm270_vm1, %v4048_v9, 0  ;;  %v4722_v22 = vld [vmem:[%s5833_s4 + $0x20] sm:$0xf] }
 0x1af   : > { %v4954_v51 = vpop.f32.mrf.mxu0  ;;  %5262 = vmatprep.subr.bf16.mxu0 %v5646_v6 }
 0x1b0   : > { %v742_v55 = vrot.slane %v732_v43, 1  ;;  %v743_v36 = vrot.slane %v732_v43, 2  ;;  %v744_v56 = vrot.slane %v732_v43, 3  ;;  %v745_v57 = vrot.slane %v732_v43, 4  ;;  %v4973_v58 = vpop.f32.mrf.mxu1  ;;  %v4098_v51 = vpop.permute.xlu1 %4097 }
 0x1b1   : > { %v746_v59 = vrot.slane %v732_v43, 5  ;;  %v747_v26 = vrot.slane %v732_v43, 6  ;;  %v748_v60 = vrot.slane %v732_v43, 7  ;;  %v757_v38 = vadd.f32 %v733_v20, %v732_v43  ;;  %v729_v61 = vpop.f32.mrf.mxu0 }
 0x1b2   : > { %v758_v62 = vadd.f32 %v742_v55, %v734_v30  ;;  %v759_v63 = vadd.f32 %v743_v36, %v735_v41  ;;  %v760_v0 = vadd.f32 %v744_v56, %v736_v45  ;;  %v761_v50 = vadd.f32 %v745_v57, %v737_v34  ;;  %v6389_v1 = vpop.f32.mrf.mxu1  ;;  %5271 = vmatmul.mubr.msk.bf16.vlgmr.msra.gmra.mxu1 %vm266_vm3, %v4720_v53  ;;  %v5469_v41 = vld [vmem:[%s5819_s23 + $0xe] sm:$0x3]  ;;  %v5470_v57 = vld [vmem:[%s5819_s23 + $0x10] sm:$0x3]  ;;  %v1244_v61 = vld [vmem:[#allocation2 + $0x1] sm:$0x1] }
 0x1b3   : > { %v762_v3 = vadd.f32 %v746_v59, %v738_v32  ;;  %v763_v4 = vadd.f32 %v747_v26, %v739_v49  ;;  %v764_v5 = vadd.f32 %v748_v60, %v740_v54  ;;  %766 = vst.msk [vmem:[#allocation2] sm:$0x1] %vm765_vm4, %v757_v38  ;;  %v4955_v7 = vpop.f32.mrf.mxu0  ;;  %5281 = vmatpush3.bf16.msra.mxu1 %v3851_v48  ;;  %v3897_v43 = vsel %vm270_vm1, %v5469_v41, 0  ;;  %v4733_v49 = vld [vmem:[%s5833_s4 + $0x10] sm:$0xf] }
 0x1b4   : > { %5282 = vmatprep.mubr.msk.bf16.mxu1 %vm5647_vm2, %v5646_v6  ;;  %767 = vst.msk [vmem:[#allocation2 + $0x8] sm:$0x1] %vm765_vm4, %v758_v62  ;;  %768 = vst.msk [vmem:[#allocation2 + $0x10] sm:$0x1] %vm765_vm4, %v759_v63  ;;  %v4984_v10 = vpop.f32.mrf.mxu1  ;;  %5292 = vmatprep.subr.bf16.mxu1 %v5646_v6  ;;  %v4153_v48 = vsel %vm270_vm1, %v6052_v21, 0  ;;  %v3995_v58 = vsel %vm270_vm1, %v5470_v57, 0  ;;  %v4256_v60 = vpop.permute.xlu1 %4255 }
 0x1b5   : > { %769 = vst.msk [vmem:[#allocation2 + $0x18] sm:$0x1] %vm765_vm4, %v760_v0  ;;  %770 = vst.msk [vmem:[#allocation2 + $0x20] sm:$0x1] %vm765_vm4, %v761_v50  ;;  %v873_v52 = vpop.f32.mrf.mxu0  ;;  %5253 = vmatmul.mubr.msk.bf16.vlgmr.msra.gmra.mxu0 %vm266_vm3, %v4713_v2  ;;  %v3835_v55 = vld [vmem:[%s5833_s4] sm:$0xf] }
 0x1b6   : > { %771 = vst.msk [vmem:[#allocation2 + $0x28] sm:$0x1] %vm765_vm4, %v762_v3  ;;  %772 = vst.msk [vmem:[#allocation2 + $0x30] sm:$0x1] %vm765_vm4, %v763_v4  ;;  %5263 = vmatpush3.bf16.msra.mxu0 %v3643_v8  ;;  %5264 = vmatprep.mubr.msk.bf16.mxu0 %vm5647_vm2, %v5646_v6  ;;  %v1032_v12 = vpop.f32.mrf.mxu1  ;;  %v874_v28 = vadd.f32 %v873_v52, %v6361_v15  ;;  %v1245_v63 = vld [vmem:[#allocation2 + $0x9] sm:$0x1] }
 0x1b7   : > { %773 = vst.msk [vmem:[#allocation2 + $0x38] sm:$0x1] %vm765_vm4, %v764_v5  ;;  %v4966_v13 = vpop.f32.mrf.mxu0  ;;  %5274 = vmatprep.subr.bf16.mxu0 %v5646_v6  ;;  %v1246_v0 = vld [vmem:[#allocation2 + $0x11] sm:$0x1]  ;;  %v1247_v50 = vld [vmem:[#allocation2 + $0x19] sm:$0x1] }
 0x1b8   : > { %v4985_v18 = vpop.f32.mrf.mxu1  ;;  %v928_v15 = vadd.f32 %v6375_v17, %v874_v28  ;;  %v1248_v4 = vld [vmem:[#allocation2 + $0x21] sm:$0x1]  ;;  %v1249_v5 = vld [vmem:[#allocation2 + $0x29] sm:$0x1]  ;;  %v4261_v8 = vsel %vm270_vm1, %v4256_v60, 0  ;;  %v4103_v12 = vsel %vm270_vm1, %v4098_v51, 0 }
 0x1b9   : > { %v876_v14 = vpop.f32.mrf.mxu0  ;;  %v1250_v10 = vld [vmem:[#allocation2 + $0x31] sm:$0x1]  ;;  %v1251_v52 = vld [vmem:[#allocation2 + $0x39] sm:$0x1] }
 0x1ba   : > { %v1129_v23 = vpop.f32.mrf.mxu1  ;;  %5283 = vmatmul.mubr.msk.bf16.vlgmr.msra.gmra.mxu1 %vm266_vm3, %v4725_v16  ;;  %v4731_v14 = vld [vmem:[%s5833_s4 + $0xc] sm:$0xf] }
 0x1bb   : > { %v4967_v25 = vpop.f32.mrf.mxu0  ;;  %5293 = vmatpush3.bf16.msra.mxu1 %v3946_v40  ;;  %5294 = vmatprep.mubr.msk.bf16.mxu1 %vm5647_vm2, %v5646_v6 }
 0x1bc   : > { %v4996_v29 = vpop.f32.mrf.mxu1  ;;  %5304 = vmatprep.subr.bf16.mxu1 %v5646_v6 }
 0x1bd   : > { %v971_v31 = vpop.f32.mrf.mxu0  ;;  %5265 = vmatmul.mubr.msk.bf16.vlgmr.msra.gmra.mxu0 %vm266_vm3, %v4718_v19 }
 0x1be   : > { %5275 = vmatpush3.bf16.msra.mxu0 %v3751_v27  ;;  %5276 = vmatprep.mubr.msk.bf16.mxu0 %vm5647_vm2, %v5646_v6  ;;  %v1132_v33 = vpop.f32.mrf.mxu1  ;;  %v977_v44 = vadd.f32 %v971_v31, %v928_v15 }
 0x1bf   : > { %v4978_v42 = vpop.f32.mrf.mxu0  ;;  %5286 = vmatprep.subr.bf16.mxu0 %v5646_v6 }
 0x1c0   : > { %v4997_v37 = vpop.f32.mrf.mxu1  ;;  %v1035_v34 = vadd.f32 %v6389_v1, %v977_v44  ;;  %v4738_v1 = vld [vmem:[%s5833_s4 + $0x18] sm:$0xf] }
 0x1c1   : > { %v974_v39 = vpop.f32.mrf.mxu0 }
 0x1c2   : > { %v1237_v20 = vpop.f32.mrf.mxu1  ;;  %5295 = vmatmul.mubr.msk.bf16.vlgmr.msra.gmra.mxu1 %vm266_vm3, %v4728_v35 }
 0x1c3   : > { %v4979_v30 = vpop.f32.mrf.mxu0  ;;  %5305 = vmatpush3.bf16.msra.mxu1 %v4053_v46  ;;  %5306 = vmatprep.mubr.msk.bf16.mxu1 %vm5647_vm2, %v5646_v6 }
 0x1c4   : > { %v5008_v45 = vpop.f32.mrf.mxu1  ;;  %5316 = vmatprep.subr.bf16.mxu1 %v5646_v6  ;;  %v4206_v30 = vpop.permute.xlu0 %4205 }
 0x1c5   : > { %v1079_v17 = vpop.f32.mrf.mxu0  ;;  %5277 = vmatmul.mubr.msk.bf16.vlgmr.msra.gmra.mxu0 %vm266_vm3, %v4722_v22  ;;  %v4735_v45 = vld [vmem:[%s5833_s4 + $0x14] sm:$0xf] }
 0x1c6   : > { %5287 = vmatpush3.bf16.msra.mxu0 %v3897_v43  ;;  %5288 = vmatprep.mubr.msk.bf16.mxu0 %vm5647_vm2, %v5646_v6  ;;  %v1240_v32 = vpop.f32.mrf.mxu1  ;;  %v1085_v53 = vadd.f32 %v1079_v17, %v1035_v34 }
 0x1c7   : > { %v4990_v47 = vpop.f32.mrf.mxu0  ;;  %5298 = vmatprep.subr.bf16.mxu0 %v5646_v6  ;;  %v4211_v32 = vsel %vm270_vm1, %v4206_v30, 0 }
 0x1c8   : > { %v5009_v24 = vpop.f32.mrf.mxu1  ;;  %v1135_v59 = vadd.f32 %v1129_v23, %v1085_v53 }
 0x1c9   : > { %v1082_v54 = vpop.f32.mrf.mxu0 }
 0x1ca   : > { %v6441_v36 = vpop.f32.mrf.mxu1  ;;  %5307 = vmatmul.mubr.msk.bf16.vlgmr.msra.gmra.mxu1 %vm266_vm3, %v4733_v49 }
 0x1cb   : > { %v4991_v56 = vpop.f32.mrf.mxu0  ;;  %5317 = vmatpush3.bf16.msra.mxu1 %v4153_v48  ;;  %5318 = vmatprep.mubr.msk.bf16.mxu1 %vm5647_vm2, %v5646_v6 }
 0x1cc   : > { %v5020_v26 = vpop.f32.mrf.mxu1  ;;  %5328 = vmatprep.subr.bf16.mxu1 %v5646_v6 }
 0x1cd   : > { %v1187_v21 = vpop.f32.mrf.mxu0  ;;  %5289 = vmatmul.mubr.msk.bf16.vlgmr.msra.gmra.mxu0 %vm266_vm3, %v3835_v55  ;;  %v4740_v55 = vld [vmem:[%s5833_s4 + $0x1c] sm:$0xf] }
 0x1ce   : > { %v1193_v38 = vadd.f32 %v1187_v21, %v1135_v59  ;;  %5299 = vmatpush3.bf16.msra.mxu0 %v3995_v58  ;;  %5300 = vmatprep.mubr.msk.bf16.mxu0 %vm5647_vm2, %v5646_v6  ;;  %v1386_v62 = vpop.f32.mrf.mxu1 }
 0x1cf   : > { %v5002_v2 = vpop.f32.mrf.mxu0  ;;  %5310 = vmatprep.subr.bf16.mxu0 %v5646_v6 }
 0x1d0   : > { %v1243_v3 = vadd.f32 %v1237_v20, %v1193_v38  ;;  %v5021_v7 = vpop.f32.mrf.mxu1  ;;  %v4742_v20 = vld [vmem:[%s5833_s4 + $0x20] sm:$0xf] }
 0x1d1   : > { %v1190_v11 = vpop.f32.mrf.mxu0 }
 0x1d2   : > { %v1253_v13 = vrot.slane %v1243_v3, 1  ;;  %v1254_v16 = vrot.slane %v1243_v3, 2  ;;  %v1255_v18 = vrot.slane %v1243_v3, 3  ;;  %v1256_v40 = vrot.slane %v1243_v3, 4  ;;  %v1481_v19 = vpop.f32.mrf.mxu1  ;;  %5319 = vmatmul.mubr.msk.bf16.vlgmr.msra.gmra.mxu1 %vm266_vm3, %v4738_v1 }
 0x1d3   : > { %v1257_v23 = vrot.slane %v1243_v3, 5  ;;  %v1258_v25 = vrot.slane %v1243_v3, 6  ;;  %v1259_v27 = vrot.slane %v1243_v3, 7  ;;  %v1268_v28 = vadd.f32 %v1244_v61, %v1243_v3  ;;  %v5003_v29 = vpop.f32.mrf.mxu0  ;;  %5329 = vmatpush3.bf16.msra.mxu1 %v4261_v8  ;;  %5330 = vmatprep.mubr.msk.bf16.mxu1 %vm5647_vm2, %v5646_v6 }
 0x1d4   : > { %v1269_v31 = vadd.f32 %v1253_v13, %v1245_v63  ;;  %v1270_v9 = vadd.f32 %v1254_v16, %v1246_v0  ;;  %v1271_v33 = vadd.f32 %v1255_v18, %v1247_v50  ;;  %v1272_v42 = vadd.f32 %v1256_v40, %v1248_v4  ;;  %v5032_v35 = vpop.f32.mrf.mxu1  ;;  %v1754_v13 = vld [vmem:[#allocation2 + $0x2] sm:$0x1]  ;;  %v1755_v18 = vld [vmem:[#allocation2 + $0xa] sm:$0x1]  ;;  %v1756_v40 = vld [vmem:[#allocation2 + $0x12] sm:$0x1] }
 0x1d5   : > { %v1273_v15 = vadd.f32 %v1257_v23, %v1249_v5  ;;  %v1274_v37 = vadd.f32 %v1258_v25, %v1250_v10  ;;  %v1275_v46 = vadd.f32 %v1259_v27, %v1251_v52  ;;  %1276 = vst.msk [vmem:[#allocation2 + $0x1] sm:$0x1] %vm765_vm4, %v1268_v28  ;;  %v1337_v39 = vpop.f32.mrf.mxu0  ;;  %5301 = vmatmul.mubr.msk.bf16.vlgmr.msra.gmra.mxu0 %vm266_vm3, %v4731_v14  ;;  %v1757_v14 = vld [vmem:[#allocation2 + $0x1a] sm:$0x1]  ;;  %v1758_v23 = vld [vmem:[#allocation2 + $0x22] sm:$0x1] }
 0x1d6   : > { %1277 = vst.msk [vmem:[#allocation2 + $0x9] sm:$0x1] %vm765_vm4, %v1269_v31  ;;  %1278 = vst.msk [vmem:[#allocation2 + $0x11] sm:$0x1] %vm765_vm4, %v1270_v9  ;;  %5311 = vmatpush3.bf16.msra.mxu0 %v4103_v12  ;;  %5312 = vmatprep.mubr.msk.bf16.mxu0 %vm5647_vm2, %v5646_v6  ;;  %v1484_v44 = vpop.f32.mrf.mxu1  ;;  %v1384_v54 = vadd.f32 %v6441_v36, %v1337_v39  ;;  %v1759_v25 = vld [vmem:[#allocation2 + $0x2a] sm:$0x1] }
 0x1d7   : > { %1279 = vst.msk [vmem:[#allocation2 + $0x19] sm:$0x1] %vm765_vm4, %v1271_v33  ;;  %1280 = vst.msk [vmem:[#allocation2 + $0x21] sm:$0x1] %vm765_vm4, %v1272_v42  ;;  %v5014_v22 = vpop.f32.mrf.mxu0  ;;  %5322 = vmatprep.subr.bf16.mxu0 %v5646_v6  ;;  %v1760_v27 = vld [vmem:[#allocation2 + $0x32] sm:$0x1] }
 0x1d8   : > { %1281 = vst.msk [vmem:[#allocation2 + $0x29] sm:$0x1] %vm765_vm4, %v1273_v15  ;;  %1282 = vst.msk [vmem:[#allocation2 + $0x31] sm:$0x1] %vm765_vm4, %v1274_v37  ;;  %v5033_v41 = vpop.f32.mrf.mxu1  ;;  %v1761_v29 = vld [vmem:[#allocation2 + $0x3a] sm:$0x1] }
 0x1d9   : > { %1283 = vst.msk [vmem:[#allocation2 + $0x39] sm:$0x1] %vm765_vm4, %v1275_v46  ;;  %v1340_v43 = vpop.f32.mrf.mxu0 }
 0x1da   : > { %v1589_v17 = vpop.f32.mrf.mxu1  ;;  %5331 = vmatmul.mubr.msk.bf16.vlgmr.msra.gmra.mxu1 %vm266_vm3, %v4742_v20 }
 0x1db   : > { %v5015_v34 = vpop.f32.mrf.mxu0 }
 0x1dc   : > { %v5044_v47 = vpop.f32.mrf.mxu1 }
 0x1dd   : > { %v1432_v49 = vpop.f32.mrf.mxu0  ;;  %5313 = vmatmul.mubr.msk.bf16.vlgmr.msra.gmra.mxu0 %vm266_vm3, %v4735_v45 }
 0x1de   : > { %5323 = vmatpush3.bf16.msra.mxu0 %v4211_v32  ;;  %5324 = vmatprep.mubr.msk.bf16.mxu0 %vm5647_vm2, %v5646_v6  ;;  %v1592_v51 = vpop.f32.mrf.mxu1  ;;  %v1438_v58 = vadd.f32 %v1432_v49, %v1384_v54 }
 0x1df   : > { %v5026_v53 = vpop.f32.mrf.mxu0 }
 0x1e0   : > { %v5045_v24 = vpop.f32.mrf.mxu1  ;;  %v1487_v38 = vadd.f32 %v1481_v19, %v1438_v58 }
 0x1e1   : > { %v1435_v48 = vpop.f32.mrf.mxu0 }
 0x1e2   : > { %v1697_v56 = vpop.f32.mrf.mxu1 }
 0x1e3   : > { %v5027_v57 = vpop.f32.mrf.mxu0 }
 0x1e4   : > { %v5056_v59 = vpop.f32.mrf.mxu1 }
 0x1e5   : > { %v1539_v26 = vpop.f32.mrf.mxu0  ;;  %5325 = vmatmul.mubr.msk.bf16.vlgmr.msra.gmra.mxu0 %vm266_vm3, %v4740_v55 }
 0x1e6   : > { %v1700_v21 = vpop.f32.mrf.mxu1  ;;  %v1545_v6 = vadd.f32 %v1539_v26, %v1487_v38 }
 0x1e7   : > { %v5038_v60 = vpop.f32.mrf.mxu0 }
 0x1e8   : > { %v5057_v61 = vpop.f32.mrf.mxu1  ;;  %v1595_v1 = vadd.f32 %v1589_v17, %v1545_v6 }
 0x1e9   : > { %v1542_v62 = vpop.f32.mrf.mxu0 }
 0x1ea   : > { %v1847_v63 = vpop.f32.mrf.mxu1 }
 0x1eb   : > { %v5039_v0 = vpop.f32.mrf.mxu0 }
 0x1ec   : > { %v5068_v50 = vpop.f32.mrf.mxu1 }
 0x1ed   : > { %v1639_v2 = vpop.f32.mrf.mxu0 }
 0x1ee   : > { %v1850_v36 = vpop.f32.mrf.mxu1  ;;  %v1645_v4 = vadd.f32 %v1639_v2, %v1595_v1 }
 0x1ef   : > { %v5050_v3 = vpop.f32.mrf.mxu0 }
 0x1f0   : > { %v5069_v5 = vpop.f32.mrf.mxu1  ;;  %v1703_v52 = vadd.f32 %v1697_v56, %v1645_v4 }
 0x1f1   : > { %v1642_v7 = vpop.f32.mrf.mxu0 }
 0x1f2   : > { %v1942_v8 = vpop.f32.mrf.mxu1 }
 0x1f3   : > { %v5051_v10 = vpop.f32.mrf.mxu0 }
 0x1f4   : > { %v5080_v11 = vpop.f32.mrf.mxu1 }
 0x1f5   : > { %v1747_v12 = vpop.f32.mrf.mxu0 }
 0x1f6   : > { %v1753_v16 = vadd.f32 %v1747_v12, %v1703_v52  ;;  %v1945_v19 = vpop.f32.mrf.mxu1 }
 0x1f7   : > { %v5062_v28 = vpop.f32.mrf.mxu0  ;;  %v2267_v19 = vld [vmem:[#allocation2 + $0x1b] sm:$0x1] }
 0x1f8   : > { %v1763_v31 = vrot.slane %v1753_v16, 1  ;;  %v1764_v9 = vrot.slane %v1753_v16, 2  ;;  %v1765_v33 = vrot.slane %v1753_v16, 3  ;;  %v1766_v42 = vrot.slane %v1753_v16, 4  ;;  %v5081_v35 = vpop.f32.mrf.mxu1  ;;  %v2270_v28 = vld [vmem:[#allocation2 + $0x33] sm:$0x1] }
 0x1f9   : > { %v1767_v15 = vrot.slane %v1753_v16, 5  ;;  %v1768_v37 = vrot.slane %v1753_v16, 6  ;;  %v1769_v46 = vrot.slane %v1753_v16, 7  ;;  %v1778_v39 = vadd.f32 %v1754_v13, %v1753_v16  ;;  %v1750_v44 = vpop.f32.mrf.mxu0  ;;  %v2264_v13 = vld [vmem:[#allocation2 + $0x3] sm:$0x1] }
 0x1fa   : > { %v1779_v22 = vadd.f32 %v1763_v31, %v1755_v18  ;;  %v1780_v20 = vadd.f32 %v1764_v9, %v1756_v40  ;;  %v1781_v30 = vadd.f32 %v1765_v33, %v1757_v14  ;;  %v1782_v41 = vadd.f32 %v1766_v42, %v1758_v23  ;;  %v2049_v43 = vpop.f32.mrf.mxu1  ;;  %v2265_v40 = vld [vmem:[#allocation2 + $0xb] sm:$0x1]  ;;  %v2266_v14 = vld [vmem:[#allocation2 + $0x13] sm:$0x1]  ;;  %v2271_v31 = vld [vmem:[#allocation2 + $0x3b] sm:$0x1] }
 0x1fb   : > { %v1783_v45 = vadd.f32 %v1767_v15, %v1759_v25  ;;  %v1784_v17 = vadd.f32 %v1768_v37, %v1760_v27  ;;  %v1785_v34 = vadd.f32 %v1769_v46, %v1761_v29  ;;  %1786 = vst.msk [vmem:[#allocation2 + $0x2] sm:$0x1] %vm765_vm4, %v1778_v39  ;;  %v5063_v32 = vpop.f32.mrf.mxu0  ;;  %v2268_v25 = vld [vmem:[#allocation2 + $0x23] sm:$0x1]  ;;  %v2269_v27 = vld [vmem:[#allocation2 + $0x2b] sm:$0x1] }
 0x1fc   : > { %1787 = vst.msk [vmem:[#allocation2 + $0xa] sm:$0x1] %vm765_vm4, %v1779_v22  ;;  %1788 = vst.msk [vmem:[#allocation2 + $0x12] sm:$0x1] %vm765_vm4, %v1780_v20  ;;  %v5092_v47 = vpop.f32.mrf.mxu1 }
 0x1fd   : > { %1789 = vst.msk [vmem:[#allocation2 + $0x1a] sm:$0x1] %vm765_vm4, %v1781_v30  ;;  %1790 = vst.msk [vmem:[#allocation2 + $0x22] sm:$0x1] %vm765_vm4, %v1782_v41  ;;  %v1893_v49 = vpop.f32.mrf.mxu0 }
 0x1fe   : > { %1791 = vst.msk [vmem:[#allocation2 + $0x2a] sm:$0x1] %vm765_vm4, %v1783_v45  ;;  %1792 = vst.msk [vmem:[#allocation2 + $0x32] sm:$0x1] %vm765_vm4, %v1784_v17  ;;  %v2052_v51 = vpop.f32.mrf.mxu1  ;;  %v1894_v56 = vadd.f32 %v1893_v49, %v1847_v63 }
 0x1ff   : > { %1793 = vst.msk [vmem:[#allocation2 + $0x3a] sm:$0x1] %vm765_vm4, %v1785_v34  ;;  %v5074_v53 = vpop.f32.mrf.mxu0 }
 0x200   : > { %v5093_v24 = vpop.f32.mrf.mxu1  ;;  %v1948_v21 = vadd.f32 %v1942_v8, %v1894_v56 }
 0x201   : > { %v1896_v48 = vpop.f32.mrf.mxu0 }
 0x202   : > { %v2149_v54 = vpop.f32.mrf.mxu1 }
 0x203   : > { %v5075_v55 = vpop.f32.mrf.mxu0 }
 0x204   : > { %v5104_v57 = vpop.f32.mrf.mxu1 }
 0x205   : > { %v1991_v58 = vpop.f32.mrf.mxu0 }
 0x206   : > { %v2152_v59 = vpop.f32.mrf.mxu1  ;;  %v1997_v61 = vadd.f32 %v1991_v58, %v1948_v21 }
 0x207   : > { %v5086_v26 = vpop.f32.mrf.mxu0 }
 0x208   : > { %v5105_v60 = vpop.f32.mrf.mxu1  ;;  %v2055_v2 = vadd.f32 %v2049_v43, %v1997_v61 }
 0x209   : > { %v1994_v38 = vpop.f32.mrf.mxu0 }
 0x20a   : > { %v2257_v62 = vpop.f32.mrf.mxu1 }
 0x20b   : > { %v5087_v6 = vpop.f32.mrf.mxu0 }
 0x20c   : > { %v5116_v0 = vpop.f32.mrf.mxu1 }
 0x20d   : > { %v2099_v50 = vpop.f32.mrf.mxu0 }
 0x20e   : > { %v2260_v1 = vpop.f32.mrf.mxu1  ;;  %v2105_v3 = vadd.f32 %v2099_v50, %v2055_v2 }
 0x20f   : > { %v5098_v36 = vpop.f32.mrf.mxu0 }
 0x210   : > { %v5117_v4 = vpop.f32.mrf.mxu1  ;;  %v2155_v10 = vadd.f32 %v2149_v54, %v2105_v3 }
 0x211   : > { %v2102_v5 = vpop.f32.mrf.mxu0 }
 0x212   : > { %v2403_v7 = vpop.f32.mrf.mxu1 }
 0x213   : > { %v5099_v63 = vpop.f32.mrf.mxu0 }
 0x214   : > { %v5128_v52 = vpop.f32.mrf.mxu1 }
 0x215   : > { %v2207_v11 = vpop.f32.mrf.mxu0 }
 0x216   : > { %v2213_v12 = vadd.f32 %v2207_v11, %v2155_v10  ;;  %v2406_v8 = vpop.f32.mrf.mxu1 }
 0x217   : > { %v5110_v16 = vpop.f32.mrf.mxu0 }
 0x218   : > { %v2263_v18 = vadd.f32 %v2257_v62, %v2213_v12  ;;  %v5129_v23 = vpop.f32.mrf.mxu1 }
 0x219   : > { %v2210_v29 = vpop.f32.mrf.mxu0  ;;  %v2774_v23 = vld [vmem:[#allocation2 + $0x4] sm:$0x1] }
 0x21a   : > { %v2273_v9 = vrot.slane %v2263_v18, 1  ;;  %v2274_v33 = vrot.slane %v2263_v18, 2  ;;  %v2275_v42 = vrot.slane %v2263_v18, 3  ;;  %v2276_v35 = vrot.slane %v2263_v18, 4  ;;  %v2501_v15 = vpop.f32.mrf.mxu1  ;;  %v2777_v29 = vld [vmem:[#allocation2 + $0x1c] sm:$0x1] }
 0x21b   : > { %v2277_v37 = vrot.slane %v2263_v18, 5  ;;  %v2278_v46 = vrot.slane %v2263_v18, 6  ;;  %v2279_v39 = vrot.slane %v2263_v18, 7  ;;  %v2288_v44 = vadd.f32 %v2264_v13, %v2263_v18  ;;  %v5111_v22 = vpop.f32.mrf.mxu0 }
 0x21c   : > { %v2289_v20 = vadd.f32 %v2273_v9, %v2265_v40  ;;  %v2290_v30 = vadd.f32 %v2274_v33, %v2266_v14  ;;  %v2291_v41 = vadd.f32 %v2275_v42, %v2267_v19  ;;  %v2292_v43 = vadd.f32 %v2276_v35, %v2268_v25  ;;  %v5140_v45 = vpop.f32.mrf.mxu1  ;;  %v2778_v9 = vld [vmem:[#allocation2 + $0x24] sm:$0x1]  ;;  %v2779_v33 = vld [vmem:[#allocation2 + $0x2c] sm:$0x1]  ;;  %v2780_v42 = vld [vmem:[#allocation2 + $0x34] sm:$0x1] }
 0x21d   : > { %v2293_v17 = vadd.f32 %v2277_v37, %v2269_v27  ;;  %v2294_v34 = vadd.f32 %v2278_v46, %v2270_v28  ;;  %v2295_v32 = vadd.f32 %v2279_v39, %v2271_v31  ;;  %2296 = vst.msk [vmem:[#allocation2 + $0x3] sm:$0x1] %vm765_vm4, %v2288_v44  ;;  %v2357_v47 = vpop.f32.mrf.mxu0  ;;  %v2775_v27 = vld [vmem:[#allocation2 + $0xc] sm:$0x1]  ;;  %v2776_v28 = vld [vmem:[#allocation2 + $0x14] sm:$0x1] }
 0x21e   : > { %2297 = vst.msk [vmem:[#allocation2 + $0xb] sm:$0x1] %vm765_vm4, %v2289_v20  ;;  %2298 = vst.msk [vmem:[#allocation2 + $0x13] sm:$0x1] %vm765_vm4, %v2290_v30  ;;  %v2504_v49 = vpop.f32.mrf.mxu1  ;;  %v2404_v21 = vadd.f32 %v2403_v7, %v2357_v47 }
 0x21f   : > { %2299 = vst.msk [vmem:[#allocation2 + $0x1b] sm:$0x1] %vm765_vm4, %v2291_v41  ;;  %2300 = vst.msk [vmem:[#allocation2 + $0x23] sm:$0x1] %vm765_vm4, %v2292_v43  ;;  %v5122_v51 = vpop.f32.mrf.mxu0 }
 0x220   : > { %2301 = vst.msk [vmem:[#allocation2 + $0x2b] sm:$0x1] %vm765_vm4, %v2293_v17  ;;  %2302 = vst.msk [vmem:[#allocation2 + $0x33] sm:$0x1] %vm765_vm4, %v2294_v34  ;;  %v5141_v53 = vpop.f32.mrf.mxu1 }
 0x221   : > { %2303 = vst.msk [vmem:[#allocation2 + $0x3b] sm:$0x1] %vm765_vm4, %v2295_v32  ;;  %v2360_v24 = vpop.f32.mrf.mxu0 }
 0x222   : > { %v2609_v48 = vpop.f32.mrf.mxu1 }
 0x223   : > { %v5123_v54 = vpop.f32.mrf.mxu0 }
 0x224   : > { %v5152_v55 = vpop.f32.mrf.mxu1 }
 0x225   : > { %v2452_v56 = vpop.f32.mrf.mxu0 }
 0x226   : > { %v2612_v57 = vpop.f32.mrf.mxu1  ;;  %v2458_v61 = vadd.f32 %v2452_v56, %v2404_v21 }
 0x227   : > { %v5134_v58 = vpop.f32.mrf.mxu0 }
 0x228   : > { %v5153_v59 = vpop.f32.mrf.mxu1  ;;  %v2507_v2 = vadd.f32 %v2501_v15, %v2458_v61  ;;  %v2781_v15 = vld [vmem:[#allocation2 + $0x3c] sm:$0x1] }
 0x229   : > { %v2455_v26 = vpop.f32.mrf.mxu0 }
 0x22a   : > { %v2717_v60 = vpop.f32.mrf.mxu1 }
 0x22b   : > { %v5135_v38 = vpop.f32.mrf.mxu0 }
 0x22c   : > { %v5164_v62 = vpop.f32.mrf.mxu1 }
 0x22d   : > { %v2559_v6 = vpop.f32.mrf.mxu0 }
 0x22e   : > { %v2720_v0 = vpop.f32.mrf.mxu1  ;;  %v2565_v3 = vadd.f32 %v2559_v6, %v2507_v2 }
 0x22f   : > { %v5146_v50 = vpop.f32.mrf.mxu0 }
 0x230   : > { %v5165_v1 = vpop.f32.mrf.mxu1  ;;  %v2615_v52 = vadd.f32 %v2609_v48, %v2565_v3 }
 0x231   : > { %v2562_v36 = vpop.f32.mrf.mxu0 }
 0x232   : > { %v2867_v4 = vpop.f32.mrf.mxu1 }
 0x233   : > { %v5147_v5 = vpop.f32.mrf.mxu0 }
 0x234   : > { %v5176_v63 = vpop.f32.mrf.mxu1 }
 0x235   : > { %v2659_v10 = vpop.f32.mrf.mxu0 }
 0x236   : > { %v2870_v11 = vpop.f32.mrf.mxu1  ;;  %v2665_v8 = vadd.f32 %v2659_v10, %v2615_v52 }
 0x237   : > { %v5158_v12 = vpop.f32.mrf.mxu0 }
 0x238   : > { %v5177_v7 = vpop.f32.mrf.mxu1  ;;  %v2723_v40 = vadd.f32 %v2717_v60, %v2665_v8 }
 0x239   : > { %v2662_v13 = vpop.f32.mrf.mxu0 }
 0x23a   : > { %v2962_v16 = vpop.f32.mrf.mxu1 }
 0x23b   : > { %v5159_v18 = vpop.f32.mrf.mxu0 }
 0x23c   : > { %v5188_v14 = vpop.f32.mrf.mxu1 }
 0x23d   : > { %v2767_v19 = vpop.f32.mrf.mxu0 }
 0x23e   : > { %v2773_v25 = vadd.f32 %v2767_v19, %v2723_v40  ;;  %v2965_v31 = vpop.f32.mrf.mxu1 }
 0x23f   : > { %v5170_v35 = vpop.f32.mrf.mxu0  ;;  %v3287_v31 = vld [vmem:[#allocation2 + $0x1d] sm:$0x1] }
 0x240   : > { %v2783_v37 = vrot.slane %v2773_v25, 1  ;;  %v2784_v46 = vrot.slane %v2773_v25, 2  ;;  %v2785_v39 = vrot.slane %v2773_v25, 3  ;;  %v2786_v44 = vrot.slane %v2773_v25, 4  ;;  %v5189_v22 = vpop.f32.mrf.mxu1  ;;  %v3290_v35 = vld [vmem:[#allocation2 + $0x35] sm:$0x1] }
 0x241   : > { %v2787_v20 = vrot.slane %v2773_v25, 5  ;;  %v2788_v30 = vrot.slane %v2773_v25, 6  ;;  %v2789_v41 = vrot.slane %v2773_v25, 7  ;;  %v2798_v43 = vadd.f32 %v2774_v23, %v2773_v25  ;;  %v2770_v45 = vpop.f32.mrf.mxu0  ;;  %v3284_v23 = vld [vmem:[#allocation2 + $0x5] sm:$0x1] }
 0x242   : > { %v2799_v17 = vadd.f32 %v2783_v37, %v2775_v27  ;;  %v2800_v34 = vadd.f32 %v2784_v46, %v2776_v28  ;;  %v2801_v32 = vadd.f32 %v2785_v39, %v2777_v29  ;;  %v2802_v47 = vadd.f32 %v2786_v44, %v2778_v9  ;;  %v3069_v49 = vpop.f32.mrf.mxu1  ;;  %v3285_v28 = vld [vmem:[#allocation2 + $0xd] sm:$0x1]  ;;  %v3286_v29 = vld [vmem:[#allocation2 + $0x15] sm:$0x1]  ;;  %v3291_v37 = vld [vmem:[#allocation2 + $0x3d] sm:$0x1] }
 0x243   : > { %v2803_v51 = vadd.f32 %v2787_v20, %v2779_v33  ;;  %v2804_v53 = vadd.f32 %v2788_v30, %v2780_v42  ;;  %v2805_v24 = vadd.f32 %v2789_v41, %v2781_v15  ;;  %2806 = vst.msk [vmem:[#allocation2 + $0x4] sm:$0x1] %vm765_vm4, %v2798_v43  ;;  %v5171_v48 = vpop.f32.mrf.mxu0  ;;  %v3288_v33 = vld [vmem:[#allocation2 + $0x25] sm:$0x1]  ;;  %v3289_v42 = vld [vmem:[#allocation2 + $0x2d] sm:$0x1] }
 0x244   : > { %2807 = vst.msk [vmem:[#allocation2 + $0xc] sm:$0x1] %vm765_vm4, %v2799_v17  ;;  %2808 = vst.msk [vmem:[#allocation2 + $0x14] sm:$0x1] %vm765_vm4, %v2800_v34  ;;  %v5200_v54 = vpop.f32.mrf.mxu1 }
 0x245   : > { %2809 = vst.msk [vmem:[#allocation2 + $0x1c] sm:$0x1] %vm765_vm4, %v2801_v32  ;;  %2810 = vst.msk [vmem:[#allocation2 + $0x24] sm:$0x1] %vm765_vm4, %v2802_v47  ;;  %v2913_v55 = vpop.f32.mrf.mxu0 }
 0x246   : > { %2811 = vst.msk [vmem:[#allocation2 + $0x2c] sm:$0x1] %vm765_vm4, %v2803_v51  ;;  %2812 = vst.msk [vmem:[#allocation2 + $0x34] sm:$0x1] %vm765_vm4, %v2804_v53  ;;  %v3072_v56 = vpop.f32.mrf.mxu1  ;;  %v2914_v60 = vadd.f32 %v2913_v55, %v2867_v4 }
 0x247   : > { %2813 = vst.msk [vmem:[#allocation2 + $0x3c] sm:$0x1] %vm765_vm4, %v2805_v24  ;;  %v5182_v57 = vpop.f32.mrf.mxu0 }
 0x248   : > { %v5201_v58 = vpop.f32.mrf.mxu1  ;;  %v2968_v0 = vadd.f32 %v2962_v16, %v2914_v60 }
 0x249   : > { %v2916_v59 = vpop.f32.mrf.mxu0 }
 0x24a   : > { %v3169_v26 = vpop.f32.mrf.mxu1 }
 0x24b   : > { %v5183_v21 = vpop.f32.mrf.mxu0 }
 0x24c   : > { %v5212_v38 = vpop.f32.mrf.mxu1 }
 0x24d   : > { %v3011_v61 = vpop.f32.mrf.mxu0 }
 0x24e   : > { %v3172_v62 = vpop.f32.mrf.mxu1  ;;  %v3017_v1 = vadd.f32 %v3011_v61, %v2968_v0 }
 0x24f   : > { %v5194_v6 = vpop.f32.mrf.mxu0 }
 0x250   : > { %v5213_v50 = vpop.f32.mrf.mxu1  ;;  %v3075_v10 = vadd.f32 %v3069_v49, %v3017_v1 }
 0x251   : > { %v3014_v2 = vpop.f32.mrf.mxu0 }
 0x252   : > { %v3277_v36 = vpop.f32.mrf.mxu1 }
 0x253   : > { %v5195_v3 = vpop.f32.mrf.mxu0 }
 0x254   : > { %v5224_v5 = vpop.f32.mrf.mxu1 }
 0x255   : > { %v3119_v63 = vpop.f32.mrf.mxu0 }
 0x256   : > { %v3280_v52 = vpop.f32.mrf.mxu1  ;;  %v3125_v12 = vadd.f32 %v3119_v63, %v3075_v10 }
 0x257   : > { %v5206_v11 = vpop.f32.mrf.mxu0 }
 0x258   : > { %v5225_v8 = vpop.f32.mrf.mxu1  ;;  %v3175_v18 = vadd.f32 %v3169_v26, %v3125_v12 }
 0x259   : > { %v3122_v7 = vpop.f32.mrf.mxu0 }
 0x25a   : > { %v3423_v13 = vpop.f32.mrf.mxu1 }
 0x25b   : > { %v5207_v4 = vpop.f32.mrf.mxu0 }
 0x25c   : > { %v5236_v40 = vpop.f32.mrf.mxu1 }
 0x25d   : > { %v3227_v14 = vpop.f32.mrf.mxu0 }
 0x25e   : > { %v3233_v19 = vadd.f32 %v3227_v14, %v3175_v18  ;;  %v3426_v16 = vpop.f32.mrf.mxu1 }
 0x25f   : > { %v5218_v25 = vpop.f32.mrf.mxu0 }
 0x260   : > { %v3283_v27 = vadd.f32 %v3277_v36, %v3233_v19  ;;  %v5237_v9 = vpop.f32.mrf.mxu1 }
 0x261   : > { %v3230_v15 = vpop.f32.mrf.mxu0  ;;  %v3794_v9 = vld [vmem:[#allocation2 + $0x6] sm:$0x1] }
 0x262   : > { %v3293_v46 = vrot.slane %v3283_v27, 1  ;;  %v3294_v39 = vrot.slane %v3283_v27, 2  ;;  %v3295_v44 = vrot.slane %v3283_v27, 3  ;;  %v3296_v22 = vrot.slane %v3283_v27, 4  ;;  %v3521_v20 = vpop.f32.mrf.mxu1  ;;  %v3797_v15 = vld [vmem:[#allocation2 + $0x1e] sm:$0x1] }
 0x263   : > { %v3297_v30 = vrot.slane %v3283_v27, 5  ;;  %v3298_v41 = vrot.slane %v3283_v27, 6  ;;  %v3299_v43 = vrot.slane %v3283_v27, 7  ;;  %v3308_v45 = vadd.f32 %v3284_v23, %v3283_v27  ;;  %v5219_v17 = vpop.f32.mrf.mxu0 }
 0x264   : > { %v3309_v34 = vadd.f32 %v3293_v46, %v3285_v28  ;;  %v3310_v32 = vadd.f32 %v3294_v39, %v3286_v29  ;;  %v3311_v47 = vadd.f32 %v3295_v44, %v3287_v31  ;;  %v3312_v49 = vadd.f32 %v3296_v22, %v3288_v33  ;;  %v5248_v51 = vpop.f32.mrf.mxu1  ;;  %v3798_v46 = vld [vmem:[#allocation2 + $0x26] sm:$0x1]  ;;  %v3799_v39 = vld [vmem:[#allocation2 + $0x2e] sm:$0x1]  ;;  %v3800_v44 = vld [vmem:[#allocation2 + $0x36] sm:$0x1] }
 0x265   : > { %v3313_v53 = vadd.f32 %v3297_v30, %v3289_v42  ;;  %v3314_v24 = vadd.f32 %v3298_v41, %v3290_v35  ;;  %v3315_v48 = vadd.f32 %v3299_v43, %v3291_v37  ;;  %3316 = vst.msk [vmem:[#allocation2 + $0x5] sm:$0x1] %vm765_vm4, %v3308_v45  ;;  %v3377_v54 = vpop.f32.mrf.mxu0  ;;  %v3795_v42 = vld [vmem:[#allocation2 + $0xe] sm:$0x1]  ;;  %v3796_v35 = vld [vmem:[#allocation2 + $0x16] sm:$0x1] }
 0x266   : > { %3317 = vst.msk [vmem:[#allocation2 + $0xd] sm:$0x1] %vm765_vm4, %v3309_v34  ;;  %3318 = vst.msk [vmem:[#allocation2 + $0x15] sm:$0x1] %vm765_vm4, %v3310_v32  ;;  %v3524_v55 = vpop.f32.mrf.mxu1  ;;  %v3424_v0 = vadd.f32 %v3423_v13, %v3377_v54 }
 0x267   : > { %3319 = vst.msk [vmem:[#allocation2 + $0x1d] sm:$0x1] %vm765_vm4, %v3311_v47  ;;  %3320 = vst.msk [vmem:[#allocation2 + $0x25] sm:$0x1] %vm765_vm4, %v3312_v49  ;;  %v5230_v56 = vpop.f32.mrf.mxu0 }
 0x268   : > { %3321 = vst.msk [vmem:[#allocation2 + $0x2d] sm:$0x1] %vm765_vm4, %v3313_v53  ;;  %3322 = vst.msk [vmem:[#allocation2 + $0x35] sm:$0x1] %vm765_vm4, %v3314_v24  ;;  %v5249_v57 = vpop.f32.mrf.mxu1 }
 0x269   : > { %3323 = vst.msk [vmem:[#allocation2 + $0x3d] sm:$0x1] %vm765_vm4, %v3315_v48  ;;  %v3380_v58 = vpop.f32.mrf.mxu0 }
 0x26a   : > { %v3629_v59 = vpop.f32.mrf.mxu1 }
 0x26b   : > { %v5231_v26 = vpop.f32.mrf.mxu0 }
 0x26c   : > { %v5260_v21 = vpop.f32.mrf.mxu1 }
 0x26d   : > { %v3472_v60 = vpop.f32.mrf.mxu0 }
 0x26e   : > { %v3632_v38 = vpop.f32.mrf.mxu1  ;;  %v3478_v1 = vadd.f32 %v3472_v60, %v3424_v0 }
 0x26f   : > { %v5242_v61 = vpop.f32.mrf.mxu0 }
 0x270   : > { %v5261_v62 = vpop.f32.mrf.mxu1  ;;  %v3527_v10 = vadd.f32 %v3521_v20, %v3478_v1  ;;  %v3801_v20 = vld [vmem:[#allocation2 + $0x3e] sm:$0x1] }
 0x271   : > { %v3475_v6 = vpop.f32.mrf.mxu0 }
 0x272   : > { %v3737_v50 = vpop.f32.mrf.mxu1 }
 0x273   : > { %v5243_v2 = vpop.f32.mrf.mxu0 }
 0x274   : > { %v5272_v36 = vpop.f32.mrf.mxu1 }
 0x275   : > { %v3579_v3 = vpop.f32.mrf.mxu0 }
 0x276   : > { %v3740_v5 = vpop.f32.mrf.mxu1  ;;  %v3585_v12 = vadd.f32 %v3579_v3, %v3527_v10 }
 0x277   : > { %v5254_v63 = vpop.f32.mrf.mxu0 }
 0x278   : > { %v5273_v52 = vpop.f32.mrf.mxu1  ;;  %v3635_v40 = vadd.f32 %v3629_v59, %v3585_v12 }
 0x279   : > { %v3582_v11 = vpop.f32.mrf.mxu0 }
 0x27a   : > { %v3887_v8 = vpop.f32.mrf.mxu1 }
 0x27b   : > { %v5255_v7 = vpop.f32.mrf.mxu0 }
 0x27c   : > { %v5284_v4 = vpop.f32.mrf.mxu1 }
 0x27d   : > { %v3679_v18 = vpop.f32.mrf.mxu0 }
 0x27e   : > { %v3890_v14 = vpop.f32.mrf.mxu1  ;;  %v3685_v16 = vadd.f32 %v3679_v18, %v3635_v40 }
 0x27f   : > { %v5266_v19 = vpop.f32.mrf.mxu0 }
 0x280   : > { %v5285_v13 = vpop.f32.mrf.mxu1  ;;  %v3743_v28 = vadd.f32 %v3737_v50, %v3685_v16 }
 0x281   : > { %v3682_v23 = vpop.f32.mrf.mxu0 }
 0x282   : > { %v3982_v25 = vpop.f32.mrf.mxu1 }
 0x283   : > { %v5267_v27 = vpop.f32.mrf.mxu0 }
 0x284   : > { %v5296_v29 = vpop.f32.mrf.mxu1 }
 0x285   : > { %v3787_v31 = vpop.f32.mrf.mxu0  ;;  %v4304_v29 = vld [vmem:[#allocation2 + $0x7] sm:$0x1] }
 0x286   : > { %v3793_v33 = vadd.f32 %v3787_v31, %v3743_v28  ;;  %v3985_v37 = vpop.f32.mrf.mxu1 }
 0x287   : > { %v5278_v22 = vpop.f32.mrf.mxu0  ;;  %v4310_v37 = vld [vmem:[#allocation2 + $0x37] sm:$0x1] }
 0x288   : > { %v3803_v30 = vrot.slane %v3793_v33, 1  ;;  %v3804_v41 = vrot.slane %v3793_v33, 2  ;;  %v3805_v43 = vrot.slane %v3793_v33, 3  ;;  %v3806_v45 = vrot.slane %v3793_v33, 4  ;;  %v5297_v17 = vpop.f32.mrf.mxu1 }
 0x289   : > { %v3807_v34 = vrot.slane %v3793_v33, 5  ;;  %v3808_v32 = vrot.slane %v3793_v33, 6  ;;  %v3809_v47 = vrot.slane %v3793_v33, 7  ;;  %v3818_v49 = vadd.f32 %v3794_v9, %v3793_v33  ;;  %v3790_v51 = vpop.f32.mrf.mxu0  ;;  %v4305_v9 = vld [vmem:[#allocation2 + $0xf] sm:$0x1] }
 0x28a   : > { %v3819_v53 = vadd.f32 %v3803_v30, %v3795_v42  ;;  %v3820_v24 = vadd.f32 %v3804_v41, %v3796_v35  ;;  %v3821_v48 = vadd.f32 %v3805_v43, %v3797_v15  ;;  %v3822_v54 = vadd.f32 %v3806_v45, %v3798_v46  ;;  %v4089_v55 = vpop.f32.mrf.mxu1  ;;  %v4306_v33 = vld [vmem:[#allocation2 + $0x17] sm:$0x1]  ;;  %v4307_v42 = vld [vmem:[#allocation2 + $0x1f] sm:$0x1]  ;;  %v4308_v35 = vld [vmem:[#allocation2 + $0x27] sm:$0x1] }
 0x28b   : > { %v3823_v56 = vadd.f32 %v3807_v34, %v3799_v39  ;;  %v3824_v57 = vadd.f32 %v3808_v32, %v3800_v44  ;;  %v3825_v58 = vadd.f32 %v3809_v47, %v3801_v20  ;;  %3826 = vst.msk [vmem:[#allocation2 + $0x6] sm:$0x1] %vm765_vm4, %v3818_v49  ;;  %v5279_v59 = vpop.f32.mrf.mxu0  ;;  %v4309_v15 = vld [vmem:[#allocation2 + $0x2f] sm:$0x1]  ;;  %v4311_v39 = vld [vmem:[#allocation2 + $0x3f] sm:$0x1] }
 0x28c   : > { %3827 = vst.msk [vmem:[#allocation2 + $0xe] sm:$0x1] %vm765_vm4, %v3819_v53  ;;  %3828 = vst.msk [vmem:[#allocation2 + $0x16] sm:$0x1] %vm765_vm4, %v3820_v24  ;;  %v5308_v26 = vpop.f32.mrf.mxu1 }
 0x28d   : > { %3829 = vst.msk [vmem:[#allocation2 + $0x1e] sm:$0x1] %vm765_vm4, %v3821_v48  ;;  %3830 = vst.msk [vmem:[#allocation2 + $0x26] sm:$0x1] %vm765_vm4, %v3822_v54  ;;  %v3933_v21 = vpop.f32.mrf.mxu0 }
 0x28e   : > { %3831 = vst.msk [vmem:[#allocation2 + $0x2e] sm:$0x1] %vm765_vm4, %v3823_v56  ;;  %3832 = vst.msk [vmem:[#allocation2 + $0x36] sm:$0x1] %vm765_vm4, %v3824_v57  ;;  %v4092_v60 = vpop.f32.mrf.mxu1  ;;  %v3934_v50 = vadd.f32 %v3933_v21, %v3887_v8 }
 0x28f   : > { %3833 = vst.msk [vmem:[#allocation2 + $0x3e] sm:$0x1] %vm765_vm4, %v3825_v58  ;;  %v5290_v38 = vpop.f32.mrf.mxu0 }
 0x290   : > { %v5309_v61 = vpop.f32.mrf.mxu1  ;;  %v3988_v5 = vadd.f32 %v3982_v25, %v3934_v50 }
 0x291   : > { %v3936_v62 = vpop.f32.mrf.mxu0 }
 0x292   : > { %v4189_v6 = vpop.f32.mrf.mxu1 }
 0x293   : > { %v5291_v0 = vpop.f32.mrf.mxu0 }
 0x294   : > { %v5320_v2 = vpop.f32.mrf.mxu1 }
 0x295   : > { %v4031_v1 = vpop.f32.mrf.mxu0 }
 0x296   : > { %v4192_v36 = vpop.f32.mrf.mxu1  ;;  %v4037_v52 = vadd.f32 %v4031_v1, %v3988_v5 }
 0x297   : > { %v5302_v3 = vpop.f32.mrf.mxu0 }
 0x298   : > { %v5321_v63 = vpop.f32.mrf.mxu1  ;;  %v4095_v18 = vadd.f32 %v4089_v55, %v4037_v52 }
 0x299   : > { %v4034_v10 = vpop.f32.mrf.mxu0 }
 0x29a   : > { %v4297_v11 = vpop.f32.mrf.mxu1 }
 0x29b   : > { %v5303_v12 = vpop.f32.mrf.mxu0 }
 0x29c   : > { %v5332_v7 = vpop.f32.mrf.mxu1 }
 0x29d   : > { %v4139_v4 = vpop.f32.mrf.mxu0 }
 0x29e   : > { %v4300_v40 = vpop.f32.mrf.mxu1  ;;  %v4145_v19 = vadd.f32 %v4139_v4, %v4095_v18 }
 0x29f   : > { %v5314_v14 = vpop.f32.mrf.mxu0 }
 0x2a0   : > { %v5333_v16 = vpop.f32.mrf.mxu1  ;;  %v4195_v8 = vadd.f32 %v4189_v6, %v4145_v19 }
 0x2a1   : > { %v4142_v13 = vpop.f32.mrf.mxu0 }
 0x2a3   : > { %v5315_v23 = vpop.f32.mrf.mxu0 }
 0x2a5   : > { %v4247_v27 = vpop.f32.mrf.mxu0 }
 0x2a6   : > { %v4253_v28 = vadd.f32 %v4247_v27, %v4195_v8 }
 0x2a7   : > { %v5326_v31 = vpop.f32.mrf.mxu0 }
 0x2a8   : > { %v4303_v25 = vadd.f32 %v4297_v11, %v4253_v28 }
 0x2a9   : > { %v4250_v46 = vpop.f32.mrf.mxu0 }
 0x2aa   : > { %v4313_v44 = vrot.slane %v4303_v25, 1  ;;  %v4314_v22 = vrot.slane %v4303_v25, 2  ;;  %v4315_v20 = vrot.slane %v4303_v25, 3  ;;  %v4316_v30 = vrot.slane %v4303_v25, 4 }
 0x2ab   : > { %v4317_v41 = vrot.slane %v4303_v25, 5  ;;  %v4318_v43 = vrot.slane %v4303_v25, 6  ;;  %v4319_v45 = vrot.slane %v4303_v25, 7  ;;  %v4328_v17 = vadd.f32 %v4304_v29, %v4303_v25  ;;  %v5327_v34 = vpop.f32.mrf.mxu0 }
 0x2ac   : > { %v4329_v32 = vadd.f32 %v4313_v44, %v4305_v9  ;;  %v4330_v47 = vadd.f32 %v4314_v22, %v4306_v33  ;;  %v4331_v49 = vadd.f32 %v4315_v20, %v4307_v42  ;;  %v4332_v51 = vadd.f32 %v4316_v30, %v4308_v35 }
 0x2ad   : > { %v4333_v53 = vadd.f32 %v4317_v41, %v4309_v15  ;;  %v4334_v24 = vadd.f32 %v4318_v43, %v4310_v37  ;;  %v4335_v48 = vadd.f32 %v4319_v45, %v4311_v39  ;;  %4336 = vst.msk [vmem:[#allocation2 + $0x7] sm:$0x1] %vm765_vm4, %v4328_v17  ;;  %4347 = sbr.rel (%p4744_p7) target bundleno = 831 (0x33f), region = 44 }
 0x2ae   : > { %4337 = vst.msk [vmem:[#allocation2 + $0xf] sm:$0x1] %vm765_vm4, %v4329_v32  ;;  %4338 = vst.msk [vmem:[#allocation2 + $0x17] sm:$0x1] %vm765_vm4, %v4330_v47 }
 0x2af   : > { %4339 = vst.msk [vmem:[#allocation2 + $0x1f] sm:$0x1] %vm765_vm4, %v4331_v49  ;;  %4340 = vst.msk [vmem:[#allocation2 + $0x27] sm:$0x1] %vm765_vm4, %v4332_v51 }
 0x2b0   : > { %4341 = vst.msk [vmem:[#allocation2 + $0x2f] sm:$0x1] %vm765_vm4, %v4333_v53  ;;  %4342 = vst.msk [vmem:[#allocation2 + $0x37] sm:$0x1] %vm765_vm4, %v4334_v24 }
 0x2b1   : > { %4343 = vst.msk [vmem:[#allocation2 + $0x3f] sm:$0x1] %vm765_vm4, %v4335_v48 }
 0x2b2   : > { %v4747_v54 = vld [vmem:[%s6657_s2 + $0x2] ss:$0 sm:$0xff]  ;;  %v4745_v55 = vld [vmem:[%s6657_s2] ss:$0 sm:$0xff]  ;;  %v5650_v56 = vmov 0   ;;  %vm4444_vm5 = vcmask 64512  }
 0x2b3   : > { %5472 = vset.pattern.permute.xlu1 %v5650_v56  ;;  %5471 = vset.pattern.permute.xlu0 %v5650_v56  ;;  %v4748_v57 = vld [vmem:[%s6657_s2 + $0x3] ss:$0 sm:$0xff]  ;;  %v4746_v58 = vld [vmem:[%s6657_s2 + $0x1] ss:$0 sm:$0xff]  ;;  %v4750_v59 = vld [vmem:[%s6657_s2 + $0x5] ss:$0 sm:$0xff] }
 0x2b4   : > { %4413 = vperm.xlu1 %5472, %v4747_v54   ;;  %4405 = vperm.xlu0 %5471, %v4745_v55   ;;  %v4749_v26 = vld [vmem:[%s6657_s2 + $0x4] ss:$0 sm:$0xff]  ;;  %v4752_v21 = vld [vmem:[%s6657_s2 + $0x7] ss:$0 sm:$0xff]  ;;  %v4751_v60 = vld [vmem:[%s6657_s2 + $0x6] ss:$0 sm:$0xff] }
 0x2b5   : > { %v4350_v38 = vld [vmem:[#allocation2 + $0x10] sm:$0xff]  ;;  %v4348_v61 = vld [vmem:[#allocation2] sm:$0xff]  ;;  %v4349_v1 = vld [vmem:[#allocation2 + $0x8] sm:$0xff] }
 0x2b6   : > { %v4351_v2 = vld [vmem:[#allocation2 + $0x18] sm:$0xff]  ;;  %v4352_v52 = vld [vmem:[#allocation2 + $0x20] sm:$0xff] }
 0x2b7   : > { %v4353_v10 = vld [vmem:[#allocation2 + $0x28] sm:$0xff]  ;;  %v4354_v40 = vld [vmem:[#allocation2 + $0x30] sm:$0xff] }
 0x2b8   : > { %4417 = vperm.xlu1 %5472, %v4748_v57   ;;  %4409 = vperm.xlu0 %5471, %v4746_v58   ;;  %v4355_v18 = vld [vmem:[#allocation2 + $0x38] sm:$0xff] }
 0x2bc   : > { %4425 = vperm.xlu1 %5472, %v4750_v59   ;;  %4421 = vperm.xlu0 %5471, %v4749_v26  }
 0x2c0   : > { %4433 = vperm.xlu1 %5472, %v4752_v21   ;;  %4429 = vperm.xlu0 %5471, %v4751_v60  }
 0x32f   : > { %v4414_v62 = vpop.permute.xlu1 %4413  ;;  %v4406_v6 = vpop.permute.xlu0 %4405 }
 0x330   : > { %v4438_v0 = vadd.f32 %v4414_v62, %v4350_v38  ;;  %v4436_v50 = vadd.f32 %v4406_v6, %v4348_v61 }
 0x332   : > { %4447 = vst.msk [vmem:[%s5835_s15 + $0x10] sm:$0xff] %vm4444_vm5, %v4438_v0  ;;  %4445 = vst.msk [vmem:[%s5835_s15] sm:$0xff] %vm4444_vm5, %v4436_v50 }
 0x333   : > { %v4418_v36 = vpop.permute.xlu1 %4417  ;;  %v4410_v3 = vpop.permute.xlu0 %4409 }
 0x334   : > { %v4439_v5 = vadd.f32 %v4418_v36, %v4351_v2  ;;  %v4437_v63 = vadd.f32 %v4410_v3, %v4349_v1 }
 0x336   : > { %4448 = vst.msk [vmem:[%s5835_s15 + $0x18] sm:$0xff] %vm4444_vm5, %v4439_v5  ;;  %4446 = vst.msk [vmem:[%s5835_s15 + $0x8] sm:$0xff] %vm4444_vm5, %v4437_v63 }
 0x337   : > { %v4426_v11 = vpop.permute.xlu1 %4425  ;;  %v4422_v12 = vpop.permute.xlu0 %4421 }
 0x338   : > { %v4441_v7 = vadd.f32 %v4426_v11, %v4353_v10  ;;  %v4440_v4 = vadd.f32 %v4422_v12, %v4352_v52 }
 0x33a   : > { %4450 = vst.msk [vmem:[%s5835_s15 + $0x28] sm:$0xff] %vm4444_vm5, %v4441_v7  ;;  %4449 = vst.msk [vmem:[%s5835_s15 + $0x20] sm:$0xff] %vm4444_vm5, %v4440_v4 }
 0x33b   : > { %v4434_v14 = vpop.permute.xlu1 %4433  ;;  %v4430_v19 = vpop.permute.xlu0 %4429 }
 0x33c   : > { %v4443_v16 = vadd.f32 %v4434_v14, %v4355_v18  ;;  %v4442_v13 = vadd.f32 %v4430_v19, %v4354_v40 }
 0x33e   : > { %4452 = vst.msk [vmem:[%s5835_s15 + $0x38] sm:$0xff] %vm4444_vm5, %v4443_v16  ;;  %4451 = vst.msk [vmem:[%s5835_s15 + $0x30] sm:$0xff] %vm4444_vm5, %v4442_v13 }
 0x33f PF: > { %s4754_s10 = sshll.u32 %s5623_s20, 6  ;;  %s4468_s5 = sshll.u32 %s5835_s15, 4  ;;  %s6574_s5 = int_to_ptr.vmem [resolvable:$true] %s4468_s5 }
 0x340   : > { %s4465_s30 = sadd.s32 %s5619_s19, %s4754_s10  ;;  %s6583_s17 = scalar_lea.sflag [#allocation5], %s229_s14 }
 0x341   : > { %s4755_s8 = sshll.u32 %s4465_s30, 7  ;;  %s5503_s18 = scalar_lea.vmem %s6574_s5, 1024 }
 0x342   : > { %s6579_s29 = scalar_lea.hbm %s6658_s3, %s4755_s8  ;;  %p5504_p5 = scmp.ne.s32.totalorder %s6574_s5, %s5503_s18 }
 0x343   : > { %s5651_s19 = smov [#allocation6]  }
 0x344   : > { %p5505_p9 = pnand %p5504_p5, %p5783_p0  ;;  %s5507_s20 = sshll.u32 %s5651_s19, 4  ;;  %s5508_s20 = int_to_ptr.vmem [resolvable:$false] %s5507_s20 }
 0x345   : > { %s5509_s15 = scalar_lea.vmem %s5508_s20, 2048  ;;  %p5510_p11 = scmp.lt.s32.totalorder %s6574_s5, %s5508_s20 }
 0x346   : > { %p5506_p10 = pneg %p5505_p9  ;;  %p5511_p12 = scmp.lt.s32.totalorder %s5509_s15, %s5503_s18 }
 0x348   : > { %p5512_p13 = por %p5511_p12, %p5510_p11 }
 0x34a   : > { %p5513_p1 = pnand %p5512_p13, %p5506_p10 }
 0x34c   : > { %5516 = shalt.err (!%p5513_p1)
}
 0x34d   : > { %s5517_s14 = scalar_lea.hbm %s6579_s29, 1024  ;;  %s5521_s9 = scalar_lea.hbm %s6658_s3, 16384 }
 0x34e   : > { %p5518_p3 = scmp.ne.s32.totalorder %s6579_s29, %s5517_s14  ;;  %p5522_p8 = scmp.lt.s32.totalorder %s6579_s29, %s6658_s3 }
 0x34f   : > { %p5523_p7 = scmp.lt.s32.totalorder %s5521_s9, %s5517_s14 }
 0x350   : > { %p5519_p6 = pnand %p5518_p3, %p5783_p0 }
 0x351   : > { %p5524_p5 = por %p5523_p7, %p5522_p8 }
 0x352   : > { %p5520_p4 = pneg %p5519_p6 }
 0x354   : > { %p5525_p9 = pnand %p5524_p5, %p5520_p4 }
 0x356   : > { %5528 = shalt.err (!%p5525_p9)
}
 0x357   : > { %s5652_s28 = smov 128   ;;  %s5653_s4 = smov 1024  }
 0x358   : > { %s5654_s7 = smov 8  }
 0x359   : > { %5341 = dma.vmem_to_hbm [thread:$0]  (%p5783_p0), %s6574_s5, 1024, %s6579_s29, %s6583_s17, %s5652_s28, %s5653_s4, %s5654_s7  }
 0x35a PF: > { %p5352_p10 = scmp.ge.s32.totalorder %s5639_s24, 2  ;;  %s4483_s10 = sand.u32 1, %s5591_s12  }
 0x35b   : > { %s4484_s30 = scalar_lea.sflag [#allocation5], %s4483_s10 }
 0x35c   : > { %p5348_p11 = pnand %p5352_p10, %p5795_p2 }
 0x35e   : > { %p5349_p12 = pneg %p5348_p11 }
 0x360   : > { %5586 = dma.done.wait (%p5349_p12), %s4484_s30, 1024  }
 0x361   : > { %5588 = vsyncadd (%p5349_p12), %s4484_s30, 4294966272  ;;  %s19_s24 = sadd.s32 1, %s5639_s24   ;;  %s6684_s6 = sld [smem:[#allocation9_spill]] }
 0x362   : > { %p6611_p13 = scmp.ge.s32.totalorder %s19_s24, 50   ;;  %s6685_s14 = sld [smem:[#allocation18_spill]] }
 0x363   : > { %s6686_s5 = sld [smem:[#allocation10_spill]]  ;;  %s6694_s12 = smov %s5595_s13 }
 0x364   : > { %s6687_s17 = sld [smem:[#allocation17_spill]]  ;;  %s6696_s15 = smov %s5607_s16 }
 0x365   : > { %s6688_s18 = sld [smem:[#allocation11_spill]] }
 0x366   : > { %s6689_s19 = sld [smem:[#allocation12_spill]]  ;;  %18 = sbr.rel (!%p6611_p13) target bundleno = 10 (0xa), region = 105 }
 0x367   : > { %s6690_s20 = sld [smem:[#allocation13_spill]]  ;;  %s6695_s13 = smov %s6684_s6 }
 0x368   : > { %s6691_s21 = sld [smem:[#allocation14_spill]] }
 0x369   : > { %s6692_s22 = sld [smem:[#allocation15_spill]]  ;;  %s6697_s16 = smov %s6686_s5 }
 0x36a   : > { %s6693_s23 = sld [smem:[#allocation16_spill]] }
 0x36b   :  { %4489 = vsyncpa [#allocation4], 1 }
 0x36c   :  { %4491 = vsyncpa [#allocation4 + $0x1], 1 }
 0x36d   :  { %4492 = vsyncpa [#allocation5], 1 }
 0x36e   :  { %4494 = vsyncpa [#allocation5 + $0x1], 1 }

</bundles_post_ra>
